<compile_context>
chip_gen: v6e
topology: v6e:2x2x1
jax: 0.10.0
libtpu: 0.0.40
codegen_flags: <defaults>
</compile_context>

<pallas_src>
import math
from functools import partial

import jax
import jax.numpy as jnp
import numpy as np
from jax.experimental import pallas as pl
from jax.experimental.pallas import tpu as pltpu


# ----------------------------------------------------------- in-kernel helpers --

def _layernorm(x, g, b):
    mu = jnp.mean(x, axis=-1, keepdims=True)
    var = jnp.mean(jnp.square(x - mu), axis=-1, keepdims=True)
    return (x - mu) * jax.lax.rsqrt(var + 1e-5) * g + b


def _mha(q, k, v, wo, bo, num_heads):
    """Multi-head attention + output projection.

    q is pre-scaled by 1/sqrt(d_k).  q: (Sq, D), k/v: (Sk, D) -> (Sq, D).
    Per-head contexts are concatenated along lanes and pushed through ONE
    lane-dense output-projection matmul.
    """
    D = q.shape[-1]
    dk = D // num_heads
    ctx = []
    for h in range(num_heads):
        lo = h * dk
        qh = q[:, lo:lo + dk]
        kh = k[:, lo:lo + dk]
        vh = v[:, lo:lo + dk]
        s = jax.lax.dot_general(qh, kh, (((1,), (1,)), ((), ())),
                                preferred_element_type=jnp.float32)    # (Sq, Sk)
        s = s - jnp.max(s, axis=-1, keepdims=True)
        p = jnp.exp(s)
        p = p / jnp.sum(p, axis=-1, keepdims=True)                     # exact softmax
        ctx.append(jnp.dot(p, vh, preferred_element_type=jnp.float32))
    ctx = jnp.concatenate(ctx, axis=-1)                                # (Sq, D)
    return jnp.dot(ctx, wo, preferred_element_type=jnp.float32) + bo


def _ffn(x, w1, b1, w2, b2):
    h = jnp.dot(x, w1, preferred_element_type=jnp.float32) + b1
    h = jnp.maximum(h, 0.0)
    return jnp.dot(h, w2, preferred_element_type=jnp.float32) + b2


# --------------------------------------------------------- single fused kernel --

def _transformer_kernel(xe_ref, xd_ref, pee_ref, ped_ref,
                        ewqkv_ref, ewo_ref, ew1_ref, ew2_ref, evec_ref,
                        dwqkv_ref, dwos_ref, dwqc_ref, dwkvc_ref, dwoc_ref,
                        dw1_ref, dw2_ref, dvec_ref,
                        o_ref, *, num_heads, num_layers, scale):
    D = xe_ref.shape[-1]
    H = ew1_ref.shape[-1]

    # ---------------- encoder stack ----------------
    h = xe_ref[0] + pee_ref[...]                       # positional encoding
    for l in range(num_layers):
        vec = evec_ref[l]                              # (6, W) bias / LN slab
        qkv = (jnp.dot(h, ewqkv_ref[l], preferred_element_type=jnp.float32)
               + vec[0:1, :3 * D])
        q = qkv[:, :D] * scale
        k = qkv[:, D:2 * D]
        v = qkv[:, 2 * D:3 * D]
        att = _mha(q, k, v, ewo_ref[l], vec[1:2, :D], num_heads)
        g = vec[2:3, :D]
        b = vec[3:4, :D]
        y = _layernorm(h + att, g, b)
        f = _ffn(y, ew1_ref[l], vec[4:5, :H], ew2_ref[l], vec[5:6, :D])
        h = _layernorm(y + f, g, b)                    # same LN params again (shared module)

    # ---------------- decoder stack ----------------
    d = xd_ref[0] + ped_ref[...]
    for l in range(num_layers):
        vec = dvec_ref[l]                              # (13, W) bias / LN slab

        # masked self-attention (target_mask is None -> no-op)
        qkv = (jnp.dot(d, dwqkv_ref[l], preferred_element_type=jnp.float32)
               + vec[0:1, :3 * D])
        q = qkv[:, :D] * scale
        k = qkv[:, D:2 * D]
        v = qkv[:, 2 * D:3 * D]
        sa = _mha(q, k, v, dwos_ref[l], vec[1:2, :D], num_heads)
        qn = _layernorm(d + sa, vec[5:6, :D], vec[6:7, :D])

        # cross-attention: Q from decoder stream, fused KV from encoder output
        qc = (jnp.dot(qn, dwqc_ref[l], preferred_element_type=jnp.float32)
              + vec[2:3, :D]) * scale
        kv = (jnp.dot(h, dwkvc_ref[l], preferred_element_type=jnp.float32)
              + vec[3:4, :2 * D])
        kc = kv[:, :D]
        vc = kv[:, D:2 * D]
        cross = _mha(qc, kc, vc, dwoc_ref[l], vec[4:5, :D], num_heads)
        y = _layernorm(qn + cross, vec[7:8, :D], vec[8:9, :D])

        # FFN + final LN
        f = _ffn(y, dw1_ref[l], vec[11:12, :H], dw2_ref[l], vec[12:13, :D])
        d = _layernorm(y + f, vec[9:10, :D], vec[10:11, :D])

    o_ref[0] = d


# -------------------------------------------------------- parameter preparation --
# Done ONCE (outside the per-forward path): stack per-layer weights into (L,...)
# slabs and pack all biases / LayerNorm vectors into a single padded slab.

def prepare_params(params):
    enc, dec = params["encoder"], params["decoder"]
    D = enc[0]["attn"]["wq"].shape[0]
    H = enc[0]["w1"].shape[1]
    W = max(3 * D, H)

    def row(*parts):
        v = jnp.concatenate([jnp.asarray(p, jnp.float32).reshape(-1) for p in parts])
        return jnp.pad(v, (0, W - v.shape[0]))

    e_wqkv, e_wo, e_w1, e_w2, e_vec = [], [], [], [], []
    for p in enc:
        a = p["attn"]
        e_wqkv.append(jnp.concatenate([a["wq"], a["wk"], a["wv"]], axis=1))
        e_wo.append(a["wo"])
        e_w1.append(p["w1"])
        e_w2.append(p["w2"])
        e_vec.append(jnp.stack([row(a["bq"], a["bk"], a["bv"]),
                                row(a["bo"]), row(p["ln_g"]), row(p["ln_b"]),
                                row(p["b1"]), row(p["b2"])]))

    d_wqkv, d_wos, d_wqc, d_wkvc, d_woc, d_w1, d_w2, d_vec = ([] for _ in range(8))
    for p in dec:
        sa, ca = p["self_attn"], p["cross_attn"]
        d_wqkv.append(jnp.concatenate([sa["wq"], sa["wk"], sa["wv"]], axis=1))
        d_wos.append(sa["wo"])
        d_wqc.append(ca["wq"])
        d_wkvc.append(jnp.concatenate([ca["wk"], ca["wv"]], axis=1))
        d_woc.append(ca["wo"])
        d_w1.append(p["w1"])
        d_w2.append(p["w2"])
        d_vec.append(jnp.stack([row(sa["bq"], sa["bk"], sa["bv"]),
                                row(sa["bo"]),
                                row(ca["bq"]),
                                row(ca["bk"], ca["bv"]),
                                row(ca["bo"]),
                                row(p["ln1_g"]), row(p["ln1_b"]),
                                row(p["ln2_g"]), row(p["ln2_b"]),
                                row(p["ln3_g"]), row(p["ln3_b"]),
                                row(p["b1"]), row(p["b2"])]))

    stk = jnp.stack
    return {
        "enc_wqkv": stk(e_wqkv), "enc_wo": stk(e_wo),
        "enc_w1": stk(e_w1), "enc_w2": stk(e_w2), "enc_vec": stk(e_vec),
        "dec_wqkv": stk(d_wqkv), "dec_wo_s": stk(d_wos),
        "dec_wq_c": stk(d_wqc), "dec_wkv_c": stk(d_wkvc), "dec_wo_c": stk(d_woc),
        "dec_w1": stk(d_w1), "dec_w2": stk(d_w2), "dec_vec": stk(d_vec),
    }


# --------------------------------------------------------------- pallas wrapper --

def _rep(a):
    """Full-array block, same block for every grid step (weights stay resident)."""
    nd = a.ndim
    return pl.BlockSpec(a.shape, lambda b, _n=nd: (0,) * _n)


def _pe_table(S, D):
    # exact port of the reference positional_encoding (the additive table)
    ang = jnp.arange(D)
    ang = ang.at[1::2].add(-1)
    ang = ang.reshape(1, -1) / D
    ang = jnp.arange(S).reshape(-1, 1) / jnp.power(10000.0, ang)
    pe = jnp.stack([jnp.sin(ang[:, ::2]), jnp.cos(ang[:, 1::2])], axis=2)
    return pe.reshape(S, D).astype(jnp.float32)


def transformer_forward(prep, x_enc, x_dec, *, num_heads):
    B, Se, D = x_enc.shape
    Sd = x_dec.shape[1]
    num_layers = prep["enc_wqkv"].shape[0]
    pe_e = _pe_table(Se, D)            # static shapes -> trace-time constants
    pe_d = _pe_table(Sd, D)

    weights = [prep["enc_wqkv"], prep["enc_wo"], prep["enc_w1"], prep["enc_w2"],
               prep["enc_vec"],
               prep["dec_wqkv"], prep["dec_wo_s"], prep["dec_wq_c"],
               prep["dec_wkv_c"], prep["dec_wo_c"], prep["dec_w1"],
               prep["dec_w2"], prep["dec_vec"]]

    xe_spec = pl.BlockSpec((1, Se, D), lambda b: (b, 0, 0))
    xd_spec = pl.BlockSpec((1, Sd, D), lambda b: (b, 0, 0))

    kern = partial(_transformer_kernel, num_heads=num_heads,
                   num_layers=num_layers,
                   scale=1.0 / math.sqrt(D // num_heads))
    return pl.pallas_call(
        kern,
        out_shape=jax.ShapeDtypeStruct((B, Sd, D), jnp.float32),
        grid=(B,),
        in_specs=[xe_spec, xd_spec, _rep(pe_e), _rep(pe_d)]
                 + [_rep(w) for w in weights],
        out_specs=xd_spec,
        compiler_params=pltpu.CompilerParams(dimension_semantics=("parallel",)),
    )(x_enc, x_dec, pe_e, pe_d, *weights)


# ----------------------------------------------------------- pure-JAX reference --

def ref_forward(params, x_enc, x_dec, num_heads):
    prec = jax.lax.Precision.HIGHEST

    def lin(x, w, b):
        return jnp.dot(x, w, precision=prec) + b

    def ln(x, g, b):
        mu = x.mean(-1, keepdims=True)
        var = ((x - mu) ** 2).mean(-1, keepdims=True)
        return (x - mu) / jnp.sqrt(var + 1e-5) * g + b

    def mha(p, q, k, v):
        B, S, D = q.shape
        Sk = k.shape[1]
        dk = D // num_heads
        qh = lin(q, p["wq"], p["bq"]).reshape(B, S, num_heads, dk).transpose(0, 2, 1, 3)
        kh = lin(k, p["wk"], p["bk"]).reshape(B, Sk, num_heads, dk).transpose(0, 2, 1, 3)
        vh = lin(v, p["wv"], p["bv"]).reshape(B, Sk, num_heads, dk).transpose(0, 2, 1, 3)
        s = jnp.einsum("bhqd,bhkd->bhqk", qh, kh, precision=prec) / math.sqrt(dk)
        a = jax.nn.softmax(s, axis=-1)
        o = jnp.einsum("bhqk,bhkd->bhqd", a, vh, precision=prec)
        o = o.transpose(0, 2, 1, 3).reshape(B, S, D)
        return lin(o, p["wo"], p["bo"])

    def mlp(x, p):
        return lin(jax.nn.relu(lin(x, p["w1"], p["b1"])), p["w2"], p["b2"])

    def enc_layer(p, x):
        y = ln(x + mha(p["attn"], x, x, x), p["ln_g"], p["ln_b"])
        y = ln(y + mlp(y, p), p["ln_g"], p["ln_b"])
        return y

    def dec_layer(p, x, m):
        q = ln(x + mha(p["self_attn"], x, x, x), p["ln1_g"], p["ln1_b"])
        y = ln(q + mha(p["cross_attn"], q, m, m), p["ln2_g"], p["ln2_b"])
        y = ln(y + mlp(y, p), p["ln3_g"], p["ln3_b"])
        return y

    def pe(x):
        return x + _pe_table(x.shape[1], x.shape[2])

    h = pe(x_enc)
    for p in params["encoder"]:
        h = enc_layer(p, h)
    d = pe(x_dec)
    for p in params["decoder"]:
        d = dec_layer(p, d, h)
    return d


# ------------------------------------------------------------------- params --

def init_linear(key, in_dim, out_dim):
    kw, kb = jax.random.split(key)
    w = jax.random.normal(kw, (in_dim, out_dim), jnp.float32) * 0.05
    b = jax.random.normal(kb, (out_dim,), jnp.float32) * 0.05
    return w, b


def init_mha(key, d):
    keys = jax.random.split(key, 4)
    p = {}
    for name, k in zip("qkvo", keys):
        w, b = init_linear(k, d, d)
        p["w" + name] = w
        p["b" + name] = b
    return p


def init_ln(key, d):
    kg, kb = jax.random.split(key)
    g = 1.0 + 0.1 * jax.random.normal(kg, (d,), jnp.float32)
    b = 0.1 * jax.random.normal(kb, (d,), jnp.float32)
    return g, b


def init_encoder_layer(key, d, h):
    k1, k2, k3, k4 = jax.random.split(key, 4)
    w1, b1 = init_linear(k2, d, h)
    w2, b2 = init_linear(k3, h, d)
    g, b = init_ln(k4, d)
    return {"attn": init_mha(k1, d), "ln_g": g, "ln_b": b,
            "w1": w1, "b1": b1, "w2": w2, "b2": b2}


def init_decoder_layer(key, d, h):
    k1, k2, k3, k4, k5, k6, k7 = jax.random.split(key, 7)
    w1, b1 = init_linear(k3, d, h)
    w2, b2 = init_linear(k4, h, d)
    g1, bb1 = init_ln(k5, d)
    g2, bb2 = init_ln(k6, d)
    g3, bb3 = init_ln(k7, d)
    return {"self_attn": init_mha(k1, d), "cross_attn": init_mha(k2, d),
            "ln1_g": g1, "ln1_b": bb1, "ln2_g": g2, "ln2_b": bb2,
            "ln3_g": g3, "ln3_b": bb3,
            "w1": w1, "b1": b1, "w2": w2, "b2": b2}


def init_transformer(key, d, h, num_layers):
    keys = jax.random.split(key, 2 * num_layers)
    return {
        "encoder": [init_encoder_layer(keys[i], d, h) for i in range(num_layers)],
        "decoder": [init_decoder_layer(keys[num_layers + i], d, h)
                    for i in range(num_layers)],
    }


# --------------------------------------------------------------------- main --

if __name__ == "__main__":
    B, S, D = 2, 8, 32           # batch, sequence, input_dim
    HIDDEN = 64                  # hidden_dim of the MLP block
    NUM_LAYERS = 2
    NUM_HEADS = 4                # d_k = 8
    # dropout = 0.1 in the reference; identity under eval semantics.

    root = jax.random.PRNGKey(0)
    k_params, k_enc, k_dec = jax.random.split(root, 3)
    params = init_transformer(k_params, D, HIDDEN, NUM_LAYERS)

    x_enc = jax.random.normal(k_enc, (B, S, D), jnp.float32)
    x_dec = jax.random.normal(k_dec, (B, S, D), jnp.float32)

    # one-time parameter packing (hoisted out of the per-forward path)
    prep = jax.tree_util.tree_map(jax.block_until_ready, prepare_params(params))

    fwd = jax.jit(partial(transformer_forward, num_heads=NUM_HEADS))
    out = jax.block_until_ready(fwd(prep, x_enc, x_dec))

    ref = jax.block_until_ready(ref_forward(params, x_enc, x_dec, NUM_HEADS))
    assert out.shape == (B, S, D) and out.dtype == jnp.float32
    np.testing.assert_allclose(np.asarray(out), np.asarray(ref),
                               rtol=2e-2, atol=2e-2)

    print("KERNEL_OK")
</pallas_src>

<mosaic_0001>
module attributes {stable_mosaic.version = 11 : i64} {
  func.func private @main(%arg0: i32) attributes {dimension_semantics = [#tpu.dimension_semantics<core_parallel>], iteration_bounds = array<i64: 2>, tpu.core_type = #tpu.core_type<sc_scalar_subcore>, window_params = []} {
    return
  }
}

module attributes {stable_mosaic.version = 11 : i64} {
  func.func private @main(%arg0: i32) attributes {dimension_semantics = [#tpu.dimension_semantics<core_parallel>], iteration_bounds = array<i64: 2>, tpu.core_type = #tpu.core_type<sc_scalar_subcore>, window_params = []} {
    return
  }
}

module attributes {stable_mosaic.version = 11 : i64} {
  func.func @_transformer_kernel(%arg0: i32, %arg1: memref<1x8x32xf32, #tpu.memory_space<vmem>>, %arg2: memref<1x8x32xf32, #tpu.memory_space<vmem>>, %arg3: memref<8x32xf32, #tpu.memory_space<vmem>>, %arg4: memref<8x32xf32, #tpu.memory_space<vmem>>, %arg5: memref<2x32x96xf32, #tpu.memory_space<vmem>>, %arg6: memref<2x32x32xf32, #tpu.memory_space<vmem>>, %arg7: memref<2x32x64xf32, #tpu.memory_space<vmem>>, %arg8: memref<2x64x32xf32, #tpu.memory_space<vmem>>, %arg9: memref<2x6x96xf32, #tpu.memory_space<vmem>>, %arg10: memref<2x32x96xf32, #tpu.memory_space<vmem>>, %arg11: memref<2x32x32xf32, #tpu.memory_space<vmem>>, %arg12: memref<2x32x32xf32, #tpu.memory_space<vmem>>, %arg13: memref<2x32x64xf32, #tpu.memory_space<vmem>>, %arg14: memref<2x32x32xf32, #tpu.memory_space<vmem>>, %arg15: memref<2x32x64xf32, #tpu.memory_space<vmem>>, %arg16: memref<2x64x32xf32, #tpu.memory_space<vmem>>, %arg17: memref<2x13x96xf32, #tpu.memory_space<vmem>>, %arg18: memref<1x8x32xf32, #tpu.memory_space<vmem>>) attributes {dimension_semantics = [#tpu.dimension_semantics<parallel>], iteration_bounds = array<i64: 2>, scalar_prefetch = 0 : i64, scratch_operands = 0 : i64, tpu.core_type = #tpu.core_type<tc>, window_params = [{transform_indices = @transform_0, window_bounds = array<i64: 1, 8, 32>}, {transform_indices = @transform_1, window_bounds = array<i64: 1, 8, 32>}, {pipeline_mode = #tpu.pipeline_mode<synchronous>, transform_indices = @transform_2, window_bounds = array<i64: 8, 32>}, {pipeline_mode = #tpu.pipeline_mode<synchronous>, transform_indices = @transform_3, window_bounds = array<i64: 8, 32>}, {pipeline_mode = #tpu.pipeline_mode<synchronous>, transform_indices = @transform_4, window_bounds = array<i64: 2, 32, 96>}, {pipeline_mode = #tpu.pipeline_mode<synchronous>, transform_indices = @transform_5, window_bounds = array<i64: 2, 32, 32>}, {pipeline_mode = #tpu.pipeline_mode<synchronous>, transform_indices = @transform_6, window_bounds = array<i64: 2, 32, 64>}, {pipeline_mode = #tpu.pipeline_mode<synchronous>, transform_indices = @transform_7, window_bounds = array<i64: 2, 64, 32>}, {pipeline_mode = #tpu.pipeline_mode<synchronous>, transform_indices = @transform_8, window_bounds = array<i64: 2, 6, 96>}, {pipeline_mode = #tpu.pipeline_mode<synchronous>, transform_indices = @transform_9, window_bounds = array<i64: 2, 32, 96>}, {pipeline_mode = #tpu.pipeline_mode<synchronous>, transform_indices = @transform_10, window_bounds = array<i64: 2, 32, 32>}, {pipeline_mode = #tpu.pipeline_mode<synchronous>, transform_indices = @transform_11, window_bounds = array<i64: 2, 32, 32>}, {pipeline_mode = #tpu.pipeline_mode<synchronous>, transform_indices = @transform_12, window_bounds = array<i64: 2, 32, 64>}, {pipeline_mode = #tpu.pipeline_mode<synchronous>, transform_indices = @transform_13, window_bounds = array<i64: 2, 32, 32>}, {pipeline_mode = #tpu.pipeline_mode<synchronous>, transform_indices = @transform_14, window_bounds = array<i64: 2, 32, 64>}, {pipeline_mode = #tpu.pipeline_mode<synchronous>, transform_indices = @transform_15, window_bounds = array<i64: 2, 64, 32>}, {pipeline_mode = #tpu.pipeline_mode<synchronous>, transform_indices = @transform_16, window_bounds = array<i64: 2, 13, 96>}, {transform_indices = @transform_17, window_bounds = array<i64: 1, 8, 32>}]} {
    %c0 = arith.constant 0 : index
    %c0_0 = arith.constant 0 : index
    %c0_1 = arith.constant 0 : index
    %0 = vector.load %arg1[%c0, %c0_0, %c0_1] : memref<1x8x32xf32, #tpu.memory_space<vmem>>, vector<1x8x32xf32>
    %1 = vector.shape_cast %0 : vector<1x8x32xf32> to vector<8x32xf32>
    %c0_2 = arith.constant 0 : index
    %c0_3 = arith.constant 0 : index
    %2 = vector.load %arg3[%c0_2, %c0_3] : memref<8x32xf32, #tpu.memory_space<vmem>>, vector<8x32xf32>
    %3 = arith.addf %1, %2 : vector<8x32xf32>
    %c0_4 = arith.constant 0 : index
    %c0_5 = arith.constant 0 : index
    %c0_6 = arith.constant 0 : index
    %4 = vector.load %arg9[%c0_4, %c0_5, %c0_6] : memref<2x6x96xf32, #tpu.memory_space<vmem>>, vector<1x6x96xf32>
    %5 = vector.shape_cast %4 : vector<1x6x96xf32> to vector<6x96xf32>
    %c0_7 = arith.constant 0 : index
    %c0_8 = arith.constant 0 : index
    %c0_9 = arith.constant 0 : index
    %6 = vector.load %arg5[%c0_7, %c0_8, %c0_9] : memref<2x32x96xf32, #tpu.memory_space<vmem>>, vector<1x32x96xf32>
    %7 = vector.shape_cast %6 : vector<1x32x96xf32> to vector<32x96xf32>
    %cst = arith.constant dense<0.000000e+00> : vector<8x96xf32>
    %8 = tpu.matmul %3, %7, %cst {dimension_numbers = #tpu.dot_dimension_numbers<[1], [0], [0], [1], [0, 0, 1, 1], [], []>} : vector<8x32xf32>, vector<32x96xf32>, vector<8x96xf32> -> vector<8x96xf32>
    %9 = vector.extract_strided_slice %5 {offsets = [0, 0], sizes = [1, 96], strides = [1, 1]} : vector<6x96xf32> to vector<1x96xf32>
    %10 = vector.broadcast %9 : vector<1x96xf32> to vector<8x96xf32>
    %11 = arith.addf %8, %10 : vector<8x96xf32>
    %12 = vector.extract_strided_slice %11 {offsets = [0, 0], sizes = [8, 32], strides = [1, 1]} : vector<8x96xf32> to vector<8x32xf32>
    %cst_10 = arith.constant 0.353553385 : f32
    %13 = vector.broadcast %cst_10 : f32 to vector<8x32xf32>
    %14 = arith.mulf %12, %13 : vector<8x32xf32>
    %15 = vector.extract_strided_slice %11 {offsets = [0, 32], sizes = [8, 32], strides = [1, 1]} : vector<8x96xf32> to vector<8x32xf32>
    %16 = vector.extract_strided_slice %11 {offsets = [0, 64], sizes = [8, 32], strides = [1, 1]} : vector<8x96xf32> to vector<8x32xf32>
    %c0_11 = arith.constant 0 : index
    %c0_12 = arith.constant 0 : index
    %c0_13 = arith.constant 0 : index
    %17 = vector.load %arg6[%c0_11, %c0_12, %c0_13] : memref<2x32x32xf32, #tpu.memory_space<vmem>>, vector<1x32x32xf32>
    %18 = vector.shape_cast %17 : vector<1x32x32xf32> to vector<32x32xf32>
    %19 = vector.extract_strided_slice %5 {offsets = [1, 0], sizes = [1, 32], strides = [1, 1]} : vector<6x96xf32> to vector<1x32xf32>
    %20 = vector.extract_strided_slice %14 {offsets = [0, 0], sizes = [8, 8], strides = [1, 1]} : vector<8x32xf32> to vector<8x8xf32>
    %21 = vector.extract_strided_slice %15 {offsets = [0, 0], sizes = [8, 8], strides = [1, 1]} : vector<8x32xf32> to vector<8x8xf32>
    %22 = vector.extract_strided_slice %16 {offsets = [0, 0], sizes = [8, 8], strides = [1, 1]} : vector<8x32xf32> to vector<8x8xf32>
    %cst_14 = arith.constant dense<0.000000e+00> : vector<8x8xf32>
    %23 = tpu.matmul %20, %21, %cst_14 {dimension_numbers = #tpu.dot_dimension_numbers<[1], [1], [0], [0], [0, 0, 1, 0], [], []>} : vector<8x8xf32>, vector<8x8xf32>, vector<8x8xf32> -> vector<8x8xf32>
    %cst_15 = arith.constant dense<0xFF800000> : vector<8xf32>
    %24 = vector.multi_reduction <maximumf>, %23, %cst_15 [1] : vector<8x8xf32> to vector<8xf32>
    %25 = vector.shape_cast %24 : vector<8xf32> to vector<8x1xf32>
    %26 = vector.broadcast %25 : vector<8x1xf32> to vector<8x8xf32>
    %27 = arith.subf %23, %26 : vector<8x8xf32>
    %28 = math.exp %27 : vector<8x8xf32>
    %cst_16 = arith.constant dense<0.000000e+00> : vector<8xf32>
    %29 = vector.multi_reduction <add>, %28, %cst_16 [1] : vector<8x8xf32> to vector<8xf32>
    %30 = vector.shape_cast %29 : vector<8xf32> to vector<8x1xf32>
    %31 = vector.broadcast %30 : vector<8x1xf32> to vector<8x8xf32>
    %32 = arith.divf %28, %31 : vector<8x8xf32>
    %cst_17 = arith.constant dense<0.000000e+00> : vector<8x8xf32>
    %33 = tpu.matmul %32, %22, %cst_17 {dimension_numbers = #tpu.dot_dimension_numbers<[1], [0], [0], [1], [0, 0, 1, 1], [], []>} : vector<8x8xf32>, vector<8x8xf32>, vector<8x8xf32> -> vector<8x8xf32>
    %34 = vector.extract_strided_slice %14 {offsets = [0, 8], sizes = [8, 8], strides = [1, 1]} : vector<8x32xf32> to vector<8x8xf32>
    %35 = vector.extract_strided_slice %15 {offsets = [0, 8], sizes = [8, 8], strides = [1, 1]} : vector<8x32xf32> to vector<8x8xf32>
    %36 = vector.extract_strided_slice %16 {offsets = [0, 8], sizes = [8, 8], strides = [1, 1]} : vector<8x32xf32> to vector<8x8xf32>
    %cst_18 = arith.constant dense<0.000000e+00> : vector<8x8xf32>
    %37 = tpu.matmul %34, %35, %cst_18 {dimension_numbers = #tpu.dot_dimension_numbers<[1], [1], [0], [0], [0, 0, 1, 0], [], []>} : vector<8x8xf32>, vector<8x8xf32>, vector<8x8xf32> -> vector<8x8xf32>
    %cst_19 = arith.constant dense<0xFF800000> : vector<8xf32>
    %38 = vector.multi_reduction <maximumf>, %37, %cst_19 [1] : vector<8x8xf32> to vector<8xf32>
    %39 = vector.shape_cast %38 : vector<8xf32> to vector<8x1xf32>
    %40 = vector.broadcast %39 : vector<8x1xf32> to vector<8x8xf32>
    %41 = arith.subf %37, %40 : vector<8x8xf32>
    %42 = math.exp %41 : vector<8x8xf32>
    %cst_20 = arith.constant dense<0.000000e+00> : vector<8xf32>
    %43 = vector.multi_reduction <add>, %42, %cst_20 [1] : vector<8x8xf32> to vector<8xf32>
    %44 = vector.shape_cast %43 : vector<8xf32> to vector<8x1xf32>
    %45 = vector.broadcast %44 : vector<8x1xf32> to vector<8x8xf32>
    %46 = arith.divf %42, %45 : vector<8x8xf32>
    %cst_21 = arith.constant dense<0.000000e+00> : vector<8x8xf32>
    %47 = tpu.matmul %46, %36, %cst_21 {dimension_numbers = #tpu.dot_dimension_numbers<[1], [0], [0], [1], [0, 0, 1, 1], [], []>} : vector<8x8xf32>, vector<8x8xf32>, vector<8x8xf32> -> vector<8x8xf32>
    %48 = vector.extract_strided_slice %14 {offsets = [0, 16], sizes = [8, 8], strides = [1, 1]} : vector<8x32xf32> to vector<8x8xf32>
    %49 = vector.extract_strided_slice %15 {offsets = [0, 16], sizes = [8, 8], strides = [1, 1]} : vector<8x32xf32> to vector<8x8xf32>
    %50 = vector.extract_strided_slice %16 {offsets = [0, 16], sizes = [8, 8], strides = [1, 1]} : vector<8x32xf32> to vector<8x8xf32>
    %cst_22 = arith.constant dense<0.000000e+00> : vector<8x8xf32>
    %51 = tpu.matmul %48, %49, %cst_22 {dimension_numbers = #tpu.dot_dimension_numbers<[1], [1], [0], [0], [0, 0, 1, 0], [], []>} : vector<8x8xf32>, vector<8x8xf32>, vector<8x8xf32> -> vector<8x8xf32>
    %cst_23 = arith.constant dense<0xFF800000> : vector<8xf32>
    %52 = vector.multi_reduction <maximumf>, %51, %cst_23 [1] : vector<8x8xf32> to vector<8xf32>
    %53 = vector.shape_cast %52 : vector<8xf32> to vector<8x1xf32>
    %54 = vector.broadcast %53 : vector<8x1xf32> to vector<8x8xf32>
    %55 = arith.subf %51, %54 : vector<8x8xf32>
    %56 = math.exp %55 : vector<8x8xf32>
    %cst_24 = arith.constant dense<0.000000e+00> : vector<8xf32>
    %57 = vector.multi_reduction <add>, %56, %cst_24 [1] : vector<8x8xf32> to vector<8xf32>
    %58 = vector.shape_cast %57 : vector<8xf32> to vector<8x1xf32>
    %59 = vector.broadcast %58 : vector<8x1xf32> to vector<8x8xf32>
    %60 = arith.divf %56, %59 : vector<8x8xf32>
    %cst_25 = arith.constant dense<0.000000e+00> : vector<8x8xf32>
    %61 = tpu.matmul %60, %50, %cst_25 {dimension_numbers = #tpu.dot_dimension_numbers<[1], [0], [0], [1], [0, 0, 1, 1], [], []>} : vector<8x8xf32>, vector<8x8xf32>, vector<8x8xf32> -> vector<8x8xf32>
    %62 = vector.extract_strided_slice %14 {offsets = [0, 24], sizes = [8, 8], strides = [1, 1]} : vector<8x32xf32> to vector<8x8xf32>
    %63 = vector.extract_strided_slice %15 {offsets = [0, 24], sizes = [8, 8], strides = [1, 1]} : vector<8x32xf32> to vector<8x8xf32>
    %64 = vector.extract_strided_slice %16 {offsets = [0, 24], sizes = [8, 8], strides = [1, 1]} : vector<8x32xf32> to vector<8x8xf32>
    %cst_26 = arith.constant dense<0.000000e+00> : vector<8x8xf32>
    %65 = tpu.matmul %62, %63, %cst_26 {dimension_numbers = #tpu.dot_dimension_numbers<[1], [1], [0], [0], [0, 0, 1, 0], [], []>} : vector<8x8xf32>, vector<8x8xf32>, vector<8x8xf32> -> vector<8x8xf32>
    %cst_27 = arith.constant dense<0xFF800000> : vector<8xf32>
    %66 = vector.multi_reduction <maximumf>, %65, %cst_27 [1] : vector<8x8xf32> to vector<8xf32>
    %67 = vector.shape_cast %66 : vector<8xf32> to vector<8x1xf32>
    %68 = vector.broadcast %67 : vector<8x1xf32> to vector<8x8xf32>
    %69 = arith.subf %65, %68 : vector<8x8xf32>
    %70 = math.exp %69 : vector<8x8xf32>
    %cst_28 = arith.constant dense<0.000000e+00> : vector<8xf32>
    %71 = vector.multi_reduction <add>, %70, %cst_28 [1] : vector<8x8xf32> to vector<8xf32>
    %72 = vector.shape_cast %71 : vector<8xf32> to vector<8x1xf32>
    %73 = vector.broadcast %72 : vector<8x1xf32> to vector<8x8xf32>
    %74 = arith.divf %70, %73 : vector<8x8xf32>
    %cst_29 = arith.constant dense<0.000000e+00> : vector<8x8xf32>
    %75 = tpu.matmul %74, %64, %cst_29 {dimension_numbers = #tpu.dot_dimension_numbers<[1], [0], [0], [1], [0, 0, 1, 1], [], []>} : vector<8x8xf32>, vector<8x8xf32>, vector<8x8xf32> -> vector<8x8xf32>
    %76 = tpu.concatenate %33, %47, %61, %75 in 1 : vector<8x8xf32>, vector<8x8xf32>, vector<8x8xf32>, vector<8x8xf32> -> vector<8x32xf32>
    %cst_30 = arith.constant dense<0.000000e+00> : vector<8x32xf32>
    %77 = tpu.matmul %76, %18, %cst_30 {dimension_numbers = #tpu.dot_dimension_numbers<[1], [0], [0], [1], [0, 0, 1, 1], [], []>} : vector<8x32xf32>, vector<32x32xf32>, vector<8x32xf32> -> vector<8x32xf32>
    %78 = vector.broadcast %19 : vector<1x32xf32> to vector<8x32xf32>
    %79 = arith.addf %77, %78 : vector<8x32xf32>
    %80 = vector.extract_strided_slice %5 {offsets = [2, 0], sizes = [1, 32], strides = [1, 1]} : vector<6x96xf32> to vector<1x32xf32>
    %81 = vector.extract_strided_slice %5 {offsets = [3, 0], sizes = [1, 32], strides = [1, 1]} : vector<6x96xf32> to vector<1x32xf32>
    %82 = arith.addf %3, %79 : vector<8x32xf32>
    %cst_31 = arith.constant dense<0.000000e+00> : vector<8xf32>
    %83 = vector.multi_reduction <add>, %82, %cst_31 [1] : vector<8x32xf32> to vector<8xf32>
    %84 = vector.shape_cast %83 : vector<8xf32> to vector<8x1xf32>
    %cst_32 = arith.constant 3.200000e+01 : f32
    %85 = vector.broadcast %cst_32 : f32 to vector<8x1xf32>
    %86 = arith.divf %84, %85 : vector<8x1xf32>
    %87 = vector.broadcast %86 : vector<8x1xf32> to vector<8x32xf32>
    %88 = arith.subf %82, %87 : vector<8x32xf32>
    %89 = arith.mulf %88, %88 : vector<8x32xf32>
    %cst_33 = arith.constant dense<0.000000e+00> : vector<8xf32>
    %90 = vector.multi_reduction <add>, %89, %cst_33 [1] : vector<8x32xf32> to vector<8xf32>
    %91 = vector.shape_cast %90 : vector<8xf32> to vector<8x1xf32>
    %cst_34 = arith.constant 3.200000e+01 : f32
    %92 = vector.broadcast %cst_34 : f32 to vector<8x1xf32>
    %93 = arith.divf %91, %92 : vector<8x1xf32>
    %94 = vector.broadcast %86 : vector<8x1xf32> to vector<8x32xf32>
    %95 = arith.subf %82, %94 : vector<8x32xf32>
    %cst_35 = arith.constant 9.99999974E-6 : f32
    %96 = vector.broadcast %cst_35 : f32 to vector<8x1xf32>
    %97 = arith.addf %93, %96 : vector<8x1xf32>
    %98 = math.rsqrt %97 : vector<8x1xf32>
    %99 = vector.broadcast %98 : vector<8x1xf32> to vector<8x32xf32>
    %100 = arith.mulf %95, %99 : vector<8x32xf32>
    %101 = vector.broadcast %80 : vector<1x32xf32> to vector<8x32xf32>
    %102 = arith.mulf %100, %101 : vector<8x32xf32>
    %103 = vector.broadcast %81 : vector<1x32xf32> to vector<8x32xf32>
    %104 = arith.addf %102, %103 : vector<8x32xf32>
    %c0_36 = arith.constant 0 : index
    %c0_37 = arith.constant 0 : index
    %c0_38 = arith.constant 0 : index
    %105 = vector.load %arg7[%c0_36, %c0_37, %c0_38] : memref<2x32x64xf32, #tpu.memory_space<vmem>>, vector<1x32x64xf32>
    %106 = vector.shape_cast %105 : vector<1x32x64xf32> to vector<32x64xf32>
    %107 = vector.extract_strided_slice %5 {offsets = [4, 0], sizes = [1, 64], strides = [1, 1]} : vector<6x96xf32> to vector<1x64xf32>
    %c0_39 = arith.constant 0 : index
    %c0_40 = arith.constant 0 : index
    %c0_41 = arith.constant 0 : index
    %108 = vector.load %arg8[%c0_39, %c0_40, %c0_41] : memref<2x64x32xf32, #tpu.memory_space<vmem>>, vector<1x64x32xf32>
    %109 = vector.shape_cast %108 : vector<1x64x32xf32> to vector<64x32xf32>
    %110 = vector.extract_strided_slice %5 {offsets = [5, 0], sizes = [1, 32], strides = [1, 1]} : vector<6x96xf32> to vector<1x32xf32>
    %cst_42 = arith.constant dense<0.000000e+00> : vector<8x64xf32>
    %111 = tpu.matmul %104, %106, %cst_42 {dimension_numbers = #tpu.dot_dimension_numbers<[1], [0], [0], [1], [0, 0, 1, 1], [], []>} : vector<8x32xf32>, vector<32x64xf32>, vector<8x64xf32> -> vector<8x64xf32>
    %112 = vector.broadcast %107 : vector<1x64xf32> to vector<8x64xf32>
    %113 = arith.addf %111, %112 : vector<8x64xf32>
    %cst_43 = arith.constant 0.000000e+00 : f32
    %114 = vector.broadcast %cst_43 : f32 to vector<8x64xf32>
    %115 = arith.maximumf %113, %114 : vector<8x64xf32>
    %cst_44 = arith.constant dense<0.000000e+00> : vector<8x32xf32>
    %116 = tpu.matmul %115, %109, %cst_44 {dimension_numbers = #tpu.dot_dimension_numbers<[1], [0], [0], [1], [0, 0, 1, 1], [], []>} : vector<8x64xf32>, vector<64x32xf32>, vector<8x32xf32> -> vector<8x32xf32>
    %117 = vector.broadcast %110 : vector<1x32xf32> to vector<8x32xf32>
    %118 = arith.addf %116, %117 : vector<8x32xf32>
    %119 = arith.addf %104, %118 : vector<8x32xf32>
    %cst_45 = arith.constant dense<0.000000e+00> : vector<8xf32>
    %120 = vector.multi_reduction <add>, %119, %cst_45 [1] : vector<8x32xf32> to vector<8xf32>
    %121 = vector.shape_cast %120 : vector<8xf32> to vector<8x1xf32>
    %cst_46 = arith.constant 3.200000e+01 : f32
    %122 = vector.broadcast %cst_46 : f32 to vector<8x1xf32>
    %123 = arith.divf %121, %122 : vector<8x1xf32>
    %124 = vector.broadcast %123 : vector<8x1xf32> to vector<8x32xf32>
    %125 = arith.subf %119, %124 : vector<8x32xf32>
    %126 = arith.mulf %125, %125 : vector<8x32xf32>
    %cst_47 = arith.constant dense<0.000000e+00> : vector<8xf32>
    %127 = vector.multi_reduction <add>, %126, %cst_47 [1] : vector<8x32xf32> to vector<8xf32>
    %128 = vector.shape_cast %127 : vector<8xf32> to vector<8x1xf32>
    %cst_48 = arith.constant 3.200000e+01 : f32
    %129 = vector.broadcast %cst_48 : f32 to vector<8x1xf32>
    %130 = arith.divf %128, %129 : vector<8x1xf32>
    %131 = vector.broadcast %123 : vector<8x1xf32> to vector<8x32xf32>
    %132 = arith.subf %119, %131 : vector<8x32xf32>
    %cst_49 = arith.constant 9.99999974E-6 : f32
    %133 = vector.broadcast %cst_49 : f32 to vector<8x1xf32>
    %134 = arith.addf %130, %133 : vector<8x1xf32>
    %135 = math.rsqrt %134 : vector<8x1xf32>
    %136 = vector.broadcast %135 : vector<8x1xf32> to vector<8x32xf32>
    %137 = arith.mulf %132, %136 : vector<8x32xf32>
    %138 = vector.broadcast %80 : vector<1x32xf32> to vector<8x32xf32>
    %139 = arith.mulf %137, %138 : vector<8x32xf32>
    %140 = vector.broadcast %81 : vector<1x32xf32> to vector<8x32xf32>
    %141 = arith.addf %139, %140 : vector<8x32xf32>
    %c1 = arith.constant 1 : index
    %c0_50 = arith.constant 0 : index
    %c0_51 = arith.constant 0 : index
    %142 = vector.load %arg9[%c1, %c0_50, %c0_51] : memref<2x6x96xf32, #tpu.memory_space<vmem>>, vector<1x6x96xf32>
    %143 = vector.shape_cast %142 : vector<1x6x96xf32> to vector<6x96xf32>
    %c1_52 = arith.constant 1 : index
    %c0_53 = arith.constant 0 : index
    %c0_54 = arith.constant 0 : index
    %144 = vector.load %arg5[%c1_52, %c0_53, %c0_54] : memref<2x32x96xf32, #tpu.memory_space<vmem>>, vector<1x32x96xf32>
    %145 = vector.shape_cast %144 : vector<1x32x96xf32> to vector<32x96xf32>
    %cst_55 = arith.constant dense<0.000000e+00> : vector<8x96xf32>
    %146 = tpu.matmul %141, %145, %cst_55 {dimension_numbers = #tpu.dot_dimension_numbers<[1], [0], [0], [1], [0, 0, 1, 1], [], []>} : vector<8x32xf32>, vector<32x96xf32>, vector<8x96xf32> -> vector<8x96xf32>
    %147 = vector.extract_strided_slice %143 {offsets = [0, 0], sizes = [1, 96], strides = [1, 1]} : vector<6x96xf32> to vector<1x96xf32>
    %148 = vector.broadcast %147 : vector<1x96xf32> to vector<8x96xf32>
    %149 = arith.addf %146, %148 : vector<8x96xf32>
    %150 = vector.extract_strided_slice %149 {offsets = [0, 0], sizes = [8, 32], strides = [1, 1]} : vector<8x96xf32> to vector<8x32xf32>
    %cst_56 = arith.constant 0.353553385 : f32
    %151 = vector.broadcast %cst_56 : f32 to vector<8x32xf32>
    %152 = arith.mulf %150, %151 : vector<8x32xf32>
    %153 = vector.extract_strided_slice %149 {offsets = [0, 32], sizes = [8, 32], strides = [1, 1]} : vector<8x96xf32> to vector<8x32xf32>
    %154 = vector.extract_strided_slice %149 {offsets = [0, 64], sizes = [8, 32], strides = [1, 1]} : vector<8x96xf32> to vector<8x32xf32>
    %c1_57 = arith.constant 1 : index
    %c0_58 = arith.constant 0 : index
    %c0_59 = arith.constant 0 : index
    %155 = vector.load %arg6[%c1_57, %c0_58, %c0_59] : memref<2x32x32xf32, #tpu.memory_space<vmem>>, vector<1x32x32xf32>
    %156 = vector.shape_cast %155 : vector<1x32x32xf32> to vector<32x32xf32>
    %157 = vector.extract_strided_slice %143 {offsets = [1, 0], sizes = [1, 32], strides = [1, 1]} : vector<6x96xf32> to vector<1x32xf32>
    %158 = vector.extract_strided_slice %152 {offsets = [0, 0], sizes = [8, 8], strides = [1, 1]} : vector<8x32xf32> to vector<8x8xf32>
    %159 = vector.extract_strided_slice %153 {offsets = [0, 0], sizes = [8, 8], strides = [1, 1]} : vector<8x32xf32> to vector<8x8xf32>
    %160 = vector.extract_strided_slice %154 {offsets = [0, 0], sizes = [8, 8], strides = [1, 1]} : vector<8x32xf32> to vector<8x8xf32>
    %cst_60 = arith.constant dense<0.000000e+00> : vector<8x8xf32>
    %161 = tpu.matmul %158, %159, %cst_60 {dimension_numbers = #tpu.dot_dimension_numbers<[1], [1], [0], [0], [0, 0, 1, 0], [], []>} : vector<8x8xf32>, vector<8x8xf32>, vector<8x8xf32> -> vector<8x8xf32>
    %cst_61 = arith.constant dense<0xFF800000> : vector<8xf32>
    %162 = vector.multi_reduction <maximumf>, %161, %cst_61 [1] : vector<8x8xf32> to vector<8xf32>
    %163 = vector.shape_cast %162 : vector<8xf32> to vector<8x1xf32>
    %164 = vector.broadcast %163 : vector<8x1xf32> to vector<8x8xf32>
    %165 = arith.subf %161, %164 : vector<8x8xf32>
    %166 = math.exp %165 : vector<8x8xf32>
    %cst_62 = arith.constant dense<0.000000e+00> : vector<8xf32>
    %167 = vector.multi_reduction <add>, %166, %cst_62 [1] : vector<8x8xf32> to vector<8xf32>
    %168 = vector.shape_cast %167 : vector<8xf32> to vector<8x1xf32>
    %169 = vector.broadcast %168 : vector<8x1xf32> to vector<8x8xf32>
    %170 = arith.divf %166, %169 : vector<8x8xf32>
    %cst_63 = arith.constant dense<0.000000e+00> : vector<8x8xf32>
    %171 = tpu.matmul %170, %160, %cst_63 {dimension_numbers = #tpu.dot_dimension_numbers<[1], [0], [0], [1], [0, 0, 1, 1], [], []>} : vector<8x8xf32>, vector<8x8xf32>, vector<8x8xf32> -> vector<8x8xf32>
    %172 = vector.extract_strided_slice %152 {offsets = [0, 8], sizes = [8, 8], strides = [1, 1]} : vector<8x32xf32> to vector<8x8xf32>
    %173 = vector.extract_strided_slice %153 {offsets = [0, 8], sizes = [8, 8], strides = [1, 1]} : vector<8x32xf32> to vector<8x8xf32>
    %174 = vector.extract_strided_slice %154 {offsets = [0, 8], sizes = [8, 8], strides = [1, 1]} : vector<8x32xf32> to vector<8x8xf32>
    %cst_64 = arith.constant dense<0.000000e+00> : vector<8x8xf32>
    %175 = tpu.matmul %172, %173, %cst_64 {dimension_numbers = #tpu.dot_dimension_numbers<[1], [1], [0], [0], [0, 0, 1, 0], [], []>} : vector<8x8xf32>, vector<8x8xf32>, vector<8x8xf32> -> vector<8x8xf32>
    %cst_65 = arith.constant dense<0xFF800000> : vector<8xf32>
    %176 = vector.multi_reduction <maximumf>, %175, %cst_65 [1] : vector<8x8xf32> to vector<8xf32>
    %177 = vector.shape_cast %176 : vector<8xf32> to vector<8x1xf32>
    %178 = vector.broadcast %177 : vector<8x1xf32> to vector<8x8xf32>
    %179 = arith.subf %175, %178 : vector<8x8xf32>
    %180 = math.exp %179 : vector<8x8xf32>
    %cst_66 = arith.constant dense<0.000000e+00> : vector<8xf32>
    %181 = vector.multi_reduction <add>, %180, %cst_66 [1] : vector<8x8xf32> to vector<8xf32>
    %182 = vector.shape_cast %181 : vector<8xf32> to vector<8x1xf32>
    %183 = vector.broadcast %182 : vector<8x1xf32> to vector<8x8xf32>
    %184 = arith.divf %180, %183 : vector<8x8xf32>
    %cst_67 = arith.constant dense<0.000000e+00> : vector<8x8xf32>
    %185 = tpu.matmul %184, %174, %cst_67 {dimension_numbers = #tpu.dot_dimension_numbers<[1], [0], [0], [1], [0, 0, 1, 1], [], []>} : vector<8x8xf32>, vector<8x8xf32>, vector<8x8xf32> -> vector<8x8xf32>
    %186 = vector.extract_strided_slice %152 {offsets = [0, 16], sizes = [8, 8], strides = [1, 1]} : vector<8x32xf32> to vector<8x8xf32>
    %187 = vector.extract_strided_slice %153 {offsets = [0, 16], sizes = [8, 8], strides = [1, 1]} : vector<8x32xf32> to vector<8x8xf32>
    %188 = vector.extract_strided_slice %154 {offsets = [0, 16], sizes = [8, 8], strides = [1, 1]} : vector<8x32xf32> to vector<8x8xf32>
    %cst_68 = arith.constant dense<0.000000e+00> : vector<8x8xf32>
    %189 = tpu.matmul %186, %187, %cst_68 {dimension_numbers = #tpu.dot_dimension_numbers<[1], [1], [0], [0], [0, 0, 1, 0], [], []>} : vector<8x8xf32>, vector<8x8xf32>, vector<8x8xf32> -> vector<8x8xf32>
    %cst_69 = arith.constant dense<0xFF800000> : vector<8xf32>
    %190 = vector.multi_reduction <maximumf>, %189, %cst_69 [1] : vector<8x8xf32> to vector<8xf32>
    %191 = vector.shape_cast %190 : vector<8xf32> to vector<8x1xf32>
    %192 = vector.broadcast %191 : vector<8x1xf32> to vector<8x8xf32>
    %193 = arith.subf %189, %192 : vector<8x8xf32>
    %194 = math.exp %193 : vector<8x8xf32>
    %cst_70 = arith.constant dense<0.000000e+00> : vector<8xf32>
    %195 = vector.multi_reduction <add>, %194, %cst_70 [1] : vector<8x8xf32> to vector<8xf32>
    %196 = vector.shape_cast %195 : vector<8xf32> to vector<8x1xf32>
    %197 = vector.broadcast %196 : vector<8x1xf32> to vector<8x8xf32>
    %198 = arith.divf %194, %197 : vector<8x8xf32>
    %cst_71 = arith.constant dense<0.000000e+00> : vector<8x8xf32>
    %199 = tpu.matmul %198, %188, %cst_71 {dimension_numbers = #tpu.dot_dimension_numbers<[1], [0], [0], [1], [0, 0, 1, 1], [], []>} : vector<8x8xf32>, vector<8x8xf32>, vector<8x8xf32> -> vector<8x8xf32>
    %200 = vector.extract_strided_slice %152 {offsets = [0, 24], sizes = [8, 8], strides = [1, 1]} : vector<8x32xf32> to vector<8x8xf32>
    %201 = vector.extract_strided_slice %153 {offsets = [0, 24], sizes = [8, 8], strides = [1, 1]} : vector<8x32xf32> to vector<8x8xf32>
    %202 = vector.extract_strided_slice %154 {offsets = [0, 24], sizes = [8, 8], strides = [1, 1]} : vector<8x32xf32> to vector<8x8xf32>
    %cst_72 = arith.constant dense<0.000000e+00> : vector<8x8xf32>
    %203 = tpu.matmul %200, %201, %cst_72 {dimension_numbers = #tpu.dot_dimension_numbers<[1], [1], [0], [0], [0, 0, 1, 0], [], []>} : vector<8x8xf32>, vector<8x8xf32>, vector<8x8xf32> -> vector<8x8xf32>
    %cst_73 = arith.constant dense<0xFF800000> : vector<8xf32>
    %204 = vector.multi_reduction <maximumf>, %203, %cst_73 [1] : vector<8x8xf32> to vector<8xf32>
    %205 = vector.shape_cast %204 : vector<8xf32> to vector<8x1xf32>
    %206 = vector.broadcast %205 : vector<8x1xf32> to vector<8x8xf32>
    %207 = arith.subf %203, %206 : vector<8x8xf32>
    %208 = math.exp %207 : vector<8x8xf32>
    %cst_74 = arith.constant dense<0.000000e+00> : vector<8xf32>
    %209 = vector.multi_reduction <add>, %208, %cst_74 [1] : vector<8x8xf32> to vector<8xf32>
    %210 = vector.shape_cast %209 : vector<8xf32> to vector<8x1xf32>
    %211 = vector.broadcast %210 : vector<8x1xf32> to vector<8x8xf32>
    %212 = arith.divf %208, %211 : vector<8x8xf32>
    %cst_75 = arith.constant dense<0.000000e+00> : vector<8x8xf32>
    %213 = tpu.matmul %212, %202, %cst_75 {dimension_numbers = #tpu.dot_dimension_numbers<[1], [0], [0], [1], [0, 0, 1, 1], [], []>} : vector<8x8xf32>, vector<8x8xf32>, vector<8x8xf32> -> vector<8x8xf32>
    %214 = tpu.concatenate %171, %185, %199, %213 in 1 : vector<8x8xf32>, vector<8x8xf32>, vector<8x8xf32>, vector<8x8xf32> -> vector<8x32xf32>
    %cst_76 = arith.constant dense<0.000000e+00> : vector<8x32xf32>
    %215 = tpu.matmul %214, %156, %cst_76 {dimension_numbers = #tpu.dot_dimension_numbers<[1], [0], [0], [1], [0, 0, 1, 1], [], []>} : vector<8x32xf32>, vector<32x32xf32>, vector<8x32xf32> -> vector<8x32xf32>
    %216 = vector.broadcast %157 : vector<1x32xf32> to vector<8x32xf32>
    %217 = arith.addf %215, %216 : vector<8x32xf32>
    %218 = vector.extract_strided_slice %143 {offsets = [2, 0], sizes = [1, 32], strides = [1, 1]} : vector<6x96xf32> to vector<1x32xf32>
    %219 = vector.extract_strided_slice %143 {offsets = [3, 0], sizes = [1, 32], strides = [1, 1]} : vector<6x96xf32> to vector<1x32xf32>
    %220 = arith.addf %141, %217 : vector<8x32xf32>
    %cst_77 = arith.constant dense<0.000000e+00> : vector<8xf32>
    %221 = vector.multi_reduction <add>, %220, %cst_77 [1] : vector<8x32xf32> to vector<8xf32>
    %222 = vector.shape_cast %221 : vector<8xf32> to vector<8x1xf32>
    %cst_78 = arith.constant 3.200000e+01 : f32
    %223 = vector.broadcast %cst_78 : f32 to vector<8x1xf32>
    %224 = arith.divf %222, %223 : vector<8x1xf32>
    %225 = vector.broadcast %224 : vector<8x1xf32> to vector<8x32xf32>
    %226 = arith.subf %220, %225 : vector<8x32xf32>
    %227 = arith.mulf %226, %226 : vector<8x32xf32>
    %cst_79 = arith.constant dense<0.000000e+00> : vector<8xf32>
    %228 = vector.multi_reduction <add>, %227, %cst_79 [1] : vector<8x32xf32> to vector<8xf32>
    %229 = vector.shape_cast %228 : vector<8xf32> to vector<8x1xf32>
    %cst_80 = arith.constant 3.200000e+01 : f32
    %230 = vector.broadcast %cst_80 : f32 to vector<8x1xf32>
    %231 = arith.divf %229, %230 : vector<8x1xf32>
    %232 = vector.broadcast %224 : vector<8x1xf32> to vector<8x32xf32>
    %233 = arith.subf %220, %232 : vector<8x32xf32>
    %cst_81 = arith.constant 9.99999974E-6 : f32
    %234 = vector.broadcast %cst_81 : f32 to vector<8x1xf32>
    %235 = arith.addf %231, %234 : vector<8x1xf32>
    %236 = math.rsqrt %235 : vector<8x1xf32>
    %237 = vector.broadcast %236 : vector<8x1xf32> to vector<8x32xf32>
    %238 = arith.mulf %233, %237 : vector<8x32xf32>
    %239 = vector.broadcast %218 : vector<1x32xf32> to vector<8x32xf32>
    %240 = arith.mulf %238, %239 : vector<8x32xf32>
    %241 = vector.broadcast %219 : vector<1x32xf32> to vector<8x32xf32>
    %242 = arith.addf %240, %241 : vector<8x32xf32>
    %c1_82 = arith.constant 1 : index
    %c0_83 = arith.constant 0 : index
    %c0_84 = arith.constant 0 : index
    %243 = vector.load %arg7[%c1_82, %c0_83, %c0_84] : memref<2x32x64xf32, #tpu.memory_space<vmem>>, vector<1x32x64xf32>
    %244 = vector.shape_cast %243 : vector<1x32x64xf32> to vector<32x64xf32>
    %245 = vector.extract_strided_slice %143 {offsets = [4, 0], sizes = [1, 64], strides = [1, 1]} : vector<6x96xf32> to vector<1x64xf32>
    %c1_85 = arith.constant 1 : index
    %c0_86 = arith.constant 0 : index
    %c0_87 = arith.constant 0 : index
    %246 = vector.load %arg8[%c1_85, %c0_86, %c0_87] : memref<2x64x32xf32, #tpu.memory_space<vmem>>, vector<1x64x32xf32>
    %247 = vector.shape_cast %246 : vector<1x64x32xf32> to vector<64x32xf32>
    %248 = vector.extract_strided_slice %143 {offsets = [5, 0], sizes = [1, 32], strides = [1, 1]} : vector<6x96xf32> to vector<1x32xf32>
    %cst_88 = arith.constant dense<0.000000e+00> : vector<8x64xf32>
    %249 = tpu.matmul %242, %244, %cst_88 {dimension_numbers = #tpu.dot_dimension_numbers<[1], [0], [0], [1], [0, 0, 1, 1], [], []>} : vector<8x32xf32>, vector<32x64xf32>, vector<8x64xf32> -> vector<8x64xf32>
    %250 = vector.broadcast %245 : vector<1x64xf32> to vector<8x64xf32>
    %251 = arith.addf %249, %250 : vector<8x64xf32>
    %cst_89 = arith.constant 0.000000e+00 : f32
    %252 = vector.broadcast %cst_89 : f32 to vector<8x64xf32>
    %253 = arith.maximumf %251, %252 : vector<8x64xf32>
    %cst_90 = arith.constant dense<0.000000e+00> : vector<8x32xf32>
    %254 = tpu.matmul %253, %247, %cst_90 {dimension_numbers = #tpu.dot_dimension_numbers<[1], [0], [0], [1], [0, 0, 1, 1], [], []>} : vector<8x64xf32>, vector<64x32xf32>, vector<8x32xf32> -> vector<8x32xf32>
    %255 = vector.broadcast %248 : vector<1x32xf32> to vector<8x32xf32>
    %256 = arith.addf %254, %255 : vector<8x32xf32>
    %257 = arith.addf %242, %256 : vector<8x32xf32>
    %cst_91 = arith.constant dense<0.000000e+00> : vector<8xf32>
    %258 = vector.multi_reduction <add>, %257, %cst_91 [1] : vector<8x32xf32> to vector<8xf32>
    %259 = vector.shape_cast %258 : vector<8xf32> to vector<8x1xf32>
    %cst_92 = arith.constant 3.200000e+01 : f32
    %260 = vector.broadcast %cst_92 : f32 to vector<8x1xf32>
    %261 = arith.divf %259, %260 : vector<8x1xf32>
    %262 = vector.broadcast %261 : vector<8x1xf32> to vector<8x32xf32>
    %263 = arith.subf %257, %262 : vector<8x32xf32>
    %264 = arith.mulf %263, %263 : vector<8x32xf32>
    %cst_93 = arith.constant dense<0.000000e+00> : vector<8xf32>
    %265 = vector.multi_reduction <add>, %264, %cst_93 [1] : vector<8x32xf32> to vector<8xf32>
    %266 = vector.shape_cast %265 : vector<8xf32> to vector<8x1xf32>
    %cst_94 = arith.constant 3.200000e+01 : f32
    %267 = vector.broadcast %cst_94 : f32 to vector<8x1xf32>
    %268 = arith.divf %266, %267 : vector<8x1xf32>
    %269 = vector.broadcast %261 : vector<8x1xf32> to vector<8x32xf32>
    %270 = arith.subf %257, %269 : vector<8x32xf32>
    %cst_95 = arith.constant 9.99999974E-6 : f32
    %271 = vector.broadcast %cst_95 : f32 to vector<8x1xf32>
    %272 = arith.addf %268, %271 : vector<8x1xf32>
    %273 = math.rsqrt %272 : vector<8x1xf32>
    %274 = vector.broadcast %273 : vector<8x1xf32> to vector<8x32xf32>
    %275 = arith.mulf %270, %274 : vector<8x32xf32>
    %276 = vector.broadcast %218 : vector<1x32xf32> to vector<8x32xf32>
    %277 = arith.mulf %275, %276 : vector<8x32xf32>
    %278 = vector.broadcast %219 : vector<1x32xf32> to vector<8x32xf32>
    %279 = arith.addf %277, %278 : vector<8x32xf32>
    %c0_96 = arith.constant 0 : index
    %c0_97 = arith.constant 0 : index
    %c0_98 = arith.constant 0 : index
    %280 = vector.load %arg2[%c0_96, %c0_97, %c0_98] : memref<1x8x32xf32, #tpu.memory_space<vmem>>, vector<1x8x32xf32>
    %281 = vector.shape_cast %280 : vector<1x8x32xf32> to vector<8x32xf32>
    %c0_99 = arith.constant 0 : index
    %c0_100 = arith.constant 0 : index
    %282 = vector.load %arg4[%c0_99, %c0_100] : memref<8x32xf32, #tpu.memory_space<vmem>>, vector<8x32xf32>
    %283 = arith.addf %281, %282 : vector<8x32xf32>
    %c0_101 = arith.constant 0 : index
    %c0_102 = arith.constant 0 : index
    %c0_103 = arith.constant 0 : index
    %284 = vector.load %arg17[%c0_101, %c0_102, %c0_103] : memref<2x13x96xf32, #tpu.memory_space<vmem>>, vector<1x13x96xf32>
    %285 = vector.shape_cast %284 : vector<1x13x96xf32> to vector<13x96xf32>
    %c0_104 = arith.constant 0 : index
    %c0_105 = arith.constant 0 : index
    %c0_106 = arith.constant 0 : index
    %286 = vector.load %arg10[%c0_104, %c0_105, %c0_106] : memref<2x32x96xf32, #tpu.memory_space<vmem>>, vector<1x32x96xf32>
    %287 = vector.shape_cast %286 : vector<1x32x96xf32> to vector<32x96xf32>
    %cst_107 = arith.constant dense<0.000000e+00> : vector<8x96xf32>
    %288 = tpu.matmul %283, %287, %cst_107 {dimension_numbers = #tpu.dot_dimension_numbers<[1], [0], [0], [1], [0, 0, 1, 1], [], []>} : vector<8x32xf32>, vector<32x96xf32>, vector<8x96xf32> -> vector<8x96xf32>
    %289 = vector.extract_strided_slice %285 {offsets = [0, 0], sizes = [1, 96], strides = [1, 1]} : vector<13x96xf32> to vector<1x96xf32>
    %290 = vector.broadcast %289 : vector<1x96xf32> to vector<8x96xf32>
    %291 = arith.addf %288, %290 : vector<8x96xf32>
    %292 = vector.extract_strided_slice %291 {offsets = [0, 0], sizes = [8, 32], strides = [1, 1]} : vector<8x96xf32> to vector<8x32xf32>
    %cst_108 = arith.constant 0.353553385 : f32
    %293 = vector.broadcast %cst_108 : f32 to vector<8x32xf32>
    %294 = arith.mulf %292, %293 : vector<8x32xf32>
    %295 = vector.extract_strided_slice %291 {offsets = [0, 32], sizes = [8, 32], strides = [1, 1]} : vector<8x96xf32> to vector<8x32xf32>
    %296 = vector.extract_strided_slice %291 {offsets = [0, 64], sizes = [8, 32], strides = [1, 1]} : vector<8x96xf32> to vector<8x32xf32>
    %c0_109 = arith.constant 0 : index
    %c0_110 = arith.constant 0 : index
    %c0_111 = arith.constant 0 : index
    %297 = vector.load %arg11[%c0_109, %c0_110, %c0_111] : memref<2x32x32xf32, #tpu.memory_space<vmem>>, vector<1x32x32xf32>
    %298 = vector.shape_cast %297 : vector<1x32x32xf32> to vector<32x32xf32>
    %299 = vector.extract_strided_slice %285 {offsets = [1, 0], sizes = [1, 32], strides = [1, 1]} : vector<13x96xf32> to vector<1x32xf32>
    %300 = vector.extract_strided_slice %294 {offsets = [0, 0], sizes = [8, 8], strides = [1, 1]} : vector<8x32xf32> to vector<8x8xf32>
    %301 = vector.extract_strided_slice %295 {offsets = [0, 0], sizes = [8, 8], strides = [1, 1]} : vector<8x32xf32> to vector<8x8xf32>
    %302 = vector.extract_strided_slice %296 {offsets = [0, 0], sizes = [8, 8], strides = [1, 1]} : vector<8x32xf32> to vector<8x8xf32>
    %cst_112 = arith.constant dense<0.000000e+00> : vector<8x8xf32>
    %303 = tpu.matmul %300, %301, %cst_112 {dimension_numbers = #tpu.dot_dimension_numbers<[1], [1], [0], [0], [0, 0, 1, 0], [], []>} : vector<8x8xf32>, vector<8x8xf32>, vector<8x8xf32> -> vector<8x8xf32>
    %cst_113 = arith.constant dense<0xFF800000> : vector<8xf32>
    %304 = vector.multi_reduction <maximumf>, %303, %cst_113 [1] : vector<8x8xf32> to vector<8xf32>
    %305 = vector.shape_cast %304 : vector<8xf32> to vector<8x1xf32>
    %306 = vector.broadcast %305 : vector<8x1xf32> to vector<8x8xf32>
    %307 = arith.subf %303, %306 : vector<8x8xf32>
    %308 = math.exp %307 : vector<8x8xf32>
    %cst_114 = arith.constant dense<0.000000e+00> : vector<8xf32>
    %309 = vector.multi_reduction <add>, %308, %cst_114 [1] : vector<8x8xf32> to vector<8xf32>
    %310 = vector.shape_cast %309 : vector<8xf32> to vector<8x1xf32>
    %311 = vector.broadcast %310 : vector<8x1xf32> to vector<8x8xf32>
    %312 = arith.divf %308, %311 : vector<8x8xf32>
    %cst_115 = arith.constant dense<0.000000e+00> : vector<8x8xf32>
    %313 = tpu.matmul %312, %302, %cst_115 {dimension_numbers = #tpu.dot_dimension_numbers<[1], [0], [0], [1], [0, 0, 1, 1], [], []>} : vector<8x8xf32>, vector<8x8xf32>, vector<8x8xf32> -> vector<8x8xf32>
    %314 = vector.extract_strided_slice %294 {offsets = [0, 8], sizes = [8, 8], strides = [1, 1]} : vector<8x32xf32> to vector<8x8xf32>
    %315 = vector.extract_strided_slice %295 {offsets = [0, 8], sizes = [8, 8], strides = [1, 1]} : vector<8x32xf32> to vector<8x8xf32>
    %316 = vector.extract_strided_slice %296 {offsets = [0, 8], sizes = [8, 8], strides = [1, 1]} : vector<8x32xf32> to vector<8x8xf32>
    %cst_116 = arith.constant dense<0.000000e+00> : vector<8x8xf32>
    %317 = tpu.matmul %314, %315, %cst_116 {dimension_numbers = #tpu.dot_dimension_numbers<[1], [1], [0], [0], [0, 0, 1, 0], [], []>} : vector<8x8xf32>, vector<8x8xf32>, vector<8x8xf32> -> vector<8x8xf32>
    %cst_117 = arith.constant dense<0xFF800000> : vector<8xf32>
    %318 = vector.multi_reduction <maximumf>, %317, %cst_117 [1] : vector<8x8xf32> to vector<8xf32>
    %319 = vector.shape_cast %318 : vector<8xf32> to vector<8x1xf32>
    %320 = vector.broadcast %319 : vector<8x1xf32> to vector<8x8xf32>
    %321 = arith.subf %317, %320 : vector<8x8xf32>
    %322 = math.exp %321 : vector<8x8xf32>
    %cst_118 = arith.constant dense<0.000000e+00> : vector<8xf32>
    %323 = vector.multi_reduction <add>, %322, %cst_118 [1] : vector<8x8xf32> to vector<8xf32>
    %324 = vector.shape_cast %323 : vector<8xf32> to vector<8x1xf32>
    %325 = vector.broadcast %324 : vector<8x1xf32> to vector<8x8xf32>
    %326 = arith.divf %322, %325 : vector<8x8xf32>
    %cst_119 = arith.constant dense<0.000000e+00> : vector<8x8xf32>
    %327 = tpu.matmul %326, %316, %cst_119 {dimension_numbers = #tpu.dot_dimension_numbers<[1], [0], [0], [1], [0, 0, 1, 1], [], []>} : vector<8x8xf32>, vector<8x8xf32>, vector<8x8xf32> -> vector<8x8xf32>
    %328 = vector.extract_strided_slice %294 {offsets = [0, 16], sizes = [8, 8], strides = [1, 1]} : vector<8x32xf32> to vector<8x8xf32>
    %329 = vector.extract_strided_slice %295 {offsets = [0, 16], sizes = [8, 8], strides = [1, 1]} : vector<8x32xf32> to vector<8x8xf32>
    %330 = vector.extract_strided_slice %296 {offsets = [0, 16], sizes = [8, 8], strides = [1, 1]} : vector<8x32xf32> to vector<8x8xf32>
    %cst_120 = arith.constant dense<0.000000e+00> : vector<8x8xf32>
    %331 = tpu.matmul %328, %329, %cst_120 {dimension_numbers = #tpu.dot_dimension_numbers<[1], [1], [0], [0], [0, 0, 1, 0], [], []>} : vector<8x8xf32>, vector<8x8xf32>, vector<8x8xf32> -> vector<8x8xf32>
    %cst_121 = arith.constant dense<0xFF800000> : vector<8xf32>
    %332 = vector.multi_reduction <maximumf>, %331, %cst_121 [1] : vector<8x8xf32> to vector<8xf32>
    %333 = vector.shape_cast %332 : vector<8xf32> to vector<8x1xf32>
    %334 = vector.broadcast %333 : vector<8x1xf32> to vector<8x8xf32>
    %335 = arith.subf %331, %334 : vector<8x8xf32>
    %336 = math.exp %335 : vector<8x8xf32>
    %cst_122 = arith.constant dense<0.000000e+00> : vector<8xf32>
    %337 = vector.multi_reduction <add>, %336, %cst_122 [1] : vector<8x8xf32> to vector<8xf32>
    %338 = vector.shape_cast %337 : vector<8xf32> to vector<8x1xf32>
    %339 = vector.broadcast %338 : vector<8x1xf32> to vector<8x8xf32>
    %340 = arith.divf %336, %339 : vector<8x8xf32>
    %cst_123 = arith.constant dense<0.000000e+00> : vector<8x8xf32>
    %341 = tpu.matmul %340, %330, %cst_123 {dimension_numbers = #tpu.dot_dimension_numbers<[1], [0], [0], [1], [0, 0, 1, 1], [], []>} : vector<8x8xf32>, vector<8x8xf32>, vector<8x8xf32> -> vector<8x8xf32>
    %342 = vector.extract_strided_slice %294 {offsets = [0, 24], sizes = [8, 8], strides = [1, 1]} : vector<8x32xf32> to vector<8x8xf32>
    %343 = vector.extract_strided_slice %295 {offsets = [0, 24], sizes = [8, 8], strides = [1, 1]} : vector<8x32xf32> to vector<8x8xf32>
    %344 = vector.extract_strided_slice %296 {offsets = [0, 24], sizes = [8, 8], strides = [1, 1]} : vector<8x32xf32> to vector<8x8xf32>
    %cst_124 = arith.constant dense<0.000000e+00> : vector<8x8xf32>
    %345 = tpu.matmul %342, %343, %cst_124 {dimension_numbers = #tpu.dot_dimension_numbers<[1], [1], [0], [0], [0, 0, 1, 0], [], []>} : vector<8x8xf32>, vector<8x8xf32>, vector<8x8xf32> -> vector<8x8xf32>
    %cst_125 = arith.constant dense<0xFF800000> : vector<8xf32>
    %346 = vector.multi_reduction <maximumf>, %345, %cst_125 [1] : vector<8x8xf32> to vector<8xf32>
    %347 = vector.shape_cast %346 : vector<8xf32> to vector<8x1xf32>
    %348 = vector.broadcast %347 : vector<8x1xf32> to vector<8x8xf32>
    %349 = arith.subf %345, %348 : vector<8x8xf32>
    %350 = math.exp %349 : vector<8x8xf32>
    %cst_126 = arith.constant dense<0.000000e+00> : vector<8xf32>
    %351 = vector.multi_reduction <add>, %350, %cst_126 [1] : vector<8x8xf32> to vector<8xf32>
    %352 = vector.shape_cast %351 : vector<8xf32> to vector<8x1xf32>
    %353 = vector.broadcast %352 : vector<8x1xf32> to vector<8x8xf32>
    %354 = arith.divf %350, %353 : vector<8x8xf32>
    %cst_127 = arith.constant dense<0.000000e+00> : vector<8x8xf32>
    %355 = tpu.matmul %354, %344, %cst_127 {dimension_numbers = #tpu.dot_dimension_numbers<[1], [0], [0], [1], [0, 0, 1, 1], [], []>} : vector<8x8xf32>, vector<8x8xf32>, vector<8x8xf32> -> vector<8x8xf32>
    %356 = tpu.concatenate %313, %327, %341, %355 in 1 : vector<8x8xf32>, vector<8x8xf32>, vector<8x8xf32>, vector<8x8xf32> -> vector<8x32xf32>
    %cst_128 = arith.constant dense<0.000000e+00> : vector<8x32xf32>
    %357 = tpu.matmul %356, %298, %cst_128 {dimension_numbers = #tpu.dot_dimension_numbers<[1], [0], [0], [1], [0, 0, 1, 1], [], []>} : vector<8x32xf32>, vector<32x32xf32>, vector<8x32xf32> -> vector<8x32xf32>
    %358 = vector.broadcast %299 : vector<1x32xf32> to vector<8x32xf32>
    %359 = arith.addf %357, %358 : vector<8x32xf32>
    %360 = arith.addf %283, %359 : vector<8x32xf32>
    %361 = vector.extract_strided_slice %285 {offsets = [5, 0], sizes = [1, 32], strides = [1, 1]} : vector<13x96xf32> to vector<1x32xf32>
    %362 = vector.extract_strided_slice %285 {offsets = [6, 0], sizes = [1, 32], strides = [1, 1]} : vector<13x96xf32> to vector<1x32xf32>
    %cst_129 = arith.constant dense<0.000000e+00> : vector<8xf32>
    %363 = vector.multi_reduction <add>, %360, %cst_129 [1] : vector<8x32xf32> to vector<8xf32>
    %364 = vector.shape_cast %363 : vector<8xf32> to vector<8x1xf32>
    %cst_130 = arith.constant 3.200000e+01 : f32
    %365 = vector.broadcast %cst_130 : f32 to vector<8x1xf32>
    %366 = arith.divf %364, %365 : vector<8x1xf32>
    %367 = vector.broadcast %366 : vector<8x1xf32> to vector<8x32xf32>
    %368 = arith.subf %360, %367 : vector<8x32xf32>
    %369 = arith.mulf %368, %368 : vector<8x32xf32>
    %cst_131 = arith.constant dense<0.000000e+00> : vector<8xf32>
    %370 = vector.multi_reduction <add>, %369, %cst_131 [1] : vector<8x32xf32> to vector<8xf32>
    %371 = vector.shape_cast %370 : vector<8xf32> to vector<8x1xf32>
    %cst_132 = arith.constant 3.200000e+01 : f32
    %372 = vector.broadcast %cst_132 : f32 to vector<8x1xf32>
    %373 = arith.divf %371, %372 : vector<8x1xf32>
    %374 = vector.broadcast %366 : vector<8x1xf32> to vector<8x32xf32>
    %375 = arith.subf %360, %374 : vector<8x32xf32>
    %cst_133 = arith.constant 9.99999974E-6 : f32
    %376 = vector.broadcast %cst_133 : f32 to vector<8x1xf32>
    %377 = arith.addf %373, %376 : vector<8x1xf32>
    %378 = math.rsqrt %377 : vector<8x1xf32>
    %379 = vector.broadcast %378 : vector<8x1xf32> to vector<8x32xf32>
    %380 = arith.mulf %375, %379 : vector<8x32xf32>
    %381 = vector.broadcast %361 : vector<1x32xf32> to vector<8x32xf32>
    %382 = arith.mulf %380, %381 : vector<8x32xf32>
    %383 = vector.broadcast %362 : vector<1x32xf32> to vector<8x32xf32>
    %384 = arith.addf %382, %383 : vector<8x32xf32>
    %c0_134 = arith.constant 0 : index
    %c0_135 = arith.constant 0 : index
    %c0_136 = arith.constant 0 : index
    %385 = vector.load %arg12[%c0_134, %c0_135, %c0_136] : memref<2x32x32xf32, #tpu.memory_space<vmem>>, vector<1x32x32xf32>
    %386 = vector.shape_cast %385 : vector<1x32x32xf32> to vector<32x32xf32>
    %cst_137 = arith.constant dense<0.000000e+00> : vector<8x32xf32>
    %387 = tpu.matmul %384, %386, %cst_137 {dimension_numbers = #tpu.dot_dimension_numbers<[1], [0], [0], [1], [0, 0, 1, 1], [], []>} : vector<8x32xf32>, vector<32x32xf32>, vector<8x32xf32> -> vector<8x32xf32>
    %388 = vector.extract_strided_slice %285 {offsets = [2, 0], sizes = [1, 32], strides = [1, 1]} : vector<13x96xf32> to vector<1x32xf32>
    %389 = vector.broadcast %388 : vector<1x32xf32> to vector<8x32xf32>
    %390 = arith.addf %387, %389 : vector<8x32xf32>
    %cst_138 = arith.constant 0.353553385 : f32
    %391 = vector.broadcast %cst_138 : f32 to vector<8x32xf32>
    %392 = arith.mulf %390, %391 : vector<8x32xf32>
    %c0_139 = arith.constant 0 : index
    %c0_140 = arith.constant 0 : index
    %c0_141 = arith.constant 0 : index
    %393 = vector.load %arg13[%c0_139, %c0_140, %c0_141] : memref<2x32x64xf32, #tpu.memory_space<vmem>>, vector<1x32x64xf32>
    %394 = vector.shape_cast %393 : vector<1x32x64xf32> to vector<32x64xf32>
    %cst_142 = arith.constant dense<0.000000e+00> : vector<8x64xf32>
    %395 = tpu.matmul %279, %394, %cst_142 {dimension_numbers = #tpu.dot_dimension_numbers<[1], [0], [0], [1], [0, 0, 1, 1], [], []>} : vector<8x32xf32>, vector<32x64xf32>, vector<8x64xf32> -> vector<8x64xf32>
    %396 = vector.extract_strided_slice %285 {offsets = [3, 0], sizes = [1, 64], strides = [1, 1]} : vector<13x96xf32> to vector<1x64xf32>
    %397 = vector.broadcast %396 : vector<1x64xf32> to vector<8x64xf32>
    %398 = arith.addf %395, %397 : vector<8x64xf32>
    %399 = vector.extract_strided_slice %398 {offsets = [0, 0], sizes = [8, 32], strides = [1, 1]} : vector<8x64xf32> to vector<8x32xf32>
    %400 = vector.extract_strided_slice %398 {offsets = [0, 32], sizes = [8, 32], strides = [1, 1]} : vector<8x64xf32> to vector<8x32xf32>
    %c0_143 = arith.constant 0 : index
    %c0_144 = arith.constant 0 : index
    %c0_145 = arith.constant 0 : index
    %401 = vector.load %arg14[%c0_143, %c0_144, %c0_145] : memref<2x32x32xf32, #tpu.memory_space<vmem>>, vector<1x32x32xf32>
    %402 = vector.shape_cast %401 : vector<1x32x32xf32> to vector<32x32xf32>
    %403 = vector.extract_strided_slice %285 {offsets = [4, 0], sizes = [1, 32], strides = [1, 1]} : vector<13x96xf32> to vector<1x32xf32>
    %404 = vector.extract_strided_slice %392 {offsets = [0, 0], sizes = [8, 8], strides = [1, 1]} : vector<8x32xf32> to vector<8x8xf32>
    %405 = vector.extract_strided_slice %399 {offsets = [0, 0], sizes = [8, 8], strides = [1, 1]} : vector<8x32xf32> to vector<8x8xf32>
    %406 = vector.extract_strided_slice %400 {offsets = [0, 0], sizes = [8, 8], strides = [1, 1]} : vector<8x32xf32> to vector<8x8xf32>
    %cst_146 = arith.constant dense<0.000000e+00> : vector<8x8xf32>
    %407 = tpu.matmul %404, %405, %cst_146 {dimension_numbers = #tpu.dot_dimension_numbers<[1], [1], [0], [0], [0, 0, 1, 0], [], []>} : vector<8x8xf32>, vector<8x8xf32>, vector<8x8xf32> -> vector<8x8xf32>
    %cst_147 = arith.constant dense<0xFF800000> : vector<8xf32>
    %408 = vector.multi_reduction <maximumf>, %407, %cst_147 [1] : vector<8x8xf32> to vector<8xf32>
    %409 = vector.shape_cast %408 : vector<8xf32> to vector<8x1xf32>
    %410 = vector.broadcast %409 : vector<8x1xf32> to vector<8x8xf32>
    %411 = arith.subf %407, %410 : vector<8x8xf32>
    %412 = math.exp %411 : vector<8x8xf32>
    %cst_148 = arith.constant dense<0.000000e+00> : vector<8xf32>
    %413 = vector.multi_reduction <add>, %412, %cst_148 [1] : vector<8x8xf32> to vector<8xf32>
    %414 = vector.shape_cast %413 : vector<8xf32> to vector<8x1xf32>
    %415 = vector.broadcast %414 : vector<8x1xf32> to vector<8x8xf32>
    %416 = arith.divf %412, %415 : vector<8x8xf32>
    %cst_149 = arith.constant dense<0.000000e+00> : vector<8x8xf32>
    %417 = tpu.matmul %416, %406, %cst_149 {dimension_numbers = #tpu.dot_dimension_numbers<[1], [0], [0], [1], [0, 0, 1, 1], [], []>} : vector<8x8xf32>, vector<8x8xf32>, vector<8x8xf32> -> vector<8x8xf32>
    %418 = vector.extract_strided_slice %392 {offsets = [0, 8], sizes = [8, 8], strides = [1, 1]} : vector<8x32xf32> to vector<8x8xf32>
    %419 = vector.extract_strided_slice %399 {offsets = [0, 8], sizes = [8, 8], strides = [1, 1]} : vector<8x32xf32> to vector<8x8xf32>
    %420 = vector.extract_strided_slice %400 {offsets = [0, 8], sizes = [8, 8], strides = [1, 1]} : vector<8x32xf32> to vector<8x8xf32>
    %cst_150 = arith.constant dense<0.000000e+00> : vector<8x8xf32>
    %421 = tpu.matmul %418, %419, %cst_150 {dimension_numbers = #tpu.dot_dimension_numbers<[1], [1], [0], [0], [0, 0, 1, 0], [], []>} : vector<8x8xf32>, vector<8x8xf32>, vector<8x8xf32> -> vector<8x8xf32>
    %cst_151 = arith.constant dense<0xFF800000> : vector<8xf32>
    %422 = vector.multi_reduction <maximumf>, %421, %cst_151 [1] : vector<8x8xf32> to vector<8xf32>
    %423 = vector.shape_cast %422 : vector<8xf32> to vector<8x1xf32>
    %424 = vector.broadcast %423 : vector<8x1xf32> to vector<8x8xf32>
    %425 = arith.subf %421, %424 : vector<8x8xf32>
    %426 = math.exp %425 : vector<8x8xf32>
    %cst_152 = arith.constant dense<0.000000e+00> : vector<8xf32>
    %427 = vector.multi_reduction <add>, %426, %cst_152 [1] : vector<8x8xf32> to vector<8xf32>
    %428 = vector.shape_cast %427 : vector<8xf32> to vector<8x1xf32>
    %429 = vector.broadcast %428 : vector<8x1xf32> to vector<8x8xf32>
    %430 = arith.divf %426, %429 : vector<8x8xf32>
    %cst_153 = arith.constant dense<0.000000e+00> : vector<8x8xf32>
    %431 = tpu.matmul %430, %420, %cst_153 {dimension_numbers = #tpu.dot_dimension_numbers<[1], [0], [0], [1], [0, 0, 1, 1], [], []>} : vector<8x8xf32>, vector<8x8xf32>, vector<8x8xf32> -> vector<8x8xf32>
    %432 = vector.extract_strided_slice %392 {offsets = [0, 16], sizes = [8, 8], strides = [1, 1]} : vector<8x32xf32> to vector<8x8xf32>
    %433 = vector.extract_strided_slice %399 {offsets = [0, 16], sizes = [8, 8], strides = [1, 1]} : vector<8x32xf32> to vector<8x8xf32>
    %434 = vector.extract_strided_slice %400 {offsets = [0, 16], sizes = [8, 8], strides = [1, 1]} : vector<8x32xf32> to vector<8x8xf32>
    %cst_154 = arith.constant dense<0.000000e+00> : vector<8x8xf32>
    %435 = tpu.matmul %432, %433, %cst_154 {dimension_numbers = #tpu.dot_dimension_numbers<[1], [1], [0], [0], [0, 0, 1, 0], [], []>} : vector<8x8xf32>, vector<8x8xf32>, vector<8x8xf32> -> vector<8x8xf32>
    %cst_155 = arith.constant dense<0xFF800000> : vector<8xf32>
    %436 = vector.multi_reduction <maximumf>, %435, %cst_155 [1] : vector<8x8xf32> to vector<8xf32>
    %437 = vector.shape_cast %436 : vector<8xf32> to vector<8x1xf32>
    %438 = vector.broadcast %437 : vector<8x1xf32> to vector<8x8xf32>
    %439 = arith.subf %435, %438 : vector<8x8xf32>
    %440 = math.exp %439 : vector<8x8xf32>
    %cst_156 = arith.constant dense<0.000000e+00> : vector<8xf32>
    %441 = vector.multi_reduction <add>, %440, %cst_156 [1] : vector<8x8xf32> to vector<8xf32>
    %442 = vector.shape_cast %441 : vector<8xf32> to vector<8x1xf32>
    %443 = vector.broadcast %442 : vector<8x1xf32> to vector<8x8xf32>
    %444 = arith.divf %440, %443 : vector<8x8xf32>
    %cst_157 = arith.constant dense<0.000000e+00> : vector<8x8xf32>
    %445 = tpu.matmul %444, %434, %cst_157 {dimension_numbers = #tpu.dot_dimension_numbers<[1], [0], [0], [1], [0, 0, 1, 1], [], []>} : vector<8x8xf32>, vector<8x8xf32>, vector<8x8xf32> -> vector<8x8xf32>
    %446 = vector.extract_strided_slice %392 {offsets = [0, 24], sizes = [8, 8], strides = [1, 1]} : vector<8x32xf32> to vector<8x8xf32>
    %447 = vector.extract_strided_slice %399 {offsets = [0, 24], sizes = [8, 8], strides = [1, 1]} : vector<8x32xf32> to vector<8x8xf32>
    %448 = vector.extract_strided_slice %400 {offsets = [0, 24], sizes = [8, 8], strides = [1, 1]} : vector<8x32xf32> to vector<8x8xf32>
    %cst_158 = arith.constant dense<0.000000e+00> : vector<8x8xf32>
    %449 = tpu.matmul %446, %447, %cst_158 {dimension_numbers = #tpu.dot_dimension_numbers<[1], [1], [0], [0], [0, 0, 1, 0], [], []>} : vector<8x8xf32>, vector<8x8xf32>, vector<8x8xf32> -> vector<8x8xf32>
    %cst_159 = arith.constant dense<0xFF800000> : vector<8xf32>
    %450 = vector.multi_reduction <maximumf>, %449, %cst_159 [1] : vector<8x8xf32> to vector<8xf32>
    %451 = vector.shape_cast %450 : vector<8xf32> to vector<8x1xf32>
    %452 = vector.broadcast %451 : vector<8x1xf32> to vector<8x8xf32>
    %453 = arith.subf %449, %452 : vector<8x8xf32>
    %454 = math.exp %453 : vector<8x8xf32>
    %cst_160 = arith.constant dense<0.000000e+00> : vector<8xf32>
    %455 = vector.multi_reduction <add>, %454, %cst_160 [1] : vector<8x8xf32> to vector<8xf32>
    %456 = vector.shape_cast %455 : vector<8xf32> to vector<8x1xf32>
    %457 = vector.broadcast %456 : vector<8x1xf32> to vector<8x8xf32>
    %458 = arith.divf %454, %457 : vector<8x8xf32>
    %cst_161 = arith.constant dense<0.000000e+00> : vector<8x8xf32>
    %459 = tpu.matmul %458, %448, %cst_161 {dimension_numbers = #tpu.dot_dimension_numbers<[1], [0], [0], [1], [0, 0, 1, 1], [], []>} : vector<8x8xf32>, vector<8x8xf32>, vector<8x8xf32> -> vector<8x8xf32>
    %460 = tpu.concatenate %417, %431, %445, %459 in 1 : vector<8x8xf32>, vector<8x8xf32>, vector<8x8xf32>, vector<8x8xf32> -> vector<8x32xf32>
    %cst_162 = arith.constant dense<0.000000e+00> : vector<8x32xf32>
    %461 = tpu.matmul %460, %402, %cst_162 {dimension_numbers = #tpu.dot_dimension_numbers<[1], [0], [0], [1], [0, 0, 1, 1], [], []>} : vector<8x32xf32>, vector<32x32xf32>, vector<8x32xf32> -> vector<8x32xf32>
    %462 = vector.broadcast %403 : vector<1x32xf32> to vector<8x32xf32>
    %463 = arith.addf %461, %462 : vector<8x32xf32>
    %464 = arith.addf %384, %463 : vector<8x32xf32>
    %465 = vector.extract_strided_slice %285 {offsets = [7, 0], sizes = [1, 32], strides = [1, 1]} : vector<13x96xf32> to vector<1x32xf32>
    %466 = vector.extract_strided_slice %285 {offsets = [8, 0], sizes = [1, 32], strides = [1, 1]} : vector<13x96xf32> to vector<1x32xf32>
    %cst_163 = arith.constant dense<0.000000e+00> : vector<8xf32>
    %467 = vector.multi_reduction <add>, %464, %cst_163 [1] : vector<8x32xf32> to vector<8xf32>
    %468 = vector.shape_cast %467 : vector<8xf32> to vector<8x1xf32>
    %cst_164 = arith.constant 3.200000e+01 : f32
    %469 = vector.broadcast %cst_164 : f32 to vector<8x1xf32>
    %470 = arith.divf %468, %469 : vector<8x1xf32>
    %471 = vector.broadcast %470 : vector<8x1xf32> to vector<8x32xf32>
    %472 = arith.subf %464, %471 : vector<8x32xf32>
    %473 = arith.mulf %472, %472 : vector<8x32xf32>
    %cst_165 = arith.constant dense<0.000000e+00> : vector<8xf32>
    %474 = vector.multi_reduction <add>, %473, %cst_165 [1] : vector<8x32xf32> to vector<8xf32>
    %475 = vector.shape_cast %474 : vector<8xf32> to vector<8x1xf32>
    %cst_166 = arith.constant 3.200000e+01 : f32
    %476 = vector.broadcast %cst_166 : f32 to vector<8x1xf32>
    %477 = arith.divf %475, %476 : vector<8x1xf32>
    %478 = vector.broadcast %470 : vector<8x1xf32> to vector<8x32xf32>
    %479 = arith.subf %464, %478 : vector<8x32xf32>
    %cst_167 = arith.constant 9.99999974E-6 : f32
    %480 = vector.broadcast %cst_167 : f32 to vector<8x1xf32>
    %481 = arith.addf %477, %480 : vector<8x1xf32>
    %482 = math.rsqrt %481 : vector<8x1xf32>
    %483 = vector.broadcast %482 : vector<8x1xf32> to vector<8x32xf32>
    %484 = arith.mulf %479, %483 : vector<8x32xf32>
    %485 = vector.broadcast %465 : vector<1x32xf32> to vector<8x32xf32>
    %486 = arith.mulf %484, %485 : vector<8x32xf32>
    %487 = vector.broadcast %466 : vector<1x32xf32> to vector<8x32xf32>
    %488 = arith.addf %486, %487 : vector<8x32xf32>
    %c0_168 = arith.constant 0 : index
    %c0_169 = arith.constant 0 : index
    %c0_170 = arith.constant 0 : index
    %489 = vector.load %arg15[%c0_168, %c0_169, %c0_170] : memref<2x32x64xf32, #tpu.memory_space<vmem>>, vector<1x32x64xf32>
    %490 = vector.shape_cast %489 : vector<1x32x64xf32> to vector<32x64xf32>
    %491 = vector.extract_strided_slice %285 {offsets = [11, 0], sizes = [1, 64], strides = [1, 1]} : vector<13x96xf32> to vector<1x64xf32>
    %c0_171 = arith.constant 0 : index
    %c0_172 = arith.constant 0 : index
    %c0_173 = arith.constant 0 : index
    %492 = vector.load %arg16[%c0_171, %c0_172, %c0_173] : memref<2x64x32xf32, #tpu.memory_space<vmem>>, vector<1x64x32xf32>
    %493 = vector.shape_cast %492 : vector<1x64x32xf32> to vector<64x32xf32>
    %494 = vector.extract_strided_slice %285 {offsets = [12, 0], sizes = [1, 32], strides = [1, 1]} : vector<13x96xf32> to vector<1x32xf32>
    %cst_174 = arith.constant dense<0.000000e+00> : vector<8x64xf32>
    %495 = tpu.matmul %488, %490, %cst_174 {dimension_numbers = #tpu.dot_dimension_numbers<[1], [0], [0], [1], [0, 0, 1, 1], [], []>} : vector<8x32xf32>, vector<32x64xf32>, vector<8x64xf32> -> vector<8x64xf32>
    %496 = vector.broadcast %491 : vector<1x64xf32> to vector<8x64xf32>
    %497 = arith.addf %495, %496 : vector<8x64xf32>
    %cst_175 = arith.constant 0.000000e+00 : f32
    %498 = vector.broadcast %cst_175 : f32 to vector<8x64xf32>
    %499 = arith.maximumf %497, %498 : vector<8x64xf32>
    %cst_176 = arith.constant dense<0.000000e+00> : vector<8x32xf32>
    %500 = tpu.matmul %499, %493, %cst_176 {dimension_numbers = #tpu.dot_dimension_numbers<[1], [0], [0], [1], [0, 0, 1, 1], [], []>} : vector<8x64xf32>, vector<64x32xf32>, vector<8x32xf32> -> vector<8x32xf32>
    %501 = vector.broadcast %494 : vector<1x32xf32> to vector<8x32xf32>
    %502 = arith.addf %500, %501 : vector<8x32xf32>
    %503 = arith.addf %488, %502 : vector<8x32xf32>
    %504 = vector.extract_strided_slice %285 {offsets = [9, 0], sizes = [1, 32], strides = [1, 1]} : vector<13x96xf32> to vector<1x32xf32>
    %505 = vector.extract_strided_slice %285 {offsets = [10, 0], sizes = [1, 32], strides = [1, 1]} : vector<13x96xf32> to vector<1x32xf32>
    %cst_177 = arith.constant dense<0.000000e+00> : vector<8xf32>
    %506 = vector.multi_reduction <add>, %503, %cst_177 [1] : vector<8x32xf32> to vector<8xf32>
    %507 = vector.shape_cast %506 : vector<8xf32> to vector<8x1xf32>
    %cst_178 = arith.constant 3.200000e+01 : f32
    %508 = vector.broadcast %cst_178 : f32 to vector<8x1xf32>
    %509 = arith.divf %507, %508 : vector<8x1xf32>
    %510 = vector.broadcast %509 : vector<8x1xf32> to vector<8x32xf32>
    %511 = arith.subf %503, %510 : vector<8x32xf32>
    %512 = arith.mulf %511, %511 : vector<8x32xf32>
    %cst_179 = arith.constant dense<0.000000e+00> : vector<8xf32>
    %513 = vector.multi_reduction <add>, %512, %cst_179 [1] : vector<8x32xf32> to vector<8xf32>
    %514 = vector.shape_cast %513 : vector<8xf32> to vector<8x1xf32>
    %cst_180 = arith.constant 3.200000e+01 : f32
    %515 = vector.broadcast %cst_180 : f32 to vector<8x1xf32>
    %516 = arith.divf %514, %515 : vector<8x1xf32>
    %517 = vector.broadcast %509 : vector<8x1xf32> to vector<8x32xf32>
    %518 = arith.subf %503, %517 : vector<8x32xf32>
    %cst_181 = arith.constant 9.99999974E-6 : f32
    %519 = vector.broadcast %cst_181 : f32 to vector<8x1xf32>
    %520 = arith.addf %516, %519 : vector<8x1xf32>
    %521 = math.rsqrt %520 : vector<8x1xf32>
    %522 = vector.broadcast %521 : vector<8x1xf32> to vector<8x32xf32>
    %523 = arith.mulf %518, %522 : vector<8x32xf32>
    %524 = vector.broadcast %504 : vector<1x32xf32> to vector<8x32xf32>
    %525 = arith.mulf %523, %524 : vector<8x32xf32>
    %526 = vector.broadcast %505 : vector<1x32xf32> to vector<8x32xf32>
    %527 = arith.addf %525, %526 : vector<8x32xf32>
    %c1_182 = arith.constant 1 : index
    %c0_183 = arith.constant 0 : index
    %c0_184 = arith.constant 0 : index
    %528 = vector.load %arg17[%c1_182, %c0_183, %c0_184] : memref<2x13x96xf32, #tpu.memory_space<vmem>>, vector<1x13x96xf32>
    %529 = vector.shape_cast %528 : vector<1x13x96xf32> to vector<13x96xf32>
    %c1_185 = arith.constant 1 : index
    %c0_186 = arith.constant 0 : index
    %c0_187 = arith.constant 0 : index
    %530 = vector.load %arg10[%c1_185, %c0_186, %c0_187] : memref<2x32x96xf32, #tpu.memory_space<vmem>>, vector<1x32x96xf32>
    %531 = vector.shape_cast %530 : vector<1x32x96xf32> to vector<32x96xf32>
    %cst_188 = arith.constant dense<0.000000e+00> : vector<8x96xf32>
    %532 = tpu.matmul %527, %531, %cst_188 {dimension_numbers = #tpu.dot_dimension_numbers<[1], [0], [0], [1], [0, 0, 1, 1], [], []>} : vector<8x32xf32>, vector<32x96xf32>, vector<8x96xf32> -> vector<8x96xf32>
    %533 = vector.extract_strided_slice %529 {offsets = [0, 0], sizes = [1, 96], strides = [1, 1]} : vector<13x96xf32> to vector<1x96xf32>
    %534 = vector.broadcast %533 : vector<1x96xf32> to vector<8x96xf32>
    %535 = arith.addf %532, %534 : vector<8x96xf32>
    %536 = vector.extract_strided_slice %535 {offsets = [0, 0], sizes = [8, 32], strides = [1, 1]} : vector<8x96xf32> to vector<8x32xf32>
    %cst_189 = arith.constant 0.353553385 : f32
    %537 = vector.broadcast %cst_189 : f32 to vector<8x32xf32>
    %538 = arith.mulf %536, %537 : vector<8x32xf32>
    %539 = vector.extract_strided_slice %535 {offsets = [0, 32], sizes = [8, 32], strides = [1, 1]} : vector<8x96xf32> to vector<8x32xf32>
    %540 = vector.extract_strided_slice %535 {offsets = [0, 64], sizes = [8, 32], strides = [1, 1]} : vector<8x96xf32> to vector<8x32xf32>
    %c1_190 = arith.constant 1 : index
    %c0_191 = arith.constant 0 : index
    %c0_192 = arith.constant 0 : index
    %541 = vector.load %arg11[%c1_190, %c0_191, %c0_192] : memref<2x32x32xf32, #tpu.memory_space<vmem>>, vector<1x32x32xf32>
    %542 = vector.shape_cast %541 : vector<1x32x32xf32> to vector<32x32xf32>
    %543 = vector.extract_strided_slice %529 {offsets = [1, 0], sizes = [1, 32], strides = [1, 1]} : vector<13x96xf32> to vector<1x32xf32>
    %544 = vector.extract_strided_slice %538 {offsets = [0, 0], sizes = [8, 8], strides = [1, 1]} : vector<8x32xf32> to vector<8x8xf32>
    %545 = vector.extract_strided_slice %539 {offsets = [0, 0], sizes = [8, 8], strides = [1, 1]} : vector<8x32xf32> to vector<8x8xf32>
    %546 = vector.extract_strided_slice %540 {offsets = [0, 0], sizes = [8, 8], strides = [1, 1]} : vector<8x32xf32> to vector<8x8xf32>
    %cst_193 = arith.constant dense<0.000000e+00> : vector<8x8xf32>
    %547 = tpu.matmul %544, %545, %cst_193 {dimension_numbers = #tpu.dot_dimension_numbers<[1], [1], [0], [0], [0, 0, 1, 0], [], []>} : vector<8x8xf32>, vector<8x8xf32>, vector<8x8xf32> -> vector<8x8xf32>
    %cst_194 = arith.constant dense<0xFF800000> : vector<8xf32>
    %548 = vector.multi_reduction <maximumf>, %547, %cst_194 [1] : vector<8x8xf32> to vector<8xf32>
    %549 = vector.shape_cast %548 : vector<8xf32> to vector<8x1xf32>
    %550 = vector.broadcast %549 : vector<8x1xf32> to vector<8x8xf32>
    %551 = arith.subf %547, %550 : vector<8x8xf32>
    %552 = math.exp %551 : vector<8x8xf32>
    %cst_195 = arith.constant dense<0.000000e+00> : vector<8xf32>
    %553 = vector.multi_reduction <add>, %552, %cst_195 [1] : vector<8x8xf32> to vector<8xf32>
    %554 = vector.shape_cast %553 : vector<8xf32> to vector<8x1xf32>
    %555 = vector.broadcast %554 : vector<8x1xf32> to vector<8x8xf32>
    %556 = arith.divf %552, %555 : vector<8x8xf32>
    %cst_196 = arith.constant dense<0.000000e+00> : vector<8x8xf32>
    %557 = tpu.matmul %556, %546, %cst_196 {dimension_numbers = #tpu.dot_dimension_numbers<[1], [0], [0], [1], [0, 0, 1, 1], [], []>} : vector<8x8xf32>, vector<8x8xf32>, vector<8x8xf32> -> vector<8x8xf32>
    %558 = vector.extract_strided_slice %538 {offsets = [0, 8], sizes = [8, 8], strides = [1, 1]} : vector<8x32xf32> to vector<8x8xf32>
    %559 = vector.extract_strided_slice %539 {offsets = [0, 8], sizes = [8, 8], strides = [1, 1]} : vector<8x32xf32> to vector<8x8xf32>
    %560 = vector.extract_strided_slice %540 {offsets = [0, 8], sizes = [8, 8], strides = [1, 1]} : vector<8x32xf32> to vector<8x8xf32>
    %cst_197 = arith.constant dense<0.000000e+00> : vector<8x8xf32>
    %561 = tpu.matmul %558, %559, %cst_197 {dimension_numbers = #tpu.dot_dimension_numbers<[1], [1], [0], [0], [0, 0, 1, 0], [], []>} : vector<8x8xf32>, vector<8x8xf32>, vector<8x8xf32> -> vector<8x8xf32>
    %cst_198 = arith.constant dense<0xFF800000> : vector<8xf32>
    %562 = vector.multi_reduction <maximumf>, %561, %cst_198 [1] : vector<8x8xf32> to vector<8xf32>
    %563 = vector.shape_cast %562 : vector<8xf32> to vector<8x1xf32>
    %564 = vector.broadcast %563 : vector<8x1xf32> to vector<8x8xf32>
    %565 = arith.subf %561, %564 : vector<8x8xf32>
    %566 = math.exp %565 : vector<8x8xf32>
    %cst_199 = arith.constant dense<0.000000e+00> : vector<8xf32>
    %567 = vector.multi_reduction <add>, %566, %cst_199 [1] : vector<8x8xf32> to vector<8xf32>
    %568 = vector.shape_cast %567 : vector<8xf32> to vector<8x1xf32>
    %569 = vector.broadcast %568 : vector<8x1xf32> to vector<8x8xf32>
    %570 = arith.divf %566, %569 : vector<8x8xf32>
    %cst_200 = arith.constant dense<0.000000e+00> : vector<8x8xf32>
    %571 = tpu.matmul %570, %560, %cst_200 {dimension_numbers = #tpu.dot_dimension_numbers<[1], [0], [0], [1], [0, 0, 1, 1], [], []>} : vector<8x8xf32>, vector<8x8xf32>, vector<8x8xf32> -> vector<8x8xf32>
    %572 = vector.extract_strided_slice %538 {offsets = [0, 16], sizes = [8, 8], strides = [1, 1]} : vector<8x32xf32> to vector<8x8xf32>
    %573 = vector.extract_strided_slice %539 {offsets = [0, 16], sizes = [8, 8], strides = [1, 1]} : vector<8x32xf32> to vector<8x8xf32>
    %574 = vector.extract_strided_slice %540 {offsets = [0, 16], sizes = [8, 8], strides = [1, 1]} : vector<8x32xf32> to vector<8x8xf32>
    %cst_201 = arith.constant dense<0.000000e+00> : vector<8x8xf32>
    %575 = tpu.matmul %572, %573, %cst_201 {dimension_numbers = #tpu.dot_dimension_numbers<[1], [1], [0], [0], [0, 0, 1, 0], [], []>} : vector<8x8xf32>, vector<8x8xf32>, vector<8x8xf32> -> vector<8x8xf32>
    %cst_202 = arith.constant dense<0xFF800000> : vector<8xf32>
    %576 = vector.multi_reduction <maximumf>, %575, %cst_202 [1] : vector<8x8xf32> to vector<8xf32>
    %577 = vector.shape_cast %576 : vector<8xf32> to vector<8x1xf32>
    %578 = vector.broadcast %577 : vector<8x1xf32> to vector<8x8xf32>
    %579 = arith.subf %575, %578 : vector<8x8xf32>
    %580 = math.exp %579 : vector<8x8xf32>
    %cst_203 = arith.constant dense<0.000000e+00> : vector<8xf32>
    %581 = vector.multi_reduction <add>, %580, %cst_203 [1] : vector<8x8xf32> to vector<8xf32>
    %582 = vector.shape_cast %581 : vector<8xf32> to vector<8x1xf32>
    %583 = vector.broadcast %582 : vector<8x1xf32> to vector<8x8xf32>
    %584 = arith.divf %580, %583 : vector<8x8xf32>
    %cst_204 = arith.constant dense<0.000000e+00> : vector<8x8xf32>
    %585 = tpu.matmul %584, %574, %cst_204 {dimension_numbers = #tpu.dot_dimension_numbers<[1], [0], [0], [1], [0, 0, 1, 1], [], []>} : vector<8x8xf32>, vector<8x8xf32>, vector<8x8xf32> -> vector<8x8xf32>
    %586 = vector.extract_strided_slice %538 {offsets = [0, 24], sizes = [8, 8], strides = [1, 1]} : vector<8x32xf32> to vector<8x8xf32>
    %587 = vector.extract_strided_slice %539 {offsets = [0, 24], sizes = [8, 8], strides = [1, 1]} : vector<8x32xf32> to vector<8x8xf32>
    %588 = vector.extract_strided_slice %540 {offsets = [0, 24], sizes = [8, 8], strides = [1, 1]} : vector<8x32xf32> to vector<8x8xf32>
    %cst_205 = arith.constant dense<0.000000e+00> : vector<8x8xf32>
    %589 = tpu.matmul %586, %587, %cst_205 {dimension_numbers = #tpu.dot_dimension_numbers<[1], [1], [0], [0], [0, 0, 1, 0], [], []>} : vector<8x8xf32>, vector<8x8xf32>, vector<8x8xf32> -> vector<8x8xf32>
    %cst_206 = arith.constant dense<0xFF800000> : vector<8xf32>
    %590 = vector.multi_reduction <maximumf>, %589, %cst_206 [1] : vector<8x8xf32> to vector<8xf32>
    %591 = vector.shape_cast %590 : vector<8xf32> to vector<8x1xf32>
    %592 = vector.broadcast %591 : vector<8x1xf32> to vector<8x8xf32>
    %593 = arith.subf %589, %592 : vector<8x8xf32>
    %594 = math.exp %593 : vector<8x8xf32>
    %cst_207 = arith.constant dense<0.000000e+00> : vector<8xf32>
    %595 = vector.multi_reduction <add>, %594, %cst_207 [1] : vector<8x8xf32> to vector<8xf32>
    %596 = vector.shape_cast %595 : vector<8xf32> to vector<8x1xf32>
    %597 = vector.broadcast %596 : vector<8x1xf32> to vector<8x8xf32>
    %598 = arith.divf %594, %597 : vector<8x8xf32>
    %cst_208 = arith.constant dense<0.000000e+00> : vector<8x8xf32>
    %599 = tpu.matmul %598, %588, %cst_208 {dimension_numbers = #tpu.dot_dimension_numbers<[1], [0], [0], [1], [0, 0, 1, 1], [], []>} : vector<8x8xf32>, vector<8x8xf32>, vector<8x8xf32> -> vector<8x8xf32>
    %600 = tpu.concatenate %557, %571, %585, %599 in 1 : vector<8x8xf32>, vector<8x8xf32>, vector<8x8xf32>, vector<8x8xf32> -> vector<8x32xf32>
    %cst_209 = arith.constant dense<0.000000e+00> : vector<8x32xf32>
    %601 = tpu.matmul %600, %542, %cst_209 {dimension_numbers = #tpu.dot_dimension_numbers<[1], [0], [0], [1], [0, 0, 1, 1], [], []>} : vector<8x32xf32>, vector<32x32xf32>, vector<8x32xf32> -> vector<8x32xf32>
    %602 = vector.broadcast %543 : vector<1x32xf32> to vector<8x32xf32>
    %603 = arith.addf %601, %602 : vector<8x32xf32>
    %604 = arith.addf %527, %603 : vector<8x32xf32>
    %605 = vector.extract_strided_slice %529 {offsets = [5, 0], sizes = [1, 32], strides = [1, 1]} : vector<13x96xf32> to vector<1x32xf32>
    %606 = vector.extract_strided_slice %529 {offsets = [6, 0], sizes = [1, 32], strides = [1, 1]} : vector<13x96xf32> to vector<1x32xf32>
    %cst_210 = arith.constant dense<0.000000e+00> : vector<8xf32>
    %607 = vector.multi_reduction <add>, %604, %cst_210 [1] : vector<8x32xf32> to vector<8xf32>
    %608 = vector.shape_cast %607 : vector<8xf32> to vector<8x1xf32>
    %cst_211 = arith.constant 3.200000e+01 : f32
    %609 = vector.broadcast %cst_211 : f32 to vector<8x1xf32>
    %610 = arith.divf %608, %609 : vector<8x1xf32>
    %611 = vector.broadcast %610 : vector<8x1xf32> to vector<8x32xf32>
    %612 = arith.subf %604, %611 : vector<8x32xf32>
    %613 = arith.mulf %612, %612 : vector<8x32xf32>
    %cst_212 = arith.constant dense<0.000000e+00> : vector<8xf32>
    %614 = vector.multi_reduction <add>, %613, %cst_212 [1] : vector<8x32xf32> to vector<8xf32>
    %615 = vector.shape_cast %614 : vector<8xf32> to vector<8x1xf32>
    %cst_213 = arith.constant 3.200000e+01 : f32
    %616 = vector.broadcast %cst_213 : f32 to vector<8x1xf32>
    %617 = arith.divf %615, %616 : vector<8x1xf32>
    %618 = vector.broadcast %610 : vector<8x1xf32> to vector<8x32xf32>
    %619 = arith.subf %604, %618 : vector<8x32xf32>
    %cst_214 = arith.constant 9.99999974E-6 : f32
    %620 = vector.broadcast %cst_214 : f32 to vector<8x1xf32>
    %621 = arith.addf %617, %620 : vector<8x1xf32>
    %622 = math.rsqrt %621 : vector<8x1xf32>
    %623 = vector.broadcast %622 : vector<8x1xf32> to vector<8x32xf32>
    %624 = arith.mulf %619, %623 : vector<8x32xf32>
    %625 = vector.broadcast %605 : vector<1x32xf32> to vector<8x32xf32>
    %626 = arith.mulf %624, %625 : vector<8x32xf32>
    %627 = vector.broadcast %606 : vector<1x32xf32> to vector<8x32xf32>
    %628 = arith.addf %626, %627 : vector<8x32xf32>
    %c1_215 = arith.constant 1 : index
    %c0_216 = arith.constant 0 : index
    %c0_217 = arith.constant 0 : index
    %629 = vector.load %arg12[%c1_215, %c0_216, %c0_217] : memref<2x32x32xf32, #tpu.memory_space<vmem>>, vector<1x32x32xf32>
    %630 = vector.shape_cast %629 : vector<1x32x32xf32> to vector<32x32xf32>
    %cst_218 = arith.constant dense<0.000000e+00> : vector<8x32xf32>
    %631 = tpu.matmul %628, %630, %cst_218 {dimension_numbers = #tpu.dot_dimension_numbers<[1], [0], [0], [1], [0, 0, 1, 1], [], []>} : vector<8x32xf32>, vector<32x32xf32>, vector<8x32xf32> -> vector<8x32xf32>
    %632 = vector.extract_strided_slice %529 {offsets = [2, 0], sizes = [1, 32], strides = [1, 1]} : vector<13x96xf32> to vector<1x32xf32>
    %633 = vector.broadcast %632 : vector<1x32xf32> to vector<8x32xf32>
    %634 = arith.addf %631, %633 : vector<8x32xf32>
    %cst_219 = arith.constant 0.353553385 : f32
    %635 = vector.broadcast %cst_219 : f32 to vector<8x32xf32>
    %636 = arith.mulf %634, %635 : vector<8x32xf32>
    %c1_220 = arith.constant 1 : index
    %c0_221 = arith.constant 0 : index
    %c0_222 = arith.constant 0 : index
    %637 = vector.load %arg13[%c1_220, %c0_221, %c0_222] : memref<2x32x64xf32, #tpu.memory_space<vmem>>, vector<1x32x64xf32>
    %638 = vector.shape_cast %637 : vector<1x32x64xf32> to vector<32x64xf32>
    %cst_223 = arith.constant dense<0.000000e+00> : vector<8x64xf32>
    %639 = tpu.matmul %279, %638, %cst_223 {dimension_numbers = #tpu.dot_dimension_numbers<[1], [0], [0], [1], [0, 0, 1, 1], [], []>} : vector<8x32xf32>, vector<32x64xf32>, vector<8x64xf32> -> vector<8x64xf32>
    %640 = vector.extract_strided_slice %529 {offsets = [3, 0], sizes = [1, 64], strides = [1, 1]} : vector<13x96xf32> to vector<1x64xf32>
    %641 = vector.broadcast %640 : vector<1x64xf32> to vector<8x64xf32>
    %642 = arith.addf %639, %641 : vector<8x64xf32>
    %643 = vector.extract_strided_slice %642 {offsets = [0, 0], sizes = [8, 32], strides = [1, 1]} : vector<8x64xf32> to vector<8x32xf32>
    %644 = vector.extract_strided_slice %642 {offsets = [0, 32], sizes = [8, 32], strides = [1, 1]} : vector<8x64xf32> to vector<8x32xf32>
    %c1_224 = arith.constant 1 : index
    %c0_225 = arith.constant 0 : index
    %c0_226 = arith.constant 0 : index
    %645 = vector.load %arg14[%c1_224, %c0_225, %c0_226] : memref<2x32x32xf32, #tpu.memory_space<vmem>>, vector<1x32x32xf32>
    %646 = vector.shape_cast %645 : vector<1x32x32xf32> to vector<32x32xf32>
    %647 = vector.extract_strided_slice %529 {offsets = [4, 0], sizes = [1, 32], strides = [1, 1]} : vector<13x96xf32> to vector<1x32xf32>
    %648 = vector.extract_strided_slice %636 {offsets = [0, 0], sizes = [8, 8], strides = [1, 1]} : vector<8x32xf32> to vector<8x8xf32>
    %649 = vector.extract_strided_slice %643 {offsets = [0, 0], sizes = [8, 8], strides = [1, 1]} : vector<8x32xf32> to vector<8x8xf32>
    %650 = vector.extract_strided_slice %644 {offsets = [0, 0], sizes = [8, 8], strides = [1, 1]} : vector<8x32xf32> to vector<8x8xf32>
    %cst_227 = arith.constant dense<0.000000e+00> : vector<8x8xf32>
    %651 = tpu.matmul %648, %649, %cst_227 {dimension_numbers = #tpu.dot_dimension_numbers<[1], [1], [0], [0], [0, 0, 1, 0], [], []>} : vector<8x8xf32>, vector<8x8xf32>, vector<8x8xf32> -> vector<8x8xf32>
    %cst_228 = arith.constant dense<0xFF800000> : vector<8xf32>
    %652 = vector.multi_reduction <maximumf>, %651, %cst_228 [1] : vector<8x8xf32> to vector<8xf32>
    %653 = vector.shape_cast %652 : vector<8xf32> to vector<8x1xf32>
    %654 = vector.broadcast %653 : vector<8x1xf32> to vector<8x8xf32>
    %655 = arith.subf %651, %654 : vector<8x8xf32>
    %656 = math.exp %655 : vector<8x8xf32>
    %cst_229 = arith.constant dense<0.000000e+00> : vector<8xf32>
    %657 = vector.multi_reduction <add>, %656, %cst_229 [1] : vector<8x8xf32> to vector<8xf32>
    %658 = vector.shape_cast %657 : vector<8xf32> to vector<8x1xf32>
    %659 = vector.broadcast %658 : vector<8x1xf32> to vector<8x8xf32>
    %660 = arith.divf %656, %659 : vector<8x8xf32>
    %cst_230 = arith.constant dense<0.000000e+00> : vector<8x8xf32>
    %661 = tpu.matmul %660, %650, %cst_230 {dimension_numbers = #tpu.dot_dimension_numbers<[1], [0], [0], [1], [0, 0, 1, 1], [], []>} : vector<8x8xf32>, vector<8x8xf32>, vector<8x8xf32> -> vector<8x8xf32>
    %662 = vector.extract_strided_slice %636 {offsets = [0, 8], sizes = [8, 8], strides = [1, 1]} : vector<8x32xf32> to vector<8x8xf32>
    %663 = vector.extract_strided_slice %643 {offsets = [0, 8], sizes = [8, 8], strides = [1, 1]} : vector<8x32xf32> to vector<8x8xf32>
    %664 = vector.extract_strided_slice %644 {offsets = [0, 8], sizes = [8, 8], strides = [1, 1]} : vector<8x32xf32> to vector<8x8xf32>
    %cst_231 = arith.constant dense<0.000000e+00> : vector<8x8xf32>
    %665 = tpu.matmul %662, %663, %cst_231 {dimension_numbers = #tpu.dot_dimension_numbers<[1], [1], [0], [0], [0, 0, 1, 0], [], []>} : vector<8x8xf32>, vector<8x8xf32>, vector<8x8xf32> -> vector<8x8xf32>
    %cst_232 = arith.constant dense<0xFF800000> : vector<8xf32>
    %666 = vector.multi_reduction <maximumf>, %665, %cst_232 [1] : vector<8x8xf32> to vector<8xf32>
    %667 = vector.shape_cast %666 : vector<8xf32> to vector<8x1xf32>
    %668 = vector.broadcast %667 : vector<8x1xf32> to vector<8x8xf32>
    %669 = arith.subf %665, %668 : vector<8x8xf32>
    %670 = math.exp %669 : vector<8x8xf32>
    %cst_233 = arith.constant dense<0.000000e+00> : vector<8xf32>
    %671 = vector.multi_reduction <add>, %670, %cst_233 [1] : vector<8x8xf32> to vector<8xf32>
    %672 = vector.shape_cast %671 : vector<8xf32> to vector<8x1xf32>
    %673 = vector.broadcast %672 : vector<8x1xf32> to vector<8x8xf32>
    %674 = arith.divf %670, %673 : vector<8x8xf32>
    %cst_234 = arith.constant dense<0.000000e+00> : vector<8x8xf32>
    %675 = tpu.matmul %674, %664, %cst_234 {dimension_numbers = #tpu.dot_dimension_numbers<[1], [0], [0], [1], [0, 0, 1, 1], [], []>} : vector<8x8xf32>, vector<8x8xf32>, vector<8x8xf32> -> vector<8x8xf32>
    %676 = vector.extract_strided_slice %636 {offsets = [0, 16], sizes = [8, 8], strides = [1, 1]} : vector<8x32xf32> to vector<8x8xf32>
    %677 = vector.extract_strided_slice %643 {offsets = [0, 16], sizes = [8, 8], strides = [1, 1]} : vector<8x32xf32> to vector<8x8xf32>
    %678 = vector.extract_strided_slice %644 {offsets = [0, 16], sizes = [8, 8], strides = [1, 1]} : vector<8x32xf32> to vector<8x8xf32>
    %cst_235 = arith.constant dense<0.000000e+00> : vector<8x8xf32>
    %679 = tpu.matmul %676, %677, %cst_235 {dimension_numbers = #tpu.dot_dimension_numbers<[1], [1], [0], [0], [0, 0, 1, 0], [], []>} : vector<8x8xf32>, vector<8x8xf32>, vector<8x8xf32> -> vector<8x8xf32>
    %cst_236 = arith.constant dense<0xFF800000> : vector<8xf32>
    %680 = vector.multi_reduction <maximumf>, %679, %cst_236 [1] : vector<8x8xf32> to vector<8xf32>
    %681 = vector.shape_cast %680 : vector<8xf32> to vector<8x1xf32>
    %682 = vector.broadcast %681 : vector<8x1xf32> to vector<8x8xf32>
    %683 = arith.subf %679, %682 : vector<8x8xf32>
    %684 = math.exp %683 : vector<8x8xf32>
    %cst_237 = arith.constant dense<0.000000e+00> : vector<8xf32>
    %685 = vector.multi_reduction <add>, %684, %cst_237 [1] : vector<8x8xf32> to vector<8xf32>
    %686 = vector.shape_cast %685 : vector<8xf32> to vector<8x1xf32>
    %687 = vector.broadcast %686 : vector<8x1xf32> to vector<8x8xf32>
    %688 = arith.divf %684, %687 : vector<8x8xf32>
    %cst_238 = arith.constant dense<0.000000e+00> : vector<8x8xf32>
    %689 = tpu.matmul %688, %678, %cst_238 {dimension_numbers = #tpu.dot_dimension_numbers<[1], [0], [0], [1], [0, 0, 1, 1], [], []>} : vector<8x8xf32>, vector<8x8xf32>, vector<8x8xf32> -> vector<8x8xf32>
    %690 = vector.extract_strided_slice %636 {offsets = [0, 24], sizes = [8, 8], strides = [1, 1]} : vector<8x32xf32> to vector<8x8xf32>
    %691 = vector.extract_strided_slice %643 {offsets = [0, 24], sizes = [8, 8], strides = [1, 1]} : vector<8x32xf32> to vector<8x8xf32>
    %692 = vector.extract_strided_slice %644 {offsets = [0, 24], sizes = [8, 8], strides = [1, 1]} : vector<8x32xf32> to vector<8x8xf32>
    %cst_239 = arith.constant dense<0.000000e+00> : vector<8x8xf32>
    %693 = tpu.matmul %690, %691, %cst_239 {dimension_numbers = #tpu.dot_dimension_numbers<[1], [1], [0], [0], [0, 0, 1, 0], [], []>} : vector<8x8xf32>, vector<8x8xf32>, vector<8x8xf32> -> vector<8x8xf32>
    %cst_240 = arith.constant dense<0xFF800000> : vector<8xf32>
    %694 = vector.multi_reduction <maximumf>, %693, %cst_240 [1] : vector<8x8xf32> to vector<8xf32>
    %695 = vector.shape_cast %694 : vector<8xf32> to vector<8x1xf32>
    %696 = vector.broadcast %695 : vector<8x1xf32> to vector<8x8xf32>
    %697 = arith.subf %693, %696 : vector<8x8xf32>
    %698 = math.exp %697 : vector<8x8xf32>
    %cst_241 = arith.constant dense<0.000000e+00> : vector<8xf32>
    %699 = vector.multi_reduction <add>, %698, %cst_241 [1] : vector<8x8xf32> to vector<8xf32>
    %700 = vector.shape_cast %699 : vector<8xf32> to vector<8x1xf32>
    %701 = vector.broadcast %700 : vector<8x1xf32> to vector<8x8xf32>
    %702 = arith.divf %698, %701 : vector<8x8xf32>
    %cst_242 = arith.constant dense<0.000000e+00> : vector<8x8xf32>
    %703 = tpu.matmul %702, %692, %cst_242 {dimension_numbers = #tpu.dot_dimension_numbers<[1], [0], [0], [1], [0, 0, 1, 1], [], []>} : vector<8x8xf32>, vector<8x8xf32>, vector<8x8xf32> -> vector<8x8xf32>
    %704 = tpu.concatenate %661, %675, %689, %703 in 1 : vector<8x8xf32>, vector<8x8xf32>, vector<8x8xf32>, vector<8x8xf32> -> vector<8x32xf32>
    %cst_243 = arith.constant dense<0.000000e+00> : vector<8x32xf32>
    %705 = tpu.matmul %704, %646, %cst_243 {dimension_numbers = #tpu.dot_dimension_numbers<[1], [0], [0], [1], [0, 0, 1, 1], [], []>} : vector<8x32xf32>, vector<32x32xf32>, vector<8x32xf32> -> vector<8x32xf32>
    %706 = vector.broadcast %647 : vector<1x32xf32> to vector<8x32xf32>
    %707 = arith.addf %705, %706 : vector<8x32xf32>
    %708 = arith.addf %628, %707 : vector<8x32xf32>
    %709 = vector.extract_strided_slice %529 {offsets = [7, 0], sizes = [1, 32], strides = [1, 1]} : vector<13x96xf32> to vector<1x32xf32>
    %710 = vector.extract_strided_slice %529 {offsets = [8, 0], sizes = [1, 32], strides = [1, 1]} : vector<13x96xf32> to vector<1x32xf32>
    %cst_244 = arith.constant dense<0.000000e+00> : vector<8xf32>
    %711 = vector.multi_reduction <add>, %708, %cst_244 [1] : vector<8x32xf32> to vector<8xf32>
    %712 = vector.shape_cast %711 : vector<8xf32> to vector<8x1xf32>
    %cst_245 = arith.constant 3.200000e+01 : f32
    %713 = vector.broadcast %cst_245 : f32 to vector<8x1xf32>
    %714 = arith.divf %712, %713 : vector<8x1xf32>
    %715 = vector.broadcast %714 : vector<8x1xf32> to vector<8x32xf32>
    %716 = arith.subf %708, %715 : vector<8x32xf32>
    %717 = arith.mulf %716, %716 : vector<8x32xf32>
    %cst_246 = arith.constant dense<0.000000e+00> : vector<8xf32>
    %718 = vector.multi_reduction <add>, %717, %cst_246 [1] : vector<8x32xf32> to vector<8xf32>
    %719 = vector.shape_cast %718 : vector<8xf32> to vector<8x1xf32>
    %cst_247 = arith.constant 3.200000e+01 : f32
    %720 = vector.broadcast %cst_247 : f32 to vector<8x1xf32>
    %721 = arith.divf %719, %720 : vector<8x1xf32>
    %722 = vector.broadcast %714 : vector<8x1xf32> to vector<8x32xf32>
    %723 = arith.subf %708, %722 : vector<8x32xf32>
    %cst_248 = arith.constant 9.99999974E-6 : f32
    %724 = vector.broadcast %cst_248 : f32 to vector<8x1xf32>
    %725 = arith.addf %721, %724 : vector<8x1xf32>
    %726 = math.rsqrt %725 : vector<8x1xf32>
    %727 = vector.broadcast %726 : vector<8x1xf32> to vector<8x32xf32>
    %728 = arith.mulf %723, %727 : vector<8x32xf32>
    %729 = vector.broadcast %709 : vector<1x32xf32> to vector<8x32xf32>
    %730 = arith.mulf %728, %729 : vector<8x32xf32>
    %731 = vector.broadcast %710 : vector<1x32xf32> to vector<8x32xf32>
    %732 = arith.addf %730, %731 : vector<8x32xf32>
    %c1_249 = arith.constant 1 : index
    %c0_250 = arith.constant 0 : index
    %c0_251 = arith.constant 0 : index
    %733 = vector.load %arg15[%c1_249, %c0_250, %c0_251] : memref<2x32x64xf32, #tpu.memory_space<vmem>>, vector<1x32x64xf32>
    %734 = vector.shape_cast %733 : vector<1x32x64xf32> to vector<32x64xf32>
    %735 = vector.extract_strided_slice %529 {offsets = [11, 0], sizes = [1, 64], strides = [1, 1]} : vector<13x96xf32> to vector<1x64xf32>
    %c1_252 = arith.constant 1 : index
    %c0_253 = arith.constant 0 : index
    %c0_254 = arith.constant 0 : index
    %736 = vector.load %arg16[%c1_252, %c0_253, %c0_254] : memref<2x64x32xf32, #tpu.memory_space<vmem>>, vector<1x64x32xf32>
    %737 = vector.shape_cast %736 : vector<1x64x32xf32> to vector<64x32xf32>
    %738 = vector.extract_strided_slice %529 {offsets = [12, 0], sizes = [1, 32], strides = [1, 1]} : vector<13x96xf32> to vector<1x32xf32>
    %cst_255 = arith.constant dense<0.000000e+00> : vector<8x64xf32>
    %739 = tpu.matmul %732, %734, %cst_255 {dimension_numbers = #tpu.dot_dimension_numbers<[1], [0], [0], [1], [0, 0, 1, 1], [], []>} : vector<8x32xf32>, vector<32x64xf32>, vector<8x64xf32> -> vector<8x64xf32>
    %740 = vector.broadcast %735 : vector<1x64xf32> to vector<8x64xf32>
    %741 = arith.addf %739, %740 : vector<8x64xf32>
    %cst_256 = arith.constant 0.000000e+00 : f32
    %742 = vector.broadcast %cst_256 : f32 to vector<8x64xf32>
    %743 = arith.maximumf %741, %742 : vector<8x64xf32>
    %cst_257 = arith.constant dense<0.000000e+00> : vector<8x32xf32>
    %744 = tpu.matmul %743, %737, %cst_257 {dimension_numbers = #tpu.dot_dimension_numbers<[1], [0], [0], [1], [0, 0, 1, 1], [], []>} : vector<8x64xf32>, vector<64x32xf32>, vector<8x32xf32> -> vector<8x32xf32>
    %745 = vector.broadcast %738 : vector<1x32xf32> to vector<8x32xf32>
    %746 = arith.addf %744, %745 : vector<8x32xf32>
    %747 = arith.addf %732, %746 : vector<8x32xf32>
    %748 = vector.extract_strided_slice %529 {offsets = [9, 0], sizes = [1, 32], strides = [1, 1]} : vector<13x96xf32> to vector<1x32xf32>
    %749 = vector.extract_strided_slice %529 {offsets = [10, 0], sizes = [1, 32], strides = [1, 1]} : vector<13x96xf32> to vector<1x32xf32>
    %cst_258 = arith.constant dense<0.000000e+00> : vector<8xf32>
    %750 = vector.multi_reduction <add>, %747, %cst_258 [1] : vector<8x32xf32> to vector<8xf32>
    %751 = vector.shape_cast %750 : vector<8xf32> to vector<8x1xf32>
    %cst_259 = arith.constant 3.200000e+01 : f32
    %752 = vector.broadcast %cst_259 : f32 to vector<8x1xf32>
    %753 = arith.divf %751, %752 : vector<8x1xf32>
    %754 = vector.broadcast %753 : vector<8x1xf32> to vector<8x32xf32>
    %755 = arith.subf %747, %754 : vector<8x32xf32>
    %756 = arith.mulf %755, %755 : vector<8x32xf32>
    %cst_260 = arith.constant dense<0.000000e+00> : vector<8xf32>
    %757 = vector.multi_reduction <add>, %756, %cst_260 [1] : vector<8x32xf32> to vector<8xf32>
    %758 = vector.shape_cast %757 : vector<8xf32> to vector<8x1xf32>
    %cst_261 = arith.constant 3.200000e+01 : f32
    %759 = vector.broadcast %cst_261 : f32 to vector<8x1xf32>
    %760 = arith.divf %758, %759 : vector<8x1xf32>
    %761 = vector.broadcast %753 : vector<8x1xf32> to vector<8x32xf32>
    %762 = arith.subf %747, %761 : vector<8x32xf32>
    %cst_262 = arith.constant 9.99999974E-6 : f32
    %763 = vector.broadcast %cst_262 : f32 to vector<8x1xf32>
    %764 = arith.addf %760, %763 : vector<8x1xf32>
    %765 = math.rsqrt %764 : vector<8x1xf32>
    %766 = vector.broadcast %765 : vector<8x1xf32> to vector<8x32xf32>
    %767 = arith.mulf %762, %766 : vector<8x32xf32>
    %768 = vector.broadcast %748 : vector<1x32xf32> to vector<8x32xf32>
    %769 = arith.mulf %767, %768 : vector<8x32xf32>
    %770 = vector.broadcast %749 : vector<1x32xf32> to vector<8x32xf32>
    %771 = arith.addf %769, %770 : vector<8x32xf32>
    %c0_263 = arith.constant 0 : index
    %c0_264 = arith.constant 0 : index
    %c0_265 = arith.constant 0 : index
    %772 = vector.load %arg18[%c0_263, %c0_264, %c0_265] : memref<1x8x32xf32, #tpu.memory_space<vmem>>, vector<1x8x32xf32>
    %773 = vector.shape_cast %772 : vector<1x8x32xf32> to vector<8x32xf32>
    %774 = vector.shape_cast %771 : vector<8x32xf32> to vector<1x8x32xf32>
    tpu.vector_store %arg18[%c0_263, %c0_264, %c0_265], %774 {strides = array<i32>} : memref<1x8x32xf32, #tpu.memory_space<vmem>>, vector<1x8x32xf32>,
    return
  }
  func.func @transform_0(%arg0: i32) -> (i32, i32, i32) {
    %c0_i32 = arith.constant 0 : i32
    %c0_i32_0 = arith.constant 0 : i32
    %c0_i32_1 = arith.constant 0 : i32
    return %arg0, %c0_i32, %c0_i32_0 : i32, i32, i32
  }
  func.func @transform_1(%arg0: i32) -> (i32, i32, i32) {
    %c0_i32 = arith.constant 0 : i32
    %c0_i32_0 = arith.constant 0 : i32
    %c0_i32_1 = arith.constant 0 : i32
    return %arg0, %c0_i32, %c0_i32_0 : i32, i32, i32
  }
  func.func @transform_2(%arg0: i32) -> (i32, i32) {
    %c0_i32 = arith.constant 0 : i32
    %c0_i32_0 = arith.constant 0 : i32
    %c0_i32_1 = arith.constant 0 : i32
    return %c0_i32, %c0_i32_0 : i32, i32
  }
  func.func @transform_3(%arg0: i32) -> (i32, i32) {
    %c0_i32 = arith.constant 0 : i32
    %c0_i32_0 = arith.constant 0 : i32
    %c0_i32_1 = arith.constant 0 : i32
    return %c0_i32, %c0_i32_0 : i32, i32
  }
  func.func @transform_4(%arg0: i32) -> (i32, i32, i32) {
    %c0_i32 = arith.constant 0 : i32
    %c0_i32_0 = arith.constant 0 : i32
    %c0_i32_1 = arith.constant 0 : i32
    %c0_i32_2 = arith.constant 0 : i32
    return %c0_i32, %c0_i32_0, %c0_i32_1 : i32, i32, i32
  }
  func.func @transform_5(%arg0: i32) -> (i32, i32, i32) {
    %c0_i32 = arith.constant 0 : i32
    %c0_i32_0 = arith.constant 0 : i32
    %c0_i32_1 = arith.constant 0 : i32
    %c0_i32_2 = arith.constant 0 : i32
    return %c0_i32, %c0_i32_0, %c0_i32_1 : i32, i32, i32
  }
  func.func @transform_6(%arg0: i32) -> (i32, i32, i32) {
    %c0_i32 = arith.constant 0 : i32
    %c0_i32_0 = arith.constant 0 : i32
    %c0_i32_1 = arith.constant 0 : i32
    %c0_i32_2 = arith.constant 0 : i32
    return %c0_i32, %c0_i32_0, %c0_i32_1 : i32, i32, i32
  }
  func.func @transform_7(%arg0: i32) -> (i32, i32, i32) {
    %c0_i32 = arith.constant 0 : i32
    %c0_i32_0 = arith.constant 0 : i32
    %c0_i32_1 = arith.constant 0 : i32
    %c0_i32_2 = arith.constant 0 : i32
    return %c0_i32, %c0_i32_0, %c0_i32_1 : i32, i32, i32
  }
  func.func @transform_8(%arg0: i32) -> (i32, i32, i32) {
    %c0_i32 = arith.constant 0 : i32
    %c0_i32_0 = arith.constant 0 : i32
    %c0_i32_1 = arith.constant 0 : i32
    %c0_i32_2 = arith.constant 0 : i32
    return %c0_i32, %c0_i32_0, %c0_i32_1 : i32, i32, i32
  }
  func.func @transform_9(%arg0: i32) -> (i32, i32, i32) {
    %c0_i32 = arith.constant 0 : i32
    %c0_i32_0 = arith.constant 0 : i32
    %c0_i32_1 = arith.constant 0 : i32
    %c0_i32_2 = arith.constant 0 : i32
    return %c0_i32, %c0_i32_0, %c0_i32_1 : i32, i32, i32
  }
  func.func @transform_10(%arg0: i32) -> (i32, i32, i32) {
    %c0_i32 = arith.constant 0 : i32
    %c0_i32_0 = arith.constant 0 : i32
    %c0_i32_1 = arith.constant 0 : i32
    %c0_i32_2 = arith.constant 0 : i32
    return %c0_i32, %c0_i32_0, %c0_i32_1 : i32, i32, i32
  }
  func.func @transform_11(%arg0: i32) -> (i32, i32, i32) {
    %c0_i32 = arith.constant 0 : i32
    %c0_i32_0 = arith.constant 0 : i32
    %c0_i32_1 = arith.constant 0 : i32
    %c0_i32_2 = arith.constant 0 : i32
    return %c0_i32, %c0_i32_0, %c0_i32_1 : i32, i32, i32
  }
  func.func @transform_12(%arg0: i32) -> (i32, i32, i32) {
    %c0_i32 = arith.constant 0 : i32
    %c0_i32_0 = arith.constant 0 : i32
    %c0_i32_1 = arith.constant 0 : i32
    %c0_i32_2 = arith.constant 0 : i32
    return %c0_i32, %c0_i32_0, %c0_i32_1 : i32, i32, i32
  }
  func.func @transform_13(%arg0: i32) -> (i32, i32, i32) {
    %c0_i32 = arith.constant 0 : i32
    %c0_i32_0 = arith.constant 0 : i32
    %c0_i32_1 = arith.constant 0 : i32
    %c0_i32_2 = arith.constant 0 : i32
    return %c0_i32, %c0_i32_0, %c0_i32_1 : i32, i32, i32
  }
  func.func @transform_14(%arg0: i32) -> (i32, i32, i32) {
    %c0_i32 = arith.constant 0 : i32
    %c0_i32_0 = arith.constant 0 : i32
    %c0_i32_1 = arith.constant 0 : i32
    %c0_i32_2 = arith.constant 0 : i32
    return %c0_i32, %c0_i32_0, %c0_i32_1 : i32, i32, i32
  }
  func.func @transform_15(%arg0: i32) -> (i32, i32, i32) {
    %c0_i32 = arith.constant 0 : i32
    %c0_i32_0 = arith.constant 0 : i32
    %c0_i32_1 = arith.constant 0 : i32
    %c0_i32_2 = arith.constant 0 : i32
    return %c0_i32, %c0_i32_0, %c0_i32_1 : i32, i32, i32
  }
  func.func @transform_16(%arg0: i32) -> (i32, i32, i32) {
    %c0_i32 = arith.constant 0 : i32
    %c0_i32_0 = arith.constant 0 : i32
    %c0_i32_1 = arith.constant 0 : i32
    %c0_i32_2 = arith.constant 0 : i32
    return %c0_i32, %c0_i32_0, %c0_i32_1 : i32, i32, i32
  }
  func.func @transform_17(%arg0: i32) -> (i32, i32, i32) {
    %c0_i32 = arith.constant 0 : i32
    %c0_i32_0 = arith.constant 0 : i32
    %c0_i32_1 = arith.constant 0 : i32
    return %arg0, %c0_i32, %c0_i32_0 : i32, i32, i32
  }
}

</mosaic_0001>

<bundles_post_ra>
// kernel: transformer_forward.1
= control target key start
LH: loop header
LB: loop body
LE: loop exit
PB: predicated region body
PF: predicated region fallthrough
CT: control target
= control target key end

     0   :  { %s9184_s0 = inlined_call_operand.vmem [shape: f32[2,8,32], index: 0, kind: input, shape index: {}]   ;;  %s9185_s1 = inlined_call_operand.vmem [shape: f32[2,8,32], index: 1, kind: input, shape index: {}]   ;;  %s9186_s2 = inlined_call_operand.vmem [shape: f32[8,32], index: 2, kind: input, shape index: {}, may-alias: {2,3}]   ;;  %s9187_s3 = inlined_call_operand.vmem [shape: f32[8,32], index: 3, kind: input, shape index: {}, may-alias: {2,3}]   ;;  %s9188_s4 = inlined_call_operand.vmem [shape: f32[2,32,96], index: 4, kind: input, shape index: {}]   ;;  %s9189_s5 = inlined_call_operand.vmem [shape: f32[2,32,32], index: 5, kind: input, shape index: {}]   ;;  %s9190_s6 = inlined_call_operand.vmem [shape: f32[2,32,64], index: 6, kind: input, shape index: {}]   ;;  %s9191_s7 = inlined_call_operand.vmem [shape: f32[2,64,32], index: 7, kind: input, shape index: {}]   ;;  %s9192_s8 = inlined_call_operand.vmem [shape: f32[2,6,96], index: 8, kind: input, shape index: {}]   ;;  %s9193_s9 = inlined_call_operand.vmem [shape: f32[2,32,96], index: 9, kind: input, shape index: {}]   ;;  %s9194_s10 = inlined_call_operand.vmem [shape: f32[2,32,32], index: 10, kind: input, shape index: {}]   ;;  %s9195_s11 = inlined_call_operand.vmem [shape: f32[2,32,32], index: 11, kind: input, shape index: {}]   ;;  %s9196_s12 = inlined_call_operand.vmem [shape: f32[2,32,64], index: 12, kind: input, shape index: {}]   ;;  %s9197_s13 = inlined_call_operand.vmem [shape: f32[2,32,32], index: 13, kind: input, shape index: {}]   ;;  %s9198_s14 = inlined_call_operand.vmem [shape: f32[2,32,64], index: 14, kind: input, shape index: {}]   ;;  %s9199_s15 = inlined_call_operand.vmem [shape: f32[2,64,32], index: 15, kind: input, shape index: {}]   ;;  %s9200_s16 = inlined_call_operand.vmem [shape: f32[2,13,96], index: 16, kind: input, shape index: {}]   ;;  %s9201_s17 = inlined_call_operand.hbm [shape: f32[2,8,32], index: 17, kind: output, shape index: {}]  }
   0x1   :  { %9244 = sst [smem:[#allocation14_spill]] %s9184_s0 }
   0x2   :  { %9245 = sst [smem:[#allocation15_spill]] %s9185_s1 }
   0x3   :  { %9246 = sst [smem:[#allocation16_spill]] %s9186_s2 }
   0x4   :  { %9247 = sst [smem:[#allocation17_spill]] %s9187_s3 }
   0x5   :  { %9248 = sst [smem:[#allocation18_spill]] %s9188_s4 }
   0x6   :  { %9249 = sst [smem:[#allocation19_spill]] %s9189_s5 }
   0x7   :  { %9250 = sst [smem:[#allocation20_spill]] %s9190_s6 }
   0x8   :  { %9251 = sst [smem:[#allocation21_spill]] %s9191_s7 }
   0x9   :  { %9252 = sst [smem:[#allocation22_spill]] %s9192_s8 }
   0xa   :  { %9253 = sst [smem:[#allocation23_spill]] %s9198_s14 }
   0xb   :  { %9254 = sst [smem:[#allocation24_spill]] %s9199_s15 }
   0xc   :  { %9255 = sst [smem:[#allocation25_spill]] %s9201_s17 }
   0xd   :  { %22 = vsyncpa [#allocation3], 0 }
   0xe   :  { %24 = vsyncpa [#allocation3 + $0x1], 0  ;;  %s7989_s24 = smov 0   ;;  %s7991_s25 = smov 0  }
   0xf   :  { %s7993_s26 = smov 0   ;;  %s7995_s27 = smov 0  }
  0x10 LB: > { %9256 = sst [smem:[#allocation5_spill]] %s7868_s24  ;;  %s8010_s28 = sadd.s32 4294967295, %s7880_s27   ;;  %s7880_s27 = sphi %s7995_s27, %s9301_s27   ;;  %s7876_s26 = sphi %s7993_s26, %s9304_s26   ;;  %s7872_s25 = sphi %s7991_s25, %s9303_s25   ;;  %s7868_s24 = sphi %s7989_s24, %s9302_s24  }
  0x11   : > { %9257 = sst [smem:[#allocation6_spill]] %s7872_s25  ;;  %s6753_s29 = sadd.s32 4294967294, %s7880_s27  }
  0x12   : > { %9258 = sst [smem:[#allocation7_spill]] %s7876_s26  ;;  %s8014_s0 = sadd.s32 1, %s7880_s27  }
  0x13   : > { %9259 = sst [smem:[#allocation8_spill]] %s7880_s27  ;;  %s404_s30 = sadd.s32 1, %s7876_s26 }
  0x14   : > { %9260 = sst [smem:[#allocation9_spill]] %s8010_s28  ;;  %s401_s18 = ssub.s32 %s7880_s27, %s8014_s0 }
  0x15   : > { %9261 = sst [smem:[#allocation10_spill]] %s8014_s0  ;;  %p414_p0 = scmp.ne.s32.totalorder %s7876_s26, %s7872_s25 }
  0x16   : > { %p402_p1 = scmp.eq.s32.totalorder %s401_s18, 0  ;;  %p415_p2 = scmp.eq.s32.totalorder %s8010_s28, 1 }
  0x17   : > { %p420_p3 = scmp.ne.s32.totalorder %s7872_s25, %s7868_s24  ;;  %p421_p4 = scmp.eq.s32.totalorder %s6753_s29, 1 }
  0x18   : > { %s8025_s19 = scalar_select %p402_p1, %s7876_s26, %s404_s30  }
  0x19   : > { %p8027_p5 = por %p415_p2, %p414_p0  ;;  %p8031_p6 = por %p421_p4, %p420_p3 }
  0x1a   : > { %9262 = sst [smem:[#allocation11_spill]] %s8025_s19  ;;  %p6756_p7 = scmp.ge.s32.totalorder %s7880_s27, 1 }
  0x1b   : > { %s9263_s1 = scalar_select %p8027_p5, 1, 0 }
  0x1c   : > { %s9265_s20 = scalar_select %p8031_p6, 1, 0 }
  0x1d   : > { %9264 = sst [smem:[#allocation12_spill]] %s9263_s1  ;;  %p498_p8 = scmp.lt.s32.totalorder %s7880_s27, 3 }
  0x1e   : > { %9266 = sst [smem:[#allocation13_spill]] %s9265_s20 }
  0x1f   : > { %p499_p9 = pnand %p6756_p7, %p498_p8 }
  0x20   : > { %s9267_s4 = sld [smem:[#allocation18_spill]] (!%p499_p9)  ;;  %p553_p10 = scmp.lt.s32.totalorder (!%p499_p9), %s8010_s28, 1 }
  0x21   : > { %502 = sbr.rel (%p499_p9) target bundleno = 12166 (0x2f86), region = 88  ;;  %s9268_s2 = sld [smem:[#allocation16_spill]] (!%p499_p9) }
  0x22   : > { %s9269_s18 = sld [smem:[#allocation14_spill]] (!%p499_p9)  ;;  %s9231_s19 = smov (!%p499_p9), 96  }
  0x23   : > { %s9270_s8 = sld [smem:[#allocation22_spill]] (!%p499_p9)  ;;  %s9221_s20 = smov (!%p499_p9), 120  }
  0x24   : > { %s9233_s23 = smov (!%p499_p9), 88   ;;  %s9217_s29 = smov (!%p499_p9), 80  }
  0x25   : > { %s9219_s26 = smov (!%p499_p9), 104   ;;  %s9207_s0 = smov (!%p499_p9), 56  }
  0x26   : > { %v568_v0 = vld [vmem:[%s9267_s4 + $0x18] sm:$0xff]  ;;  %v7882_v1 = vmov 0.0   ;;  %v567_v2 = vld [vmem:[%s9267_s4 + $0x10] sm:$0xff]  ;;  %vm7883_vm0 = vmmov 0   ;;  %s8048_s30 = scalar_select %p553_p10, %s8010_s28, 1  ;;  %v566_v3 = vld [vmem:[%s9267_s4 + $0x8] sm:$0xff]  ;;  %v569_v8 = vlaneseq }
  0x27   : > { %7135 = vmatprep.subr.mxu1 %v7882_v1  ;;  %7143 = vmatprep.mubr.msk.f32.mxu1 %vm7883_vm0, %v7882_v1  ;;  %v562_v4 = vld [vmem:[%s9268_s2] sm:$0xff]  ;;  %vm573_vm1 = vcmask 261120   ;;  %vm655_vm2 = vcmask 64512   ;;  %s9271_s5 = sld [smem:[#allocation19_spill]]  ;;  %vm1326_vm3 = vcmask 130048   ;;  %vm1328_vm4 = vcmask 195584  }
  0x28   : > { %7136 = vmatpush3.msra.mxu1 %v568_v0  ;;  %7156 = vmatprep.subr.mxu0 %v7882_v1  ;;  %s9206_s22 = sshll.u32 %s8048_s30, 3  ;;  %v565_v5 = vld [vmem:[%s9267_s4] sm:$0xff]  ;;  %v8078_v9 = vshrl.u32 %v569_v8, 7  ;;  %s9272_s6 = sld [smem:[#allocation20_spill]]  ;;  %vm1526_vm5 = vcmask 523264  }
  0x29   : > { %7137 = vmatprep.subr.mxu1 %v7882_v1  ;;  %7158 = vmatprep.mubr.msk.f32.mxu0 %vm7883_vm0, %v7882_v1  ;;  %s556_s21 = scalar_lea.vmem %s9269_s18, %s9206_s22  ;;  %v8086_v11 = vld [vmem:[%s9270_s8] sm:$0x3f]  ;;  %s9223_s18 = smov 112  }
  0x2a   : > { %7138 = vmatpush3.msra.mxu1 %v567_v2  ;;  %v561_v6 = vld [vmem:[%s556_s21] sm:$0xff]  ;;  %v8081_v10 = vsub.s32 0, %v8078_v9  ;;  %s9209_s21 = smov 72   ;;  %s9215_s22 = smov 64  }
  0x2b   : > { %7139 = vmatprep.subr.mxu1 %v7882_v1  ;;  %v8071_v7 = vadd.f32 %v562_v4, %v561_v6  ;;  %s9273_s7 = sld [smem:[#allocation21_spill]]  ;;  %s9283_s2 = smov 40  }
  0x2c   : > { %7140 = vmatpush3.msra.mxu1 %v566_v3  ;;  %v572_v12 = vrot.slane %v8086_v11, %v8081_v10  ;;  %s9284_s24 = smov 8   ;;  %s9285_s17 = smov 16  }
  0x2d   : > { %7141 = vmatprep.subr.mxu1 %v7882_v1  ;;  %s9286_s27 = smov 24   ;;  %s9288_s14 = sld [smem:[#allocation15_spill]] }
  0x2e   : > { %7142 = vmatpush3.msra.mxu1 %v565_v5  ;;  %s9289_s3 = sld [smem:[#allocation17_spill]] }
  0x2f   : > { %7144 = vmatmul.mubr.msk.f32.vlgmr.msra.gmra.mxu1 %vm573_vm1, %v8071_v7  ;;  %7146 = vmatprep.subr.mxu1 %v7882_v1  ;;  %s9292_s25 = sld [smem:[#allocation24_spill]] }
  0x30   : > { %7148 = vmatprep.mubr.msk.f32.mxu1 %vm7883_vm0, %v7882_v1  ;;  %s9297_s28 = sld [smem:[#allocation25_spill]] }
  0xef   : > { %v643_v13 = vpop.f32.mrf.mxu1 }
  0xf0   : > { %v8090_v14 = vadd.f32 %v643_v13, %v572_v12  ;;  %v651_v13 = vld [vmem:[%s9271_s5 + $0x18] sm:$0xff] }
  0xf1   : > { %v7145_v15 = vpop.f32.mrf.mxu1 }
  0xf2   : > { %653 = vrot.lane.b32.xlu0 %v8090_v14, %s9231_s19  ;;  %v647_v16 = vmul.f32 0.35355338, %v8090_v14  ;;  %s9278_s19 = smov 80  }
  0xf4   : > { %818 = vrot.lane.b32.xlu1 %v647_v16, %s9221_s20  ;;  %s9225_s20 = smov 24  }
  0xf6   : > { %820 = vrot.lane.b32.xlu0 %v8090_v14, %s9233_s23 }
  0xf8   : > { %985 = vrot.lane.b32.xlu1 %v8090_v14, %s9217_s29  ;;  %s9227_s29 = smov 16  }
  0xfa   : > { %983 = vrot.lane.b32.xlu0 %v647_v16, %s9223_s18  ;;  %s9280_s18 = smov 56  }
  0xfc   : > { %1150 = vrot.lane.b32.xlu1 %v8090_v14, %s9209_s21  ;;  %s9211_s21 = smov 40  }
  0xfe   : > { %1148 = vrot.lane.b32.xlu0 %v647_v16, %s9219_s26  ;;  %s9281_s26 = smov 64  }
 0x164   : > { %v654_v17 = vpop.permute.xlu0 %653 }
 0x165   : > { %7147 = vmatpush3.xpose.msk.msra.mxu1 %vm655_vm2, %v654_v17 }
 0x166   : > { %v819_v18 = vpop.permute.xlu1 %818  ;;  %7151 = vmatprep.subr.mxu1 %v7882_v1 }
 0x168   : > { %v821_v19 = vpop.permute.xlu0 %820  ;;  %7149 = vmatmul.mubr.msk.f32.vlgmr.msra.gmra.mxu1 %vm655_vm2, %v647_v16 }
 0x169   : > { %7157 = vmatpush3.xpose.msk.msra.mxu0 %vm655_vm2, %v821_v19  ;;  %7153 = vmatprep.mubr.msk.f32.mxu1 %vm7883_vm0, %v7882_v1  ;;  %v649_v19 = vld [vmem:[%s9271_s5 + $0x8] sm:$0xff] }
 0x16a   : > { %v986_v20 = vpop.permute.xlu1 %985  ;;  %7166 = vmatprep.subr.mxu0 %v7882_v1 }
 0x16c   : > { %7159 = vmatmul.mubr.msk.f32.vlgmr.msra.gmra.mxu0 %vm655_vm2, %v819_v18  ;;  %v984_v21 = vpop.permute.xlu0 %983  ;;  %v650_v18 = vld [vmem:[%s9271_s5 + $0x10] sm:$0xff] }
 0x16d   : > { %7167 = vmatpush3.xpose.msk.msra.mxu0 %vm655_vm2, %v986_v20  ;;  %7168 = vmatprep.mubr.msk.f32.mxu0 %vm7883_vm0, %v7882_v1  ;;  %v648_v20 = vld [vmem:[%s9271_s5] sm:$0xff] }
 0x16e   : > { %7176 = vmatprep.subr.mxu0 %v7882_v1  ;;  %v1151_v22 = vpop.permute.xlu1 %1150 }
 0x170   : > { %7169 = vmatmul.mubr.msk.f32.vlgmr.msra.gmra.mxu0 %vm655_vm2, %v984_v21  ;;  %v1149_v23 = vpop.permute.xlu0 %1148 }
 0x171   : > { %7177 = vmatpush3.xpose.msk.msra.mxu0 %vm655_vm2, %v1151_v22  ;;  %7178 = vmatprep.mubr.msk.f32.mxu0 %vm7883_vm0, %v7882_v1 }
 0x172   : > { %7186 = vmatprep.subr.mxu0 %v7882_v1 }
 0x174   : > { %7179 = vmatmul.mubr.msk.f32.vlgmr.msra.gmra.mxu0 %vm655_vm2, %v1149_v23 }
 0x175   : > { %7194 = vmatprep.mubr.msk.f32.mxu0 %vm7883_vm0, %v7882_v1  ;;  %7187 = vmatpush3.msra.mxu0 %v651_v13 }
 0x176   : > { %7188 = vmatprep.subr.mxu0 %v7882_v1 }
 0x177   : > { %7189 = vmatpush3.msra.mxu0 %v650_v18 }
 0x178   : > { %7190 = vmatprep.subr.mxu0 %v7882_v1 }
 0x179   : > { %7191 = vmatpush3.msra.mxu0 %v649_v19 }
 0x17a   : > { %7192 = vmatprep.subr.mxu0 %v7882_v1 }
 0x17b   : > { %7193 = vmatpush3.msra.mxu0 %v648_v20 }
 0x17c   : > { %7208 = vmatprep.subr.mxu0 %v7882_v1 }
 0x228   : > { %v727_v24 = vpop.f32.mrf.mxu1 }
 0x229   : > { %v731_v25 = vsel %vm655_vm2, %v727_v24, -inf }
 0x22a   : > { %732 = vmax.xlane.f32.xlu1 %v731_v25  ;;  %v7150_v26 = vpop.f32.mrf.mxu1 }
 0x22c   : > { %v892_v27 = vpop.f32.mrf.mxu0 }
 0x22d   : > { %v896_v28 = vsel %vm655_vm2, %v892_v27, -inf }
 0x22e   : > { %897 = vmax.xlane.f32.xlu0 %v896_v28  ;;  %v7160_v29 = vpop.f32.mrf.mxu0 }
 0x230   : > { %v1057_v30 = vpop.f32.mrf.mxu0 }
 0x231   : > { %v1061_v31 = vsel %vm655_vm2, %v1057_v30, -inf }
 0x232   : > { %1062 = vmax.xlane.f32.xlu0 %v1061_v31  ;;  %v7170_v32 = vpop.f32.mrf.mxu0  ;;  %v8182_v31 = vsub.s32 1, %v8078_v9 }
 0x234   : > { %v1222_v33 = vpop.f32.mrf.mxu0  ;;  %v1333_v32 = vrot.slane %v8086_v11, %v8182_v31 }
 0x235   : > { %v1226_v34 = vsel %vm655_vm2, %v1222_v33, -inf }
 0x236   : > { %v7180_v35 = vpop.f32.mrf.mxu0  ;;  %1227 = vmax.xlane.f32.xlu1 %v1226_v34 }
 0x247   : > { %907 = vrot.lane.b32.xlu1 %v8090_v14, %s9207_s0  ;;  %s9213_s0 = smov 48  }
 0x2b3   : > { %v733_v36 = vpop.xlane.xlu1 %732 }
 0x2b4   : > { %v734_v37 = vsub.f32 %v727_v24, %v733_v36 }
 0x2b6   : > { %v735_v38 = vmul.f32 1.442695, %v734_v37 }
 0x2b7   : > { %v898_v39 = vpop.xlane.xlu0 %897 }
 0x2b8   : > { %7704 = vpow2.f32 %v735_v38  ;;  %v899_v40 = vsub.f32 %v892_v27, %v898_v39 }
 0x2ba   : > { %v900_v41 = vmul.f32 1.442695, %v899_v40 }
 0x2bb   : > { %v1063_v51 = vpop.xlane.xlu0 %1062 }
 0x2bc   : > { %7706 = vpow2.f32 %v900_v41  ;;  %v1064_v52 = vsub.f32 %v1057_v30, %v1063_v51 }
 0x2be   : > { %v1065_v53 = vmul.f32 1.442695, %v1064_v52 }
 0x2bf   : > { %v1228_v42 = vpop.xlane.xlu1 %1227 }
 0x2c0   : > { %v1229_v43 = vsub.f32 %v1222_v33, %v1228_v42 }
 0x2c2   : > { %v1230_v44 = vmul.f32 1.442695, %v1229_v43  ;;  %v1435_v43 = vld [vmem:[%s9272_s6 + $0x18] sm:$0xff] }
 0x2c3   : > { %v908_v56 = vpop.permute.xlu1 %907 }
 0x2c4   : > { %7708 = vpow2.f32 %v1230_v44  ;;  %v1434_v44 = vld [vmem:[%s9272_s6 + $0x10] sm:$0xff] }
 0x2c5   : > { %v7705_v45 = vpop.eup %7704  ;;  %7710 = vpow2.f32 %v1065_v53 }
 0x2c6   : > { %v737_v46 = vsel %vm655_vm2, %v7705_v45, 0.0 }
 0x2c7   : > { %738 = vadd.xlane.f32.xlu0 %v737_v46  ;;  %v1443_v46 = vld [vmem:[%s9273_s7 + $0x38] sm:$0xff] }
 0x2c9   : > { %v7707_v47 = vpop.eup %7706 }
 0x2ca   : > { %v902_v48 = vsel %vm655_vm2, %v7707_v47, 0.0 }
 0x2cb   : > { %903 = vadd.xlane.f32.xlu1 %v902_v48  ;;  %v1441_v48 = vld [vmem:[%s9273_s7 + $0x28] sm:$0xff] }
 0x2d1   : > { %v7709_v49 = vpop.eup %7708 }
 0x2d2   : > { %v1232_v50 = vsel %vm655_vm2, %v7709_v49, 0.0  ;;  %v7711_v54 = vpop.eup %7710 }
 0x2d3   : > { %1233 = vadd.xlane.f32.xlu1 %v1232_v50  ;;  %v1067_v55 = vsel %vm655_vm2, %v7711_v54, 0.0  ;;  %v1439_v50 = vld [vmem:[%s9273_s7 + $0x18] sm:$0xff] }
 0x2dd   : > { %742 = vrot.lane.b32.xlu0 %v8090_v14, %s9215_s22  ;;  %s9229_s22 = smov 8  }
 0x2e4   : > { %1072 = vrot.lane.b32.xlu1 %v8090_v14, %s9213_s0  ;;  %s9279_s0 = smov 72  }
 0x2fc   : > { %1068 = vadd.xlane.f32.xlu0 %v1067_v55  ;;  %v8229_v55 = vsub.s32 3, %v8078_v9 }
 0x312   : > { %1237 = vrot.lane.b32.xlu0 %v8090_v14, %s9211_s21  ;;  %s9274_s21 = smov 96  }
 0x350   : > { %v739_v57 = vpop.xlane.xlu0 %738 }
 0x351   : > { %7712 = vrcp.f32 %v739_v57 }
 0x354   : > { %v743_v58 = vpop.permute.xlu0 %742  ;;  %v904_v59 = vpop.xlane.xlu1 %903 }
 0x355   : > { %7714 = vrcp.f32 %v904_v59  ;;  %7152 = vmatpush3.msra.mxu1 %v743_v58  ;;  %v1430_v59 = vrot.slane %v8086_v11, %v8229_v55 }
 0x356   : > { %7161 = vmatprep.subr.mxu1 %v7882_v1 }
 0x35c   : > { %v1234_v61 = vpop.xlane.xlu1 %1233 }
 0x35e   : > { %v7713_v60 = vpop.eup %7712 }
 0x35f   : > { %v741_v62 = vmul.f32 %v7713_v60, %v7705_v45  ;;  %v1432_v45 = vld [vmem:[%s9272_s6] sm:$0xff] }
 0x360   : > { %v1073_v2 = vpop.permute.xlu1 %1072 }
 0x361   : > { %7154 = vmatmul.mubr.msk.f32.vlgmr.msra.gmra.mxu1 %vm655_vm2, %v741_v62  ;;  %v1438_v62 = vld [vmem:[%s9273_s7 + $0x10] sm:$0xff] }
 0x362   : > { %v7715_v63 = vpop.eup %7714  ;;  %7162 = vmatpush3.msra.mxu1 %v908_v56  ;;  %7163 = vmatprep.mubr.msk.f32.mxu1 %vm7883_vm0, %v7882_v1 }
 0x363   : > { %7171 = vmatprep.subr.mxu1 %v7882_v1  ;;  %v906_v0 = vmul.f32 %v7715_v63, %v7707_v47  ;;  %v1442_v47 = vld [vmem:[%s9273_s7 + $0x30] sm:$0xff]  ;;  %v1437_v63 = vld [vmem:[%s9273_s7 + $0x8] sm:$0xff] }
 0x365   : > { %7164 = vmatmul.mubr.msk.f32.vlgmr.msra.gmra.mxu1 %vm655_vm2, %v906_v0  ;;  %v1436_v0 = vld [vmem:[%s9273_s7] sm:$0xff] }
 0x366   : > { %7172 = vmatpush3.msra.mxu1 %v1073_v2  ;;  %7173 = vmatprep.mubr.msk.f32.mxu1 %vm7883_vm0, %v7882_v1  ;;  %v8251_v2 = vsub.s32 4, %v8078_v9 }
 0x367   : > { %7181 = vmatprep.subr.mxu1 %v7882_v1 }
 0x385   : > { %v1069_v3 = vpop.xlane.xlu0 %1068 }
 0x386   : > { %7716 = vrcp.f32 %v1069_v3  ;;  %v1447_v3 = vrot.slane %v8086_v11, %v8251_v2 }
 0x387   : > { %7718 = vrcp.f32 %v1234_v61 }
 0x389   : > { %v1238_v8 = vpop.permute.xlu0 %1237 }
 0x393   : > { %v7717_v4 = vpop.eup %7716 }
 0x394   : > { %v1071_v5 = vmul.f32 %v7717_v4, %v7711_v54  ;;  %v7719_v6 = vpop.eup %7718  ;;  %v8226_v54 = vsub.s32 2, %v8078_v9 }
 0x395   : > { %v1236_v12 = vmul.f32 %v7719_v6, %v7709_v49  ;;  %v1440_v49 = vld [vmem:[%s9273_s7 + $0x20] sm:$0xff] }
 0x396   : > { %7174 = vmatmul.mubr.msk.f32.vlgmr.msra.gmra.mxu1 %vm655_vm2, %v1071_v5  ;;  %v1425_v56 = vrot.slane %v8086_v11, %v8226_v54 }
 0x397   : > { %7182 = vmatpush3.msra.mxu1 %v1238_v8  ;;  %7183 = vmatprep.mubr.msk.f32.mxu1 %vm7883_vm0, %v7882_v1 }
 0x398   : > { %7197 = vmatprep.subr.mxu1 %v7882_v1 }
 0x39a   : > { %7184 = vmatmul.mubr.msk.f32.vlgmr.msra.gmra.mxu1 %vm655_vm2, %v1236_v12  ;;  %v8259_v12 = vsub.s32 5, %v8078_v9 }
 0x39b   : > { %7205 = vmatprep.mubr.msk.f32.mxu1 %vm7883_vm0, %v7882_v1  ;;  %7198 = vmatpush3.msra.mxu1 %v1435_v43 }
 0x39c   : > { %7199 = vmatprep.subr.mxu1 %v7882_v1  ;;  %v1525_v13 = vrot.slane %v8086_v11, %v8259_v12  ;;  %v6779_v11 = vld [vmem:[%s9267_s4 + $0x30] sm:$0xff] }
 0x39d   : > { %7200 = vmatpush3.msra.mxu1 %v1434_v44 }
 0x39e   : > { %7201 = vmatprep.subr.mxu1 %v7882_v1 }
 0x421   : > { %v814_v14 = vpop.f32.mrf.mxu1 }
 0x423   : > { %v7155_v15 = vpop.f32.mrf.mxu1 }
 0x425   : > { %v979_v16 = vpop.f32.mrf.mxu1 }
 0x426   : > { %1314 = vrot.lane.b32.xlu1 %v979_v16, %s9229_s22  ;;  %s9277_s22 = smov 104  }
 0x427   : > { %v7165_v17 = vpop.f32.mrf.mxu1 }
 0x456   : > { %v1144_v21 = vpop.f32.mrf.mxu1 }
 0x457   : > { %1318 = vrot.lane.b32.xlu0 %v1144_v21, %s9227_s29  ;;  %s9275_s29 = smov 112  }
 0x458   : > { %v7175_v22 = vpop.f32.mrf.mxu1 }
 0x45a   : > { %v1309_v23 = vpop.f32.mrf.mxu1 }
 0x45b   : > { %1322 = vrot.lane.b32.xlu1 %v1309_v23, %s9225_s20  ;;  %s9276_s20 = smov 120  }
 0x45c   : > { %v7185_v24 = vpop.f32.mrf.mxu1 }
 0x45d   : > { %v6780_v24 = vld [vmem:[%s9267_s4 + $0x38] sm:$0xff] }
 0x498   : > { %v1315_v25 = vpop.permute.xlu1 %1314 }
 0x499   : > { %v1325_v27 = vsel %vm655_vm2, %v814_v14, %v1315_v25  ;;  %v6778_v25 = vld [vmem:[%s9267_s4 + $0x28] sm:$0xff] }
 0x4c9   : > { %v1319_v26 = vpop.permute.xlu0 %1318 }
 0x4ca   : > { %v1327_v28 = vsel %vm1326_vm3, %v1325_v27, %v1319_v26  ;;  %v6777_v26 = vld [vmem:[%s9267_s4 + $0x20] sm:$0xff]  ;;  %s9287_s4 = sshll.u32 %s8048_s30, 3 }
 0x4cb   : > { %s560_s15 = scalar_lea.vmem %s9288_s14, %s9287_s4  ;;  %s9293_s14 = smov %s9292_s25 }
 0x4cd   : > { %v1323_v29 = vpop.permute.xlu1 %1322 }
 0x4ce   : > { %v1329_v30 = vsel %vm1328_vm4, %v1327_v28, %v1323_v29 }
 0x4cf   : > { %7195 = vmatmul.mubr.msk.f32.vlgmr.msra.gmra.mxu0 %vm573_vm1, %v1329_v30 }
 0x4d0   : > { %7224 = vmatprep.mubr.msk.f32.mxu0 %vm7883_vm0, %v7882_v1  ;;  %7209 = vmatpush3.msra.mxu0 %v1443_v46 }
 0x4d1   : > { %7210 = vmatprep.subr.mxu0 %v7882_v1 }
 0x4d2   : > { %7211 = vmatpush3.msra.mxu0 %v1442_v47 }
 0x4d3   : > { %7212 = vmatprep.subr.mxu0 %v7882_v1 }
 0x4d4   : > { %7213 = vmatpush3.msra.mxu0 %v1441_v48 }
 0x4d5   : > { %7214 = vmatprep.subr.mxu0 %v7882_v1 }
 0x4d6   : > { %7215 = vmatpush3.msra.mxu0 %v1440_v49 }
 0x4d7   : > { %7216 = vmatprep.subr.mxu0 %v7882_v1 }
 0x4d8   : > { %7217 = vmatpush3.msra.mxu0 %v1439_v50 }
 0x4d9   : > { %7218 = vmatprep.subr.mxu0 %v7882_v1 }
 0x4da   : > { %7219 = vmatpush3.msra.mxu0 %v1438_v62 }
 0x4db   : > { %7220 = vmatprep.subr.mxu0 %v7882_v1 }
 0x4dc   : > { %7221 = vmatpush3.msra.mxu0 %v1437_v63 }
 0x4dd   : > { %7222 = vmatprep.subr.mxu0 %v7882_v1 }
 0x4de   : > { %7223 = vmatpush3.msra.mxu0 %v1436_v0 }
 0x4df   : > { %7248 = vmatprep.subr.mxu0 %v7882_v1 }
 0x58f   : > { %v1403_v33 = vpop.f32.mrf.mxu0 }
 0x590   : > { %v1404_v34 = vadd.f32 %v1403_v33, %v1333_v32 }
 0x591   : > { %v7196_v35 = vpop.f32.mrf.mxu0 }
 0x592   : > { %v1407_v36 = vadd.f32 %v1404_v34, %v8071_v7  ;;  %v1433_v7 = vld [vmem:[%s9272_s6 + $0x8] sm:$0xff] }
 0x593   : > { %7202 = vmatpush3.msra.mxu1 %v1433_v7  ;;  %v8290_v35 = vld [vmem:[%s9270_s8 + $0x8] sm:$0x3f] }
 0x594   : > { %v1408_v37 = vsel %vm573_vm1, %v1407_v36, 0.0  ;;  %7203 = vmatprep.subr.mxu1 %v7882_v1 }
 0x595   : > { %1409 = vadd.xlane.f32.xlu0 %v1408_v37  ;;  %7204 = vmatpush3.msra.mxu1 %v1432_v45 }
 0x596   : > { %7227 = vmatprep.subr.mxu1 %v7882_v1 }
 0x61e   : > { %v1410_v38 = vpop.xlane.xlu0 %1409 }
 0x61f   : > { %v1412_v39 = vmul.f32 0.03125, %v1410_v38 }
 0x621   : > { %v1413_v40 = vsub.f32 %v1407_v36, %v1412_v39  ;;  %v1626_v36 = vrot.slane %v8290_v35, %v8081_v10 }
 0x623   : > { %v1414_v41 = vmul.f32 %v1413_v40, %v1413_v40 }
 0x625   : > { %v1415_v42 = vsel %vm573_vm1, %v1414_v41, 0.0 }
 0x626   : > { %1416 = vadd.xlane.f32.xlu1 %v1415_v42 }
 0x6af   : > { %v1417_v51 = vpop.xlane.xlu1 %1416 }
 0x6b0   : > { %v1418_v52 = vmul.f32 0.03125, %v1417_v51 }
 0x6b2   : > { %v1419_v53 = vadd.f32 1e-05, %v1418_v52 }
 0x6b4   : > { %7720 = vrsqrt.f32 %v1419_v53 }
 0x6c1   : > { %v7721_v57 = vpop.eup %7720 }
 0x6c2   : > { %v1421_v58 = vmul.f32 %v7721_v57, %v1413_v40 }
 0x6c4   : > { %v1426_v60 = vmul.f32 %v1425_v56, %v1421_v58 }
 0x6c6   : > { %v1431_v61 = vadd.f32 %v1430_v59, %v1426_v60 }
 0x6c8   : > { %7206 = vmatmul.mubr.msk.f32.vlgmr.msra.gmra.mxu1 %vm573_vm1, %v1431_v61 }
 0x6c9   : > { %7235 = vmatprep.mubr.msk.f32.mxu1 %vm7883_vm0, %v7882_v1  ;;  %7228 = vmatpush3.msra.mxu1 %v6780_v24 }
 0x6ca   : > { %7229 = vmatprep.subr.mxu1 %v7882_v1 }
 0x6cb   : > { %7230 = vmatpush3.msra.mxu1 %v6779_v11 }
 0x6cc   : > { %7231 = vmatprep.subr.mxu1 %v7882_v1 }
 0x6cd   : > { %7232 = vmatpush3.msra.mxu1 %v6778_v25 }
 0x6ce   : > { %7233 = vmatprep.subr.mxu1 %v7882_v1 }
 0x6cf   : > { %7234 = vmatpush3.msra.mxu1 %v6777_v26 }
 0x6d0   : > { %7238 = vmatprep.subr.mxu1 %v7882_v1 }
 0x788   : > { %v1517_v4 = vpop.f32.mrf.mxu1 }
 0x789   : > { %v1518_v5 = vadd.f32 %v1517_v4, %v1447_v3 }
 0x78a   : > { %v7207_v6 = vpop.f32.mrf.mxu1 }
 0x78b   : > { %v1521_v8 = vmax.f32 %v1518_v5, 0.0 }
 0x78d   : > { %7225 = vmatmul.mubr.msk.f32.vlgmr.msra.gmra.mxu0 %vm1526_vm5, %v1521_v8 }
 0x78e   : > { %7250 = vmatprep.mubr.msk.f32.mxu0 %vm7883_vm0, %v7882_v1 }
 0x84d   : > { %v1596_v14 = vpop.f32.mrf.mxu0 }
 0x84e   : > { %v1597_v15 = vadd.f32 %v1596_v14, %v1525_v13 }
 0x84f   : > { %v7226_v16 = vpop.f32.mrf.mxu0 }
 0x850   : > { %v1600_v17 = vadd.f32 %v1597_v15, %v1431_v61 }
 0x852   : > { %v1601_v18 = vsel %vm573_vm1, %v1600_v17, 0.0 }
 0x853   : > { %1602 = vadd.xlane.f32.xlu0 %v1601_v18 }
 0x8dc   : > { %v1603_v19 = vpop.xlane.xlu0 %1602 }
 0x8dd   : > { %v1604_v20 = vmul.f32 0.03125, %v1603_v19 }
 0x8df   : > { %v1605_v21 = vsub.f32 %v1600_v17, %v1604_v20 }
 0x8e1   : > { %v1606_v22 = vmul.f32 %v1605_v21, %v1605_v21 }
 0x8e3   : > { %v1607_v23 = vsel %vm573_vm1, %v1606_v22, 0.0 }
 0x8e4   : > { %1608 = vadd.xlane.f32.xlu0 %v1607_v23 }
 0x96d   : > { %v1609_v27 = vpop.xlane.xlu0 %1608 }
 0x96e   : > { %v1610_v28 = vmul.f32 0.03125, %v1609_v27 }
 0x970   : > { %v1611_v29 = vadd.f32 1e-05, %v1610_v28 }
 0x972   : > { %7722 = vrsqrt.f32 %v1611_v29 }
 0x97f   : > { %v7723_v30 = vpop.eup %7722 }
 0x980   : > { %v1613_v32 = vmul.f32 %v7723_v30, %v1605_v21 }
 0x982   : > { %v1614_v33 = vmul.f32 %v1613_v32, %v1425_v56 }
 0x984   : > { %v8281_v34 = vadd.f32 %v1614_v33, %v1430_v59 }
 0x986   : > { %7236 = vmatmul.mubr.msk.f32.vlgmr.msra.gmra.mxu1 %vm573_vm1, %v8281_v34 }
 0x987   : > { %7240 = vmatprep.mubr.msk.f32.mxu1 %vm7883_vm0, %v7882_v1 }
 0xa46   : > { %v1696_v37 = vpop.f32.mrf.mxu1 }
 0xa47   : > { %v8294_v38 = vadd.f32 %v1696_v37, %v1626_v36 }
 0xa48   : > { %v7237_v39 = vpop.f32.mrf.mxu1 }
 0xa49   : > { %1873 = vrot.lane.b32.xlu0 %v8294_v38, %s9233_s23  ;;  %1707 = vrot.lane.b32.xlu1 %v8294_v38, %s9274_s21  ;;  %v1700_v40 = vmul.f32 0.35355338, %v8294_v38  ;;  %s9282_s23 = smov 48  }
 0xa4d   : > { %2036 = vrot.lane.b32.xlu0 %v1700_v40, %s9275_s29  ;;  %1871 = vrot.lane.b32.xlu1 %v1700_v40, %s9276_s20 }
 0xa51   : > { %2201 = vrot.lane.b32.xlu0 %v1700_v40, %s9277_s22  ;;  %2038 = vrot.lane.b32.xlu1 %v8294_v38, %s9278_s19 }
 0xa55   : > { %2203 = vrot.lane.b32.xlu1 %v8294_v38, %s9279_s0 }
 0xabb   : > { %v1874_v41 = vpop.permute.xlu0 %1873  ;;  %v1708_v42 = vpop.permute.xlu1 %1707 }
 0xabc   : > { %7239 = vmatpush3.xpose.msk.msra.mxu1 %vm655_vm2, %v1708_v42  ;;  %7249 = vmatpush3.xpose.msk.msra.mxu0 %vm655_vm2, %v1874_v41  ;;  %v6785_v42 = vld [vmem:[%s9271_s5 + $0x38] sm:$0xff] }
 0xabd   : > { %7258 = vmatprep.subr.mxu0 %v7882_v1  ;;  %7243 = vmatprep.subr.mxu1 %v7882_v1 }
 0xabf   : > { %v1872_v43 = vpop.permute.xlu1 %1871  ;;  %7241 = vmatmul.mubr.msk.f32.vlgmr.msra.gmra.mxu1 %vm655_vm2, %v1700_v40  ;;  %v2037_v7 = vpop.permute.xlu0 %2036 }
 0xac0   : > { %7251 = vmatmul.mubr.msk.f32.vlgmr.msra.gmra.mxu0 %vm655_vm2, %v1872_v43  ;;  %7245 = vmatprep.mubr.msk.f32.mxu1 %vm7883_vm0, %v7882_v1 }
 0xac1   : > { %7260 = vmatprep.mubr.msk.f32.mxu0 %vm7883_vm0, %v7882_v1 }
 0xac3   : > { %v2039_v44 = vpop.permute.xlu1 %2038  ;;  %v2202_v46 = vpop.permute.xlu0 %2201 }
 0xac4   : > { %7259 = vmatpush3.xpose.msk.msra.mxu0 %vm655_vm2, %v2039_v44 }
 0xac5   : > { %7268 = vmatprep.subr.mxu0 %v7882_v1 }
 0xac7   : > { %7261 = vmatmul.mubr.msk.f32.vlgmr.msra.gmra.mxu0 %vm655_vm2, %v2037_v7  ;;  %v2204_v45 = vpop.permute.xlu1 %2203 }
 0xac8   : > { %7269 = vmatpush3.xpose.msk.msra.mxu0 %vm655_vm2, %v2204_v45  ;;  %7270 = vmatprep.mubr.msk.f32.mxu0 %vm7883_vm0, %v7882_v1 }
 0xac9   : > { %7278 = vmatprep.subr.mxu0 %v7882_v1 }
 0xacb   : > { %7271 = vmatmul.mubr.msk.f32.vlgmr.msra.gmra.mxu0 %vm655_vm2, %v2202_v46  ;;  %v6784_v46 = vld [vmem:[%s9271_s5 + $0x30] sm:$0xff] }
 0xacc   : > { %7286 = vmatprep.mubr.msk.f32.mxu0 %vm7883_vm0, %v7882_v1  ;;  %7279 = vmatpush3.msra.mxu0 %v6785_v42  ;;  %v6804_v42 = vld [vmem:[%s9273_s7 + $0x48] sm:$0xff] }
 0xacd   : > { %7280 = vmatprep.subr.mxu0 %v7882_v1 }
 0xace   : > { %7281 = vmatpush3.msra.mxu0 %v6784_v46 }
 0xacf   : > { %7282 = vmatprep.subr.mxu0 %v7882_v1 }
 0xb7f   : > { %v1780_v47 = vpop.f32.mrf.mxu1 }
 0xb80   : > { %v1945_v48 = vpop.f32.mrf.mxu0  ;;  %v1784_v49 = vsel %vm655_vm2, %v1780_v47, -inf }
 0xb81   : > { %1785 = vmax.xlane.f32.xlu1 %v1784_v49  ;;  %v7242_v50 = vpop.f32.mrf.mxu1  ;;  %v1949_v51 = vsel %vm655_vm2, %v1945_v48, -inf }
 0xb82   : > { %1950 = vmax.xlane.f32.xlu0 %v1949_v51  ;;  %v7252_v52 = vpop.f32.mrf.mxu0 }
 0xb87   : > { %v2110_v53 = vpop.f32.mrf.mxu0 }
 0xb88   : > { %v2114_v56 = vsel %vm655_vm2, %v2110_v53, -inf }
 0xb89   : > { %2115 = vmax.xlane.f32.xlu0 %v2114_v56  ;;  %v7262_v57 = vpop.f32.mrf.mxu0 }
 0xb8b   : > { %v2275_v58 = vpop.f32.mrf.mxu0 }
 0xb8c   : > { %v2279_v59 = vsel %vm655_vm2, %v2275_v58, -inf }
 0xb8d   : > { %v7272_v60 = vpop.f32.mrf.mxu0  ;;  %2280 = vmax.xlane.f32.xlu1 %v2279_v59 }
 0xb9e   : > { %1960 = vrot.lane.b32.xlu1 %v8294_v38, %s9280_s18 }
 0xc0a   : > { %v1786_v61 = vpop.xlane.xlu1 %1785 }
 0xc0b   : > { %v1787_v62 = vsub.f32 %v1780_v47, %v1786_v61  ;;  %v1951_v63 = vpop.xlane.xlu0 %1950  ;;  %v6783_v47 = vld [vmem:[%s9271_s5 + $0x28] sm:$0xff]  ;;  %v2384_v61 = vrot.slane %v8290_v35, %v8182_v31 }
 0xc0c   : > { %v1952_v0 = vsub.f32 %v1945_v48, %v1951_v63  ;;  %7283 = vmatpush3.msra.mxu0 %v6783_v47  ;;  %v6782_v48 = vld [vmem:[%s9271_s5 + $0x20] sm:$0xff]  ;;  %s9291_s5 = sld [smem:[#allocation23_spill]] }
 0xc0d   : > { %v1788_v3 = vmul.f32 1.442695, %v1787_v62  ;;  %7284 = vmatprep.subr.mxu0 %v7882_v1  ;;  %v8489_v47 = vld [vmem:[%s9200_s16] sm:$0xff] }
 0xc0e   : > { %v1953_v4 = vmul.f32 1.442695, %v1952_v0  ;;  %7285 = vmatpush3.msra.mxu0 %v6782_v48 }
 0xc0f   : > { %7724 = vpow2.f32 %v1788_v3  ;;  %7300 = vmatprep.subr.mxu0 %v7882_v1 }
 0xc10   : > { %7726 = vpow2.f32 %v1953_v4 }
 0xc12   : > { %v2116_v19 = vpop.xlane.xlu0 %2115 }
 0xc13   : > { %v2117_v20 = vsub.f32 %v2110_v53, %v2116_v19  ;;  %v6809_v19 = vld [vmem:[%s9273_s7 + $0x70] sm:$0xff] }
 0xc15   : > { %v2118_v21 = vmul.f32 1.442695, %v2117_v20  ;;  %v6808_v20 = vld [vmem:[%s9273_s7 + $0x68] sm:$0xff] }
 0xc16   : > { %v2281_v5 = vpop.xlane.xlu1 %2280 }
 0xc17   : > { %v2282_v6 = vsub.f32 %v2275_v58, %v2281_v5 }
 0xc19   : > { %v2283_v8 = vmul.f32 1.442695, %v2282_v6 }
 0xc1a   : > { %v1961_v24 = vpop.permute.xlu1 %1960 }
 0xc1b   : > { %7728 = vpow2.f32 %v2283_v8 }
 0xc1c   : > { %v7725_v13 = vpop.eup %7724  ;;  %7730 = vpow2.f32 %v2118_v21  ;;  %v6807_v21 = vld [vmem:[%s9273_s7 + $0x60] sm:$0xff] }
 0xc1d   : > { %v7727_v14 = vpop.eup %7726  ;;  %v1790_v15 = vsel %vm655_vm2, %v7725_v13, 0.0 }
 0xc1e   : > { %1791 = vadd.xlane.f32.xlu0 %v1790_v15  ;;  %v1955_v16 = vsel %vm655_vm2, %v7727_v14, 0.0  ;;  %v6802_v15 = vld [vmem:[%s9272_s6 + $0x38] sm:$0xff] }
 0xc1f   : > { %1956 = vadd.xlane.f32.xlu1 %v1955_v16  ;;  %v6801_v16 = vld [vmem:[%s9272_s6 + $0x30] sm:$0xff] }
 0xc28   : > { %v7729_v17 = vpop.eup %7728 }
 0xc29   : > { %v2285_v18 = vsel %vm655_vm2, %v7729_v17, 0.0  ;;  %v7731_v22 = vpop.eup %7730 }
 0xc2a   : > { %2286 = vadd.xlane.f32.xlu1 %v2285_v18  ;;  %v2120_v23 = vsel %vm655_vm2, %v7731_v22, 0.0  ;;  %v6810_v18 = vld [vmem:[%s9273_s7 + $0x78] sm:$0xff] }
 0xc34   : > { %1795 = vrot.lane.b32.xlu0 %v8294_v38, %s9281_s26 }
 0xc3b   : > { %2125 = vrot.lane.b32.xlu1 %v8294_v38, %s9282_s23 }
 0xc53   : > { %2121 = vadd.xlane.f32.xlu0 %v2120_v23 }
 0xc69   : > { %2290 = vrot.lane.b32.xlu0 %v8294_v38, %s9283_s2 }
 0xca7   : > { %v1792_v11 = vpop.xlane.xlu0 %1791 }
 0xca8   : > { %7732 = vrcp.f32 %v1792_v11  ;;  %v1957_v25 = vpop.xlane.xlu1 %1956 }
 0xca9   : > { %7734 = vrcp.f32 %v1957_v25  ;;  %v8428_v25 = vrot.slane %v8290_v35, %v8226_v54 }
 0xcab   : > { %v1796_v26 = vpop.permute.xlu0 %1795 }
 0xcac   : > { %7244 = vmatpush3.msra.mxu1 %v1796_v26 }
 0xcad   : > { %7253 = vmatprep.subr.mxu1 %v7882_v1 }
 0xcb3   : > { %v2287_v28 = vpop.xlane.xlu1 %2286 }
 0xcb5   : > { %v7733_v27 = vpop.eup %7732 }
 0xcb6   : > { %v1794_v29 = vmul.f32 %v7733_v27, %v7725_v13  ;;  %v7735_v30 = vpop.eup %7734 }
 0xcb7   : > { %v1959_v32 = vmul.f32 %v7735_v30, %v7727_v14  ;;  %v2126_v33 = vpop.permute.xlu1 %2125 }
 0xcb8   : > { %7246 = vmatmul.mubr.msk.f32.vlgmr.msra.gmra.mxu1 %vm655_vm2, %v1794_v29 }
 0xcb9   : > { %7254 = vmatpush3.msra.mxu1 %v1961_v24  ;;  %7255 = vmatprep.mubr.msk.f32.mxu1 %vm7883_vm0, %v7882_v1 }
 0xcba   : > { %7263 = vmatprep.subr.mxu1 %v7882_v1 }
 0xcbc   : > { %7256 = vmatmul.mubr.msk.f32.vlgmr.msra.gmra.mxu1 %vm655_vm2, %v1959_v32  ;;  %v2675_v32 = vld [vmem:[%s9193_s9 + $0x18] sm:$0xff] }
 0xcbd   : > { %7264 = vmatpush3.msra.mxu1 %v2126_v33  ;;  %7265 = vmatprep.mubr.msk.f32.mxu1 %vm7883_vm0, %v7882_v1  ;;  %v2674_v33 = vld [vmem:[%s9193_s9 + $0x10] sm:$0xff] }
 0xcbe   : > { %7273 = vmatprep.subr.mxu1 %v7882_v1 }
 0xcdc   : > { %v2122_v36 = vpop.xlane.xlu0 %2121 }
 0xcdd   : > { %7736 = vrcp.f32 %v2122_v36  ;;  %v2667_v36 = vld [vmem:[%s560_s15] sm:$0xff] }
 0xcde   : > { %7738 = vrcp.f32 %v2287_v28  ;;  %v8432_v28 = vrot.slane %v8290_v35, %v8229_v55 }
 0xce0   : > { %v2291_v40 = vpop.permute.xlu0 %2290 }
 0xcea   : > { %v7737_v37 = vpop.eup %7736 }
 0xceb   : > { %v2124_v38 = vmul.f32 %v7737_v37, %v7731_v22  ;;  %v7739_v39 = vpop.eup %7738  ;;  %v6806_v22 = vld [vmem:[%s9273_s7 + $0x58] sm:$0xff]  ;;  %v2668_v37 = vld [vmem:[%s9289_s3] sm:$0xff] }
 0xcec   : > { %v2289_v41 = vmul.f32 %v7739_v39, %v7729_v17  ;;  %v6799_v17 = vld [vmem:[%s9272_s6 + $0x20] sm:$0xff] }
 0xced   : > { %7266 = vmatmul.mubr.msk.f32.vlgmr.msra.gmra.mxu1 %vm655_vm2, %v2124_v38  ;;  %v2673_v38 = vld [vmem:[%s9193_s9 + $0x8] sm:$0xff]  ;;  %v2672_v39 = vld [vmem:[%s9193_s9] sm:$0xff] }
 0xcee   : > { %7274 = vmatpush3.msra.mxu1 %v2291_v40  ;;  %7275 = vmatprep.mubr.msk.f32.mxu1 %vm7883_vm0, %v7882_v1  ;;  %v8464_v40 = vadd.f32 %v2668_v37, %v2667_v36 }
 0xcef   : > { %7289 = vmatprep.subr.mxu1 %v7882_v1 }
 0xcf1   : > { %7276 = vmatmul.mubr.msk.f32.vlgmr.msra.gmra.mxu1 %vm655_vm2, %v2289_v41  ;;  %v6805_v41 = vld [vmem:[%s9273_s7 + $0x50] sm:$0xff] }
 0xcf2   : > { %7297 = vmatprep.mubr.msk.f32.mxu1 %vm7883_vm0, %v7882_v1  ;;  %7290 = vmatpush3.msra.mxu1 %v6802_v15 }
 0xcf3   : > { %7291 = vmatprep.subr.mxu1 %v7882_v1 }
 0xcf4   : > { %7292 = vmatpush3.msra.mxu1 %v6801_v16 }
 0xcf5   : > { %7293 = vmatprep.subr.mxu1 %v7882_v1 }
 0xd78   : > { %v1867_v43 = vpop.f32.mrf.mxu1 }
 0xd7a   : > { %v7247_v44 = vpop.f32.mrf.mxu1 }
 0xd7b   : > { %v2499_v44 = vrot.slane %v8290_v35, %v8251_v2 }
 0xd7c   : > { %v2032_v7 = vpop.f32.mrf.mxu1 }
 0xd7d   : > { %2367 = vrot.lane.b32.xlu1 %v2032_v7, %s9284_s24 }
 0xd7e   : > { %v7257_v45 = vpop.f32.mrf.mxu1 }
 0xdad   : > { %v2197_v49 = vpop.f32.mrf.mxu1 }
 0xdae   : > { %2371 = vrot.lane.b32.xlu0 %v2197_v49, %s9285_s17  ;;  %v2679_v49 = vrot.slane %v8489_v47, %v8081_v10 }
 0xdaf   : > { %v7267_v50 = vpop.f32.mrf.mxu1 }
 0xdb1   : > { %v2362_v51 = vpop.f32.mrf.mxu1 }
 0xdb2   : > { %2375 = vrot.lane.b32.xlu1 %v2362_v51, %s9286_s27 }
 0xdb3   : > { %v7277_v52 = vpop.f32.mrf.mxu1 }
 0xdef   : > { %v2368_v53 = vpop.permute.xlu1 %2367 }
 0xdf0   : > { %v2378_v57 = vsel %vm655_vm2, %v1867_v43, %v2368_v53  ;;  %v6803_v43 = vld [vmem:[%s9273_s7 + $0x40] sm:$0xff]  ;;  %s9294_s7 = sld [smem:[#allocation6_spill]] }
 0xe20   : > { %v2372_v56 = vpop.permute.xlu0 %2371 }
 0xe21   : > { %v2379_v58 = vsel %vm1326_vm3, %v2378_v57, %v2372_v56 }
 0xe24   : > { %v2376_v59 = vpop.permute.xlu1 %2375 }
 0xe25   : > { %v2380_v60 = vsel %vm1328_vm4, %v2379_v58, %v2376_v59 }
 0xe26   : > { %7287 = vmatmul.mubr.msk.f32.vlgmr.msra.gmra.mxu0 %vm573_vm1, %v2380_v60 }
 0xe27   : > { %7316 = vmatprep.mubr.msk.f32.mxu0 %vm7883_vm0, %v7882_v1  ;;  %7301 = vmatpush3.msra.mxu0 %v6810_v18 }
 0xe28   : > { %7302 = vmatprep.subr.mxu0 %v7882_v1 }
 0xe29   : > { %7303 = vmatpush3.msra.mxu0 %v6809_v19 }
 0xe2a   : > { %7304 = vmatprep.subr.mxu0 %v7882_v1 }
 0xe2b   : > { %7305 = vmatpush3.msra.mxu0 %v6808_v20 }
 0xe2c   : > { %7306 = vmatprep.subr.mxu0 %v7882_v1 }
 0xe2d   : > { %7307 = vmatpush3.msra.mxu0 %v6807_v21 }
 0xe2e   : > { %7308 = vmatprep.subr.mxu0 %v7882_v1 }
 0xe2f   : > { %7309 = vmatpush3.msra.mxu0 %v6806_v22 }
 0xe30   : > { %7310 = vmatprep.subr.mxu0 %v7882_v1 }
 0xe31   : > { %7311 = vmatpush3.msra.mxu0 %v6805_v41 }
 0xe32   : > { %7312 = vmatprep.subr.mxu0 %v7882_v1 }
 0xe33   : > { %7313 = vmatpush3.msra.mxu0 %v6804_v42 }
 0xe34   : > { %7314 = vmatprep.subr.mxu0 %v7882_v1 }
 0xe35   : > { %7315 = vmatpush3.msra.mxu0 %v6803_v43 }
 0xe36   : > { %7340 = vmatprep.subr.mxu0 %v7882_v1 }
 0xee6   : > { %v2454_v62 = vpop.f32.mrf.mxu0 }
 0xee7   : > { %v2455_v63 = vadd.f32 %v2454_v62, %v2384_v61 }
 0xee8   : > { %v7288_v0 = vpop.f32.mrf.mxu0 }
 0xee9   : > { %v2458_v3 = vadd.f32 %v2455_v63, %v8281_v34  ;;  %v6800_v34 = vld [vmem:[%s9272_s6 + $0x28] sm:$0xff]  ;;  %s9290_s6 = smov 88  }
 0xeea   : > { %7294 = vmatpush3.msra.mxu1 %v6800_v34 }
 0xeeb   : > { %v2459_v4 = vsel %vm573_vm1, %v2458_v3, 0.0  ;;  %7295 = vmatprep.subr.mxu1 %v7882_v1 }
 0xeec   : > { %2460 = vadd.xlane.f32.xlu0 %v2459_v4  ;;  %7296 = vmatpush3.msra.mxu1 %v6799_v17 }
 0xeed   : > { %7319 = vmatprep.subr.mxu1 %v7882_v1 }
 0xf75   : > { %v2461_v5 = vpop.xlane.xlu0 %2460 }
 0xf76   : > { %v2462_v6 = vmul.f32 0.03125, %v2461_v5 }
 0xf78   : > { %v2463_v8 = vsub.f32 %v2458_v3, %v2462_v6 }
 0xf7a   : > { %v2464_v13 = vmul.f32 %v2463_v8, %v2463_v8 }
 0xf7c   : > { %v2465_v14 = vsel %vm573_vm1, %v2464_v13, 0.0 }
 0xf7d   : > { %2466 = vadd.xlane.f32.xlu1 %v2465_v14 }
0x1006   : > { %v2467_v23 = vpop.xlane.xlu1 %2466 }
0x1007   : > { %v2468_v24 = vmul.f32 0.03125, %v2467_v23 }
0x1009   : > { %v2469_v11 = vadd.f32 1e-05, %v2468_v24 }
0x100b   : > { %7740 = vrsqrt.f32 %v2469_v11 }
0x1018   : > { %v7741_v26 = vpop.eup %7740 }
0x1019   : > { %v2471_v27 = vmul.f32 %v7741_v26, %v2463_v8 }
0x101b   : > { %v2476_v29 = vmul.f32 %v8428_v25, %v2471_v27 }
0x101d   : > { %v8441_v30 = vadd.f32 %v8432_v28, %v2476_v29 }
0x101f   : > { %7298 = vmatmul.mubr.msk.f32.vlgmr.msra.gmra.mxu1 %vm573_vm1, %v8441_v30 }
0x1020   : > { %7320 = vmatpush3.msra.mxu1 %v2675_v32  ;;  %7327 = vmatprep.mubr.msk.f32.mxu1 %vm7883_vm0, %v7882_v1 }
0x1021   : > { %7321 = vmatprep.subr.mxu1 %v7882_v1 }
0x1022   : > { %7322 = vmatpush3.msra.mxu1 %v2674_v33 }
0x1023   : > { %7323 = vmatprep.subr.mxu1 %v7882_v1 }
0x1024   : > { %7324 = vmatpush3.msra.mxu1 %v2673_v38 }
0x1025   : > { %7325 = vmatprep.subr.mxu1 %v7882_v1 }
0x1026   : > { %7326 = vmatpush3.msra.mxu1 %v2672_v39 }
0x1027   : > { %7328 = vmatmul.mubr.msk.f32.vlgmr.msra.gmra.mxu1 %vm573_vm1, %v8464_v40  ;;  %7330 = vmatprep.subr.mxu1 %v7882_v1 }
0x1028   : > { %7332 = vmatprep.mubr.msk.f32.mxu1 %vm7883_vm0, %v7882_v1 }
0x10df   : > { %v2569_v7 = vpop.f32.mrf.mxu1 }
0x10e0   : > { %v2570_v45 = vadd.f32 %v2569_v7, %v2499_v44 }
0x10e1   : > { %v7299_v46 = vpop.f32.mrf.mxu1 }
0x10e2   : > { %v2573_v48 = vmax.f32 %v2570_v45, 0.0 }
0x10e4   : > { %7317 = vmatmul.mubr.msk.f32.vlgmr.msra.gmra.mxu0 %vm1526_vm5, %v2573_v48 }
0x10e5   : > { %7342 = vmatprep.mubr.msk.f32.mxu0 %vm7883_vm0, %v7882_v1 }
0x10e7   : > { %v2749_v50 = vpop.f32.mrf.mxu1 }
0x10e8   : > { %v8496_v51 = vadd.f32 %v2749_v50, %v2679_v49 }
0x10e9   : > { %v7329_v52 = vpop.f32.mrf.mxu1 }
0x10ea   : > { %2925 = vrot.lane.b32.xlu1 %v8496_v51, %s9290_s6  ;;  %2759 = vrot.lane.b32.xlu0 %v8496_v51, %s9274_s21  ;;  %v2753_v53 = vmul.f32 0.35355338, %v8496_v51 }
0x10ee   : > { %3090 = vrot.lane.b32.xlu1 %v8496_v51, %s9278_s19  ;;  %2923 = vrot.lane.b32.xlu0 %v2753_v53, %s9276_s20 }
0x10f2   : > { %3255 = vrot.lane.b32.xlu1 %v8496_v51, %s9279_s0  ;;  %3088 = vrot.lane.b32.xlu0 %v2753_v53, %s9275_s29 }
0x10f6   : > { %3253 = vrot.lane.b32.xlu0 %v2753_v53, %s9277_s22 }
0x115c   : > { %v2926_v56 = vpop.permute.xlu1 %2925  ;;  %v2760_v57 = vpop.permute.xlu0 %2759 }
0x115d   : > { %7331 = vmatpush3.xpose.msk.msra.mxu1 %vm655_vm2, %v2760_v57  ;;  %7341 = vmatpush3.xpose.msk.msra.mxu0 %vm655_vm2, %v2926_v56 }
0x115e   : > { %7350 = vmatprep.subr.mxu0 %v7882_v1  ;;  %7335 = vmatprep.subr.mxu1 %v7882_v1 }
0x1160   : > { %v3091_v58 = vpop.permute.xlu1 %3090  ;;  %v2924_v59 = vpop.permute.xlu0 %2923  ;;  %7333 = vmatmul.mubr.msk.f32.vlgmr.msra.gmra.mxu1 %vm655_vm2, %v2753_v53 }
0x1161   : > { %7343 = vmatmul.mubr.msk.f32.vlgmr.msra.gmra.mxu0 %vm655_vm2, %v2924_v59  ;;  %7337 = vmatprep.mubr.msk.f32.mxu1 %vm7883_vm0, %v7882_v1 }
0x1162   : > { %7351 = vmatpush3.xpose.msk.msra.mxu0 %vm655_vm2, %v3091_v58  ;;  %7352 = vmatprep.mubr.msk.f32.mxu0 %vm7883_vm0, %v7882_v1 }
0x1163   : > { %7360 = vmatprep.subr.mxu0 %v7882_v1 }
0x1164   : > { %v3256_v60 = vpop.permute.xlu1 %3255  ;;  %v3089_v61 = vpop.permute.xlu0 %3088 }
0x1165   : > { %7353 = vmatmul.mubr.msk.f32.vlgmr.msra.gmra.mxu0 %vm655_vm2, %v3089_v61 }
0x1166   : > { %7361 = vmatpush3.xpose.msk.msra.mxu0 %vm655_vm2, %v3256_v60  ;;  %7362 = vmatprep.mubr.msk.f32.mxu0 %vm7883_vm0, %v7882_v1 }
0x1167   : > { %7370 = vmatprep.subr.mxu0 %v7882_v1 }
0x1168   : > { %v3254_v62 = vpop.permute.xlu0 %3253 }
0x1169   : > { %7363 = vmatmul.mubr.msk.f32.vlgmr.msra.gmra.mxu0 %vm655_vm2, %v3254_v62 }
0x116a   : > { %7378 = vmatprep.mubr.msk.f32.mxu0 %vm7883_vm0, %v7882_v1 }
0x11a4   : > { %v8530_v63 = vpop.f32.mrf.mxu0 }
0x11a6   : > { %v7318_v0 = vpop.f32.mrf.mxu0 }
0x11a7   : > { %v2757_v0 = vld [vmem:[%s9194_s10 + $0x18] sm:$0xff] }
0x11a8   : > { %7371 = vmatpush3.msra.mxu0 %v2757_v0 }
0x11a9   : > { %7372 = vmatprep.subr.mxu0 %v7882_v1 }
0x1220   : > { %v2832_v3 = vpop.f32.mrf.mxu1 }
0x1221   : > { %v2997_v4 = vpop.f32.mrf.mxu0  ;;  %v2836_v5 = vsel %vm655_vm2, %v2832_v3, -inf }
0x1222   : > { %2837 = vmax.xlane.f32.xlu1 %v2836_v5  ;;  %v7334_v6 = vpop.f32.mrf.mxu1  ;;  %v3001_v8 = vsel %vm655_vm2, %v2997_v4, -inf }
0x1223   : > { %3002 = vmax.xlane.f32.xlu0 %v3001_v8  ;;  %v7344_v13 = vpop.f32.mrf.mxu0  ;;  %v2756_v8 = vld [vmem:[%s9194_s10 + $0x10] sm:$0xff] }
0x1224   : > { %v2755_v13 = vld [vmem:[%s9194_s10 + $0x8] sm:$0xff]  ;;  %7373 = vmatpush3.msra.mxu0 %v2756_v8  ;;  %v3531_v8 = vsub.s32 6, %v8078_v9 }
0x1225   : > { %v3162_v14 = vpop.f32.mrf.mxu0  ;;  %7374 = vmatprep.subr.mxu0 %v7882_v1 }
0x1226   : > { %v3166_v15 = vsel %vm655_vm2, %v3162_v14, -inf  ;;  %7375 = vmatpush3.msra.mxu0 %v2755_v13  ;;  %v3527_v13 = vrot.slane %v8489_v47, %v8259_v12 }
0x1227   : > { %3167 = vmax.xlane.f32.xlu0 %v3166_v15  ;;  %v7354_v16 = vpop.f32.mrf.mxu0  ;;  %7376 = vmatprep.subr.mxu0 %v7882_v1 }
0x1229   : > { %v3327_v34 = vpop.f32.mrf.mxu0 }
0x122a   : > { %v3331_v17 = vsel %vm655_vm2, %v3327_v34, -inf }
0x122b   : > { %v7364_v18 = vpop.f32.mrf.mxu0  ;;  %3332 = vmax.xlane.f32.xlu1 %v3331_v17 }
0x122c   : > { %v2577_v18 = vrot.slane %v8290_v35, %v8259_v12 }
0x123c   : > { %3012 = vrot.lane.b32.xlu1 %v8496_v51, %s9280_s18 }
0x12ab   : > { %v2838_v19 = vpop.xlane.xlu1 %2837 }
0x12ac   : > { %v2839_v20 = vsub.f32 %v2832_v3, %v2838_v19  ;;  %v3003_v21 = vpop.xlane.xlu0 %3002  ;;  %v2648_v19 = vadd.f32 %v8530_v63, %v2577_v18 }
0x12ad   : > { %v3004_v22 = vsub.f32 %v2997_v4, %v3003_v21 }
0x12ae   : > { %v2840_v23 = vmul.f32 1.442695, %v2839_v20  ;;  %v2651_v20 = vadd.f32 %v2648_v19, %v8441_v30  ;;  %v3541_v19 = vrot.slane %v8489_v47, %v8226_v54 }
0x12af   : > { %v3005_v24 = vmul.f32 1.442695, %v3004_v22 }
0x12b0   : > { %7742 = vpow2.f32 %v2840_v23  ;;  %v3168_v39 = vpop.xlane.xlu0 %3167  ;;  %v2652_v21 = vsel %vm573_vm1, %v2651_v20, 0.0 }
0x12b1   : > { %7744 = vpow2.f32 %v3005_v24  ;;  %v3169_v41 = vsub.f32 %v3162_v14, %v3168_v39  ;;  %v2754_v14 = vld [vmem:[%s9194_s10] sm:$0xff]  ;;  %v3436_v39 = vrot.slane %v8489_v47, %v8182_v31 }
0x12b2   : > { %7377 = vmatpush3.msra.mxu0 %v2754_v14 }
0x12b3   : > { %v3170_v42 = vmul.f32 1.442695, %v3169_v41  ;;  %7392 = vmatprep.subr.mxu0 %v7882_v1 }
0x12b4   : > { %v3333_v11 = vpop.xlane.xlu1 %3332 }
0x12b5   : > { %v3334_v26 = vsub.f32 %v3327_v34, %v3333_v11 }
0x12b7   : > { %v3335_v27 = vmul.f32 1.442695, %v3334_v26 }
0x12b8   : > { %v3013_v7 = vpop.permute.xlu1 %3012 }
0x12b9   : > { %7746 = vpow2.f32 %v3335_v27 }
0x12ba   : > { %7748 = vpow2.f32 %v3170_v42 }
0x12bd   : > { %v7743_v29 = vpop.eup %7742 }
0x12be   : > { %v7745_v32 = vpop.eup %7744  ;;  %v2842_v33 = vsel %vm655_vm2, %v7743_v29, 0.0 }
0x12bf   : > { %2843 = vadd.xlane.f32.xlu0 %v2842_v33  ;;  %v3007_v36 = vsel %vm655_vm2, %v7745_v32, 0.0  ;;  %v3619_v33 = vld [vmem:[%s9196_s12 + $0x18] sm:$0xff] }
0x12c0   : > { %3008 = vadd.xlane.f32.xlu1 %v3007_v36  ;;  %v3618_v36 = vld [vmem:[%s9196_s12 + $0x10] sm:$0xff] }
0x12c6   : > { %v7747_v37 = vpop.eup %7746 }
0x12c7   : > { %v3337_v38 = vsel %vm655_vm2, %v7747_v37, 0.0  ;;  %v7749_v43 = vpop.eup %7748 }
0x12c8   : > { %3338 = vadd.xlane.f32.xlu1 %v3337_v38  ;;  %v3172_v44 = vsel %vm655_vm2, %v7749_v43, 0.0  ;;  %v3616_v38 = vld [vmem:[%s9196_s12] sm:$0xff] }
0x12d5   : > { %2847 = vrot.lane.b32.xlu0 %v8496_v51, %s9281_s26 }
0x12d9   : > { %3177 = vrot.lane.b32.xlu1 %v8496_v51, %s9282_s23 }
0x12f4   : > { %3173 = vadd.xlane.f32.xlu0 %v3172_v44 }
0x130a   : > { %3342 = vrot.lane.b32.xlu0 %v8496_v51, %s9283_s2 }
0x1348   : > { %v2844_v45 = vpop.xlane.xlu0 %2843 }
0x1349   : > { %7750 = vrcp.f32 %v2844_v45  ;;  %v3009_v46 = vpop.xlane.xlu1 %3008 }
0x134a   : > { %7752 = vrcp.f32 %v3009_v46 }
0x134c   : > { %v2848_v48 = vpop.permute.xlu0 %2847 }
0x134d   : > { %7336 = vmatpush3.msra.mxu1 %v2848_v48 }
0x134e   : > { %7345 = vmatprep.subr.mxu1 %v7882_v1 }
0x1351   : > { %v3339_v50 = vpop.xlane.xlu1 %3338 }
0x1355   : > { %v3178_v56 = vpop.permute.xlu1 %3177 }
0x1356   : > { %v7751_v49 = vpop.eup %7750 }
0x1357   : > { %v2846_v52 = vmul.f32 %v7751_v49, %v7743_v29  ;;  %v7753_v53 = vpop.eup %7752 }
0x1358   : > { %v3011_v51 = vmul.f32 %v7753_v53, %v7745_v32 }
0x1359   : > { %7338 = vmatmul.mubr.msk.f32.vlgmr.msra.gmra.mxu1 %vm655_vm2, %v2846_v52 }
0x135a   : > { %7346 = vmatpush3.msra.mxu1 %v3013_v7  ;;  %7347 = vmatprep.mubr.msk.f32.mxu1 %vm7883_vm0, %v7882_v1 }
0x135b   : > { %7355 = vmatprep.subr.mxu1 %v7882_v1 }
0x135d   : > { %7348 = vmatmul.mubr.msk.f32.vlgmr.msra.gmra.mxu1 %vm655_vm2, %v3011_v51 }
0x135e   : > { %7356 = vmatpush3.msra.mxu1 %v3178_v56  ;;  %7357 = vmatprep.mubr.msk.f32.mxu1 %vm7883_vm0, %v7882_v1 }
0x135f   : > { %7365 = vmatprep.subr.mxu1 %v7882_v1 }
0x137d   : > { %v3174_v57 = vpop.xlane.xlu0 %3173 }
0x137e   : > { %7754 = vrcp.f32 %v3174_v57 }
0x137f   : > { %7756 = vrcp.f32 %v3339_v50 }
0x1381   : > { %v3343_v61 = vpop.permute.xlu0 %3342 }
0x138b   : > { %v7755_v58 = vpop.eup %7754 }
0x138c   : > { %v3176_v59 = vmul.f32 %v7755_v58, %v7749_v43  ;;  %v7757_v60 = vpop.eup %7756 }
0x138d   : > { %v3341_v62 = vmul.f32 %v7757_v60, %v7747_v37  ;;  %v3617_v37 = vld [vmem:[%s9196_s12 + $0x8] sm:$0xff]  ;;  %v3534_v60 = vld [vmem:[%s9195_s11] sm:$0xff] }
0x138e   : > { %7358 = vmatmul.mubr.msk.f32.vlgmr.msra.gmra.mxu1 %vm655_vm2, %v3176_v59  ;;  %v3535_v59 = vld [vmem:[%s9195_s11 + $0x8] sm:$0xff] }
0x138f   : > { %7366 = vmatpush3.msra.mxu1 %v3343_v61  ;;  %7367 = vmatprep.mubr.msk.f32.mxu1 %vm7883_vm0, %v7882_v1  ;;  %v3623_v61 = vrot.slane %v8489_v47, %v8229_v55 }
0x1390   : > { %7381 = vmatprep.subr.mxu1 %v7882_v1 }
0x1392   : > { %7368 = vmatmul.mubr.msk.f32.vlgmr.msra.gmra.mxu1 %vm655_vm2, %v3341_v62 }
0x1393   : > { %7389 = vmatprep.mubr.msk.f32.mxu1 %vm7883_vm0, %v7882_v1 }
0x1419   : > { %v2919_v3 = vpop.f32.mrf.mxu1 }
0x141b   : > { %v7339_v4 = vpop.f32.mrf.mxu1 }
0x141d   : > { %v3084_v5 = vpop.f32.mrf.mxu1 }
0x141e   : > { %3419 = vrot.lane.b32.xlu1 %v3084_v5, %s9284_s24 }
0x141f   : > { %v7349_v6 = vpop.f32.mrf.mxu1 }
0x144e   : > { %v3249_v15 = vpop.f32.mrf.mxu1 }
0x144f   : > { %3423 = vrot.lane.b32.xlu0 %v3249_v15, %s9285_s17 }
0x1450   : > { %v7359_v16 = vpop.f32.mrf.mxu1 }
0x1451   : > { %v3532_v16 = vrot.slane %v8489_v47, %v3531_v8 }
0x1452   : > { %v3414_v34 = vpop.f32.mrf.mxu1 }
0x1453   : > { %3427 = vrot.lane.b32.xlu1 %v3414_v34, %s9286_s27 }
0x1454   : > { %v7369_v17 = vpop.f32.mrf.mxu1 }
0x146e   : > { %2653 = vadd.xlane.f32.xlu0 %v2652_v21 }
0x1490   : > { %v3420_v22 = vpop.permute.xlu1 %3419 }
0x1491   : > { %v3430_v24 = vsel %vm655_vm2, %v2919_v3, %v3420_v22 }
0x14c1   : > { %v3424_v23 = vpop.permute.xlu0 %3423 }
0x14c2   : > { %v3431_v11 = vsel %vm1326_vm3, %v3430_v24, %v3424_v23 }
0x14c5   : > { %v3428_v26 = vpop.permute.xlu1 %3427 }
0x14c6   : > { %v3432_v27 = vsel %vm1328_vm4, %v3431_v11, %v3428_v26 }
0x14c7   : > { %7379 = vmatmul.mubr.msk.f32.vlgmr.msra.gmra.mxu0 %vm573_vm1, %v3432_v27 }
0x14c8   : > { %7400 = vmatprep.mubr.msk.f32.mxu0 %vm7883_vm0, %v7882_v1  ;;  %7393 = vmatpush3.msra.mxu0 %v3619_v33 }
0x14c9   : > { %7394 = vmatprep.subr.mxu0 %v7882_v1 }
0x14ca   : > { %7395 = vmatpush3.msra.mxu0 %v3618_v36 }
0x14cb   : > { %7396 = vmatprep.subr.mxu0 %v7882_v1 }
0x14cc   : > { %7397 = vmatpush3.msra.mxu0 %v3617_v37 }
0x14cd   : > { %7398 = vmatprep.subr.mxu0 %v7882_v1 }
0x14ce   : > { %7399 = vmatpush3.msra.mxu0 %v3616_v38 }
0x14cf   : > { %7413 = vmatprep.subr.mxu0 %v7882_v1 }
0x14f7   : > { %v2654_v35 = vpop.xlane.xlu0 %2653 }
0x14f8   : > { %v2655_v63 = vmul.f32 0.03125, %v2654_v35 }
0x14fa   : > { %v2656_v30 = vsub.f32 %v2651_v20, %v2655_v63 }
0x14fc   : > { %v2657_v29 = vmul.f32 %v2656_v30, %v2656_v30 }
0x14fe   : > { %v2658_v32 = vsel %vm573_vm1, %v2657_v29, 0.0 }
0x14ff   : > { %2659 = vadd.xlane.f32.xlu0 %v2658_v32 }
0x1587   : > { %v3506_v41 = vpop.f32.mrf.mxu0 }
0x1588   : > { %v3507_v42 = vadd.f32 %v3506_v41, %v3436_v39  ;;  %v2660_v43 = vpop.xlane.xlu0 %2659 }
0x1589   : > { %v2661_v44 = vmul.f32 0.03125, %v2660_v43  ;;  %v7380_v7 = vpop.f32.mrf.mxu0 }
0x158a   : > { %v3510_v45 = vadd.f32 %v3507_v42, %v8464_v40 }
0x158b   : > { %v2662_v46 = vadd.f32 1e-05, %v2661_v44 }
0x158c   : > { %v3511_v48 = vsel %vm573_vm1, %v3510_v45, 0.0 }
0x158d   : > { %7758 = vrsqrt.f32 %v2662_v46  ;;  %3512 = vadd.xlane.f32.xlu1 %v3511_v48 }
0x159a   : > { %v7759_v49 = vpop.eup %7758 }
0x159b   : > { %v2664_v50 = vmul.f32 %v7759_v49, %v2656_v30 }
0x159d   : > { %v2665_v52 = vmul.f32 %v2664_v50, %v8428_v25  ;;  %v3537_v25 = vld [vmem:[%s9195_s11 + $0x18] sm:$0xff] }
0x159e   : > { %7382 = vmatpush3.msra.mxu1 %v3537_v25 }
0x159f   : > { %v8617_v53 = vadd.f32 %v2665_v52, %v8432_v28  ;;  %7383 = vmatprep.subr.mxu1 %v7882_v1  ;;  %v3536_v28 = vld [vmem:[%s9195_s11 + $0x10] sm:$0xff] }
0x15a0   : > { %7384 = vmatpush3.msra.mxu1 %v3536_v28 }
0x15a1   : > { %7401 = vmatmul.mubr.msk.f32.vlgmr.msra.gmra.mxu0 %vm573_vm1, %v8617_v53  ;;  %7385 = vmatprep.subr.mxu1 %v7882_v1 }
0x15a2   : > { %7415 = vmatprep.mubr.msk.f32.mxu0 %vm7883_vm0, %v7882_v1  ;;  %7386 = vmatpush3.msra.mxu1 %v3535_v59 }
0x15a3   : > { %7387 = vmatprep.subr.mxu1 %v7882_v1 }
0x15a4   : > { %7388 = vmatpush3.msra.mxu1 %v3534_v60 }
0x15a5   : > { %7403 = vmatprep.subr.mxu1 %v7882_v1 }
0x1616   : > { %v3513_v51 = vpop.xlane.xlu1 %3512 }
0x1617   : > { %v3514_v40 = vmul.f32 0.03125, %v3513_v51 }
0x1619   : > { %v3515_v56 = vsub.f32 %v3510_v45, %v3514_v40 }
0x161b   : > { %v3516_v57 = vmul.f32 %v3515_v56, %v3515_v56 }
0x161d   : > { %v3517_v58 = vsel %vm573_vm1, %v3516_v57, 0.0 }
0x161e   : > { %3518 = vadd.xlane.f32.xlu0 %v3517_v58 }
0x1661   : > { %v3693_v62 = vpop.f32.mrf.mxu0 }
0x1662   : > { %v8642_v0 = vadd.f32 %v3693_v62, %v3623_v61 }
0x1663   : > { %v7402_v3 = vpop.f32.mrf.mxu0 }
0x1664   : > { %3866 = vrot.lane.b32.xlu1 %v8642_v0, %s9276_s20 }
0x1668   : > { %4031 = vrot.lane.b32.xlu1 %v8642_v0, %s9275_s29 }
0x16a7   : > { %v3519_v4 = vpop.xlane.xlu0 %3518 }
0x16a8   : > { %v3520_v5 = vmul.f32 0.03125, %v3519_v4 }
0x16aa   : > { %v3521_v6 = vadd.f32 1e-05, %v3520_v5 }
0x16ac   : > { %7760 = vrsqrt.f32 %v3521_v6 }
0x16b9   : > { %v7761_v14 = vpop.eup %7760 }
0x16ba   : > { %v3523_v15 = vmul.f32 %v7761_v14, %v3515_v56 }
0x16bc   : > { %v3528_v34 = vmul.f32 %v3527_v13, %v3523_v15 }
0x16be   : > { %v8654_v17 = vadd.f32 %v3532_v16, %v3528_v34 }
0x16c0   : > { %7390 = vmatmul.mubr.msk.f32.vlgmr.msra.gmra.mxu1 %vm573_vm1, %v8654_v17 }
0x16c1   : > { %7404 = vmatpush3.xpose.msk.msra.mxu1 %vm655_vm2, %v8642_v0  ;;  %7405 = vmatprep.mubr.msk.f32.mxu1 %vm7883_vm0, %v7882_v1 }
0x16c2   : > { %7408 = vmatprep.subr.mxu1 %v7882_v1 }
0x16d6   : > { %v3867_v18 = vpop.permute.xlu1 %3866 }
0x16d7   : > { %7414 = vmatpush3.xpose.msk.msra.mxu0 %vm655_vm2, %v3867_v18 }
0x16d8   : > { %7423 = vmatprep.subr.mxu0 %v7882_v1 }
0x16da   : > { %v4032_v24 = vpop.permute.xlu1 %4031 }
0x1780   : > { %v3611_v20 = vpop.f32.mrf.mxu1 }
0x1781   : > { %v3612_v21 = vadd.f32 %v3611_v20, %v3541_v19 }
0x1782   : > { %v7391_v22 = vpop.f32.mrf.mxu1 }
0x1783   : > { %v3615_v23 = vmul.f32 0.35355338, %v3612_v21 }
0x1785   : > { %4029 = vrot.lane.b32.xlu1 %v3615_v23, %s9275_s29  ;;  %3864 = vrot.lane.b32.xlu0 %v3615_v23, %s9276_s20 }
0x1786   : > { %7406 = vmatmul.mubr.msk.f32.vlgmr.msra.gmra.mxu1 %vm655_vm2, %v3615_v23 }
0x1787   : > { %7410 = vmatprep.mubr.msk.f32.mxu1 %vm7883_vm0, %v7882_v1 }
0x1789   : > { %4194 = vrot.lane.b32.xlu1 %v3615_v23, %s9277_s22  ;;  %4196 = vrot.lane.b32.xlu0 %v8642_v0, %s9277_s22 }
0x17f7   : > { %v3865_v11 = vpop.permute.xlu0 %3864  ;;  %v4030_v26 = vpop.permute.xlu1 %4029 }
0x17f8   : > { %7416 = vmatmul.mubr.msk.f32.vlgmr.msra.gmra.mxu0 %vm655_vm2, %v3865_v11 }
0x17f9   : > { %7424 = vmatpush3.xpose.msk.msra.mxu0 %vm655_vm2, %v4032_v24  ;;  %7425 = vmatprep.mubr.msk.f32.mxu0 %vm7883_vm0, %v7882_v1 }
0x17fa   : > { %7433 = vmatprep.subr.mxu0 %v7882_v1 }
0x17fb   : > { %v4197_v27 = vpop.permute.xlu0 %4196  ;;  %v4195_v35 = vpop.permute.xlu1 %4194 }
0x17fc   : > { %7426 = vmatmul.mubr.msk.f32.vlgmr.msra.gmra.mxu0 %vm655_vm2, %v4030_v26 }
0x17fd   : > { %7434 = vmatpush3.xpose.msk.msra.mxu0 %vm655_vm2, %v4197_v27  ;;  %7435 = vmatprep.mubr.msk.f32.mxu0 %vm7883_vm0, %v7882_v1  ;;  %v3700_v27 = vld [vmem:[%s9197_s13 + $0x18] sm:$0xff] }
0x17fe   : > { %7443 = vmatprep.subr.mxu0 %v7882_v1 }
0x1800   : > { %7436 = vmatmul.mubr.msk.f32.vlgmr.msra.gmra.mxu0 %vm655_vm2, %v4195_v35  ;;  %v3699_v35 = vld [vmem:[%s9197_s13 + $0x10] sm:$0xff] }
0x1801   : > { %7451 = vmatprep.mubr.msk.f32.mxu0 %vm7883_vm0, %v7882_v1  ;;  %7444 = vmatpush3.msra.mxu0 %v3700_v27 }
0x1802   : > { %7445 = vmatprep.subr.mxu0 %v7882_v1 }
0x1803   : > { %7446 = vmatpush3.msra.mxu0 %v3699_v35 }
0x1804   : > { %7447 = vmatprep.subr.mxu0 %v7882_v1 }
0x1846   : > { %v3773_v63 = vpop.f32.mrf.mxu1 }
0x1847   : > { %v3777_v30 = vsel %vm655_vm2, %v3773_v63, -inf }
0x1848   : > { %3778 = vmax.xlane.f32.xlu0 %v3777_v30  ;;  %v7407_v29 = vpop.f32.mrf.mxu1  ;;  %v3697_v30 = vld [vmem:[%s9197_s13] sm:$0xff] }
0x18b8   : > { %v3938_v32 = vpop.f32.mrf.mxu0 }
0x18b9   : > { %v3942_v33 = vsel %vm655_vm2, %v3938_v32, -inf }
0x18ba   : > { %3943 = vmax.xlane.f32.xlu1 %v3942_v33  ;;  %v7417_v36 = vpop.f32.mrf.mxu0 }
0x18bc   : > { %v4103_v37 = vpop.f32.mrf.mxu0 }
0x18bd   : > { %v4107_v38 = vsel %vm655_vm2, %v4103_v37, -inf }
0x18be   : > { %v7427_v39 = vpop.f32.mrf.mxu0  ;;  %4108 = vmax.xlane.f32.xlu0 %v4107_v38 }
0x18c0   : > { %v4268_v41 = vpop.f32.mrf.mxu0 }
0x18c1   : > { %v4272_v42 = vsel %vm655_vm2, %v4268_v41, -inf }
0x18c2   : > { %v7437_v43 = vpop.f32.mrf.mxu0  ;;  %4273 = vmax.xlane.f32.xlu0 %v4272_v42 }
0x18cb   : > { %3788 = vrot.lane.b32.xlu1 %v8642_v0, %s9274_s21 }
0x18d1   : > { %v3779_v44 = vpop.xlane.xlu0 %3778 }
0x18d2   : > { %v3780_v7 = vsub.f32 %v3773_v63, %v3779_v44  ;;  %v3698_v63 = vld [vmem:[%s9197_s13 + $0x8] sm:$0xff] }
0x18d3   : > { %7448 = vmatpush3.msra.mxu0 %v3698_v63 }
0x18d4   : > { %v3781_v45 = vmul.f32 1.442695, %v3780_v7  ;;  %7449 = vmatprep.subr.mxu0 %v7882_v1 }
0x18d5   : > { %7450 = vmatpush3.msra.mxu0 %v3697_v30 }
0x18d6   : > { %7762 = vpow2.f32 %v3781_v45  ;;  %7465 = vmatprep.subr.mxu0 %v7882_v1  ;;  %v4377_v45 = vrot.slane %v8489_v47, %v8251_v2 }
0x18e3   : > { %v7763_v46 = vpop.eup %7762 }
0x18e4   : > { %v3783_v48 = vsel %vm655_vm2, %v7763_v46, 0.0 }
0x18ef   : > { %3784 = vadd.xlane.f32.xlu1 %v3783_v48 }
0x1943   : > { %v3944_v49 = vpop.xlane.xlu1 %3943 }
0x1944   : > { %v3945_v50 = vsub.f32 %v3938_v32, %v3944_v49 }
0x1946   : > { %v3946_v52 = vmul.f32 1.442695, %v3945_v50 }
0x1947   : > { %v3789_v51 = vpop.permute.xlu1 %3788  ;;  %v4109_v40 = vpop.xlane.xlu0 %4108 }
0x1948   : > { %7764 = vpow2.f32 %v3946_v52  ;;  %v4110_v56 = vsub.f32 %v4103_v37, %v4109_v40  ;;  %7409 = vmatpush3.msra.mxu1 %v3789_v51 }
0x1949   : > { %7418 = vmatprep.subr.mxu1 %v7882_v1 }
0x194a   : > { %v4111_v57 = vmul.f32 1.442695, %v4110_v56 }
0x194b   : > { %v4274_v58 = vpop.xlane.xlu0 %4273 }
0x194c   : > { %7766 = vpow2.f32 %v4111_v57  ;;  %v4275_v25 = vsub.f32 %v4268_v41, %v4274_v58 }
0x194e   : > { %v4276_v28 = vmul.f32 1.442695, %v4275_v25  ;;  %v4478_v25 = vld [vmem:[%s9291_s5 + $0x18] sm:$0xff] }
0x1950   : > { %7768 = vpow2.f32 %v4276_v28  ;;  %v4477_v28 = vld [vmem:[%s9291_s5 + $0x10] sm:$0xff] }
0x1955   : > { %v7765_v59 = vpop.eup %7764 }
0x1956   : > { %v3948_v60 = vsel %vm655_vm2, %v7765_v59, 0.0 }
0x1957   : > { %3949 = vadd.xlane.f32.xlu0 %v3948_v60  ;;  %v4486_v60 = vld [vmem:[%s9292_s25 + $0x38] sm:$0xff] }
0x1959   : > { %v7767_v61 = vpop.eup %7766 }
0x195a   : > { %v4113_v62 = vsel %vm655_vm2, %v7767_v61, 0.0 }
0x195b   : > { %4114 = vadd.xlane.f32.xlu1 %v4113_v62  ;;  %v4484_v62 = vld [vmem:[%s9293_s14 + $0x28] sm:$0xff] }
0x195d   : > { %v7769_v3 = vpop.eup %7768 }
0x195e   : > { %v4278_v4 = vsel %vm655_vm2, %v7769_v3, 0.0 }
0x195f   : > { %4279 = vadd.xlane.f32.xlu0 %v4278_v4  ;;  %v4482_v4 = vld [vmem:[%s9293_s14 + $0x18] sm:$0xff] }
0x196c   : > { %4118 = vrot.lane.b32.xlu1 %v8642_v0, %s9278_s19 }
0x1970   : > { %4283 = vrot.lane.b32.xlu1 %v8642_v0, %s9279_s0 }
0x1975   : > { %3953 = vrot.lane.b32.xlu0 %v8642_v0, %s9290_s6 }
0x1978   : > { %v3785_v5 = vpop.xlane.xlu1 %3784 }
0x1979   : > { %7770 = vrcp.f32 %v3785_v5 }
0x1986   : > { %v7771_v6 = vpop.eup %7770 }
0x1987   : > { %v3787_v13 = vmul.f32 %v7771_v6, %v7763_v46 }
0x1989   : > { %7411 = vmatmul.mubr.msk.f32.vlgmr.msra.gmra.mxu1 %vm655_vm2, %v3787_v13 }
0x198a   : > { %7420 = vmatprep.mubr.msk.f32.mxu1 %vm7883_vm0, %v7882_v1 }
0x19e0   : > { %v3950_v14 = vpop.xlane.xlu0 %3949 }
0x19e1   : > { %7772 = vrcp.f32 %v3950_v14  ;;  %v4467_v14 = vsub.s32 7, %v8078_v9  ;;  %v6900_v9 = vld [vmem:[%s9293_s14 + $0x48] sm:$0xff] }
0x19e4   : > { %v4115_v15 = vpop.xlane.xlu1 %4114 }
0x19e5   : > { %7774 = vrcp.f32 %v4115_v15  ;;  %v2671_v15 = vld [vmem:[%s9200_s16 + $0x8] sm:$0x1f] }
0x19e6   : > { %v4568_v35 = vrot.slane %v2671_v15, %v8251_v2 }
0x19e8   : > { %v4280_v16 = vpop.xlane.xlu0 %4279  ;;  %v4119_v0 = vpop.permute.xlu1 %4118 }
0x19e9   : > { %7776 = vrcp.f32 %v4280_v16  ;;  %v4468_v16 = vrot.slane %v8489_v47, %v4467_v14  ;;  %v4480_v47 = vld [vmem:[%s9293_s14 + $0x8] sm:$0xff] }
0x19ec   : > { %v3954_v34 = vpop.permute.xlu0 %3953  ;;  %v4284_v22 = vpop.permute.xlu1 %4283 }
0x19ed   : > { %7419 = vmatpush3.msra.mxu1 %v3954_v34 }
0x19ee   : > { %v7773_v18 = vpop.eup %7772  ;;  %7428 = vmatprep.subr.mxu1 %v7882_v1 }
0x19ef   : > { %v3952_v19 = vmul.f32 %v7773_v18, %v7765_v59  ;;  %v4475_v59 = vld [vmem:[%s9291_s5] sm:$0xff] }
0x19f1   : > { %7421 = vmatmul.mubr.msk.f32.vlgmr.msra.gmra.mxu1 %vm655_vm2, %v3952_v19 }
0x19f2   : > { %v7775_v20 = vpop.eup %7774  ;;  %7429 = vmatpush3.msra.mxu1 %v4119_v0  ;;  %7430 = vmatprep.mubr.msk.f32.mxu1 %vm7883_vm0, %v7882_v1  ;;  %v4473_v0 = vrot.slane %v2671_v15, %v8081_v10 }
0x19f3   : > { %7438 = vmatprep.subr.mxu1 %v7882_v1  ;;  %v4117_v21 = vmul.f32 %v7775_v20, %v7767_v61  ;;  %v4485_v61 = vld [vmem:[%s9293_s14 + $0x30] sm:$0xff] }
0x19f5   : > { %7431 = vmatmul.mubr.msk.f32.vlgmr.msra.gmra.mxu1 %vm655_vm2, %v4117_v21  ;;  %v4481_v21 = vld [vmem:[%s9293_s14 + $0x10] sm:$0xff] }
0x19f6   : > { %v7777_v23 = vpop.eup %7776  ;;  %7439 = vmatpush3.msra.mxu1 %v4284_v22  ;;  %7440 = vmatprep.mubr.msk.f32.mxu1 %vm7883_vm0, %v7882_v1  ;;  %v4479_v22 = vld [vmem:[%s9293_s14] sm:$0xff] }
0x19f7   : > { %v4282_v24 = vmul.f32 %v7777_v23, %v7769_v3  ;;  %7454 = vmatprep.subr.mxu1 %v7882_v1  ;;  %v4483_v3 = vld [vmem:[%s9293_s14 + $0x20] sm:$0xff]  ;;  %v4490_v23 = vrot.slane %v2671_v15, %v8229_v55 }
0x19f9   : > { %7441 = vmatmul.mubr.msk.f32.vlgmr.msra.gmra.mxu1 %vm655_vm2, %v4282_v24 }
0x19fa   : > { %7462 = vmatprep.mubr.msk.f32.mxu1 %vm7883_vm0, %v7882_v1  ;;  %7455 = vmatpush3.msra.mxu1 %v4478_v25 }
0x19fb   : > { %7456 = vmatprep.subr.mxu1 %v7882_v1 }
0x19fc   : > { %7457 = vmatpush3.msra.mxu1 %v4477_v28 }
0x19fd   : > { %7458 = vmatprep.subr.mxu1 %v7882_v1 }
0x1a49   : > { %v3860_v11 = vpop.f32.mrf.mxu1 }
0x1a4b   : > { %v7412_v26 = vpop.f32.mrf.mxu1 }
0x1ab1   : > { %v4025_v29 = vpop.f32.mrf.mxu1 }
0x1ab2   : > { %4360 = vrot.lane.b32.xlu0 %v4025_v29, %s9284_s24 }
0x1ab3   : > { %v7422_v32 = vpop.f32.mrf.mxu1 }
0x1ab5   : > { %v4190_v33 = vpop.f32.mrf.mxu1 }
0x1ab6   : > { %4364 = vrot.lane.b32.xlu1 %v4190_v33, %s9285_s17 }
0x1ab7   : > { %v7432_v36 = vpop.f32.mrf.mxu1 }
0x1ab9   : > { %v4355_v37 = vpop.f32.mrf.mxu1 }
0x1aba   : > { %4368 = vrot.lane.b32.xlu0 %v4355_v37, %s9286_s27 }
0x1abb   : > { %v7442_v38 = vpop.f32.mrf.mxu1 }
0x1b24   : > { %v4361_v39 = vpop.permute.xlu0 %4360 }
0x1b25   : > { %v4371_v42 = vsel %vm655_vm2, %v3860_v11, %v4361_v39 }
0x1b28   : > { %v4365_v41 = vpop.permute.xlu1 %4364 }
0x1b29   : > { %v4372_v43 = vsel %vm1326_vm3, %v4371_v42, %v4365_v41  ;;  %v6849_v42 = vld [vmem:[%s9193_s9 + $0x38] sm:$0xff] }
0x1b2c   : > { %v4369_v44 = vpop.permute.xlu0 %4368 }
0x1b2d   : > { %v4373_v7 = vsel %vm1328_vm4, %v4372_v43, %v4369_v44  ;;  %v6848_v43 = vld [vmem:[%s9193_s9 + $0x30] sm:$0xff]  ;;  %v6847_v44 = vld [vmem:[%s9193_s9 + $0x28] sm:$0xff] }
0x1b2e   : > { %7452 = vmatmul.mubr.msk.f32.vlgmr.msra.gmra.mxu0 %vm573_vm1, %v4373_v7  ;;  %v6846_v7 = vld [vmem:[%s9193_s9 + $0x20] sm:$0xff] }
0x1b2f   : > { %7481 = vmatprep.mubr.msk.f32.mxu0 %vm7883_vm0, %v7882_v1  ;;  %7466 = vmatpush3.msra.mxu0 %v4486_v60 }
0x1b30   : > { %7467 = vmatprep.subr.mxu0 %v7882_v1 }
0x1b31   : > { %7468 = vmatpush3.msra.mxu0 %v4485_v61 }
0x1b32   : > { %7469 = vmatprep.subr.mxu0 %v7882_v1 }
0x1b33   : > { %7470 = vmatpush3.msra.mxu0 %v4484_v62 }
0x1b34   : > { %7471 = vmatprep.subr.mxu0 %v7882_v1 }
0x1b35   : > { %7472 = vmatpush3.msra.mxu0 %v4483_v3 }
0x1b36   : > { %7473 = vmatprep.subr.mxu0 %v7882_v1 }
0x1b37   : > { %7474 = vmatpush3.msra.mxu0 %v4482_v4 }
0x1b38   : > { %7475 = vmatprep.subr.mxu0 %v7882_v1 }
0x1b39   : > { %7476 = vmatpush3.msra.mxu0 %v4481_v21 }
0x1b3a   : > { %7477 = vmatprep.subr.mxu0 %v7882_v1 }
0x1b3b   : > { %7478 = vmatpush3.msra.mxu0 %v4480_v47 }
0x1b3c   : > { %7479 = vmatprep.subr.mxu0 %v7882_v1 }
0x1b3d   : > { %7480 = vmatpush3.msra.mxu0 %v4479_v22 }
0x1b3e   : > { %7505 = vmatprep.subr.mxu0 %v7882_v1 }
0x1bee   : > { %v4447_v46 = vpop.f32.mrf.mxu0 }
0x1bef   : > { %v4448_v48 = vadd.f32 %v4447_v46, %v4377_v45 }
0x1bf0   : > { %v7453_v49 = vpop.f32.mrf.mxu0 }
0x1bf1   : > { %v4451_v50 = vadd.f32 %v4448_v48, %v8654_v17  ;;  %v4476_v17 = vld [vmem:[%s9291_s5 + $0x8] sm:$0xff]  ;;  %v4659_v49 = vrot.slane %v2671_v15, %v8182_v31 }
0x1bf2   : > { %7459 = vmatpush3.msra.mxu1 %v4476_v17 }
0x1bf3   : > { %v4452_v52 = vsel %vm573_vm1, %v4451_v50, 0.0  ;;  %7460 = vmatprep.subr.mxu1 %v7882_v1 }
0x1bf4   : > { %4453 = vadd.xlane.f32.xlu1 %v4452_v52  ;;  %7461 = vmatpush3.msra.mxu1 %v4475_v59 }
0x1bf5   : > { %7484 = vmatprep.subr.mxu1 %v7882_v1 }
0x1c7d   : > { %v4454_v51 = vpop.xlane.xlu1 %4453 }
0x1c7e   : > { %v4455_v40 = vmul.f32 0.03125, %v4454_v51  ;;  %v4664_v51 = vrot.slane %v2671_v15, %v8226_v54 }
0x1c80   : > { %v4456_v56 = vsub.f32 %v4451_v50, %v4455_v40 }
0x1c82   : > { %v4457_v57 = vmul.f32 %v4456_v56, %v4456_v56 }
0x1c84   : > { %v4458_v58 = vsel %vm573_vm1, %v4457_v57, 0.0  ;;  %v8843_v57 = vld [vmem:[%s9200_s16 + $0x10] sm:$0xff] }
0x1c85   : > { %4459 = vadd.xlane.f32.xlu0 %v4458_v58  ;;  %v4677_v58 = vrot.slane %v8843_v57, %v8081_v10 }
0x1d0e   : > { %v4460_v5 = vpop.xlane.xlu0 %4459 }
0x1d0f   : > { %v4461_v6 = vmul.f32 0.03125, %v4460_v5 }
0x1d11   : > { %v4462_v13 = vadd.f32 1e-05, %v4461_v6 }
0x1d13   : > { %7778 = vrsqrt.f32 %v4462_v13 }
0x1d20   : > { %v7779_v34 = vpop.eup %7778 }
0x1d21   : > { %v4464_v18 = vmul.f32 %v7779_v34, %v4456_v56 }
0x1d23   : > { %v4469_v19 = vmul.f32 %v4468_v16, %v4464_v18 }
0x1d25   : > { %v4474_v20 = vadd.f32 %v4473_v0, %v4469_v19 }
0x1d27   : > { %7463 = vmatmul.mubr.msk.f32.vlgmr.msra.gmra.mxu1 %vm573_vm1, %v4474_v20 }
0x1d28   : > { %7492 = vmatprep.mubr.msk.f32.mxu1 %vm7883_vm0, %v7882_v1  ;;  %7485 = vmatpush3.msra.mxu1 %v6849_v42 }
0x1d29   : > { %7486 = vmatprep.subr.mxu1 %v7882_v1 }
0x1d2a   : > { %7487 = vmatpush3.msra.mxu1 %v6848_v43 }
0x1d2b   : > { %7488 = vmatprep.subr.mxu1 %v7882_v1 }
0x1d2c   : > { %7489 = vmatpush3.msra.mxu1 %v6847_v44 }
0x1d2d   : > { %7490 = vmatprep.subr.mxu1 %v7882_v1 }
0x1d2e   : > { %7491 = vmatpush3.msra.mxu1 %v6846_v7 }
0x1d2f   : > { %7495 = vmatprep.subr.mxu1 %v7882_v1 }
0x1de7   : > { %v4560_v24 = vpop.f32.mrf.mxu1 }
0x1de8   : > { %v4561_v11 = vadd.f32 %v4560_v24, %v4490_v23 }
0x1de9   : > { %v7464_v26 = vpop.f32.mrf.mxu1 }
0x1dea   : > { %v4564_v27 = vmax.f32 %v4561_v11, 0.0 }
0x1dec   : > { %7482 = vmatmul.mubr.msk.f32.vlgmr.msra.gmra.mxu0 %vm1526_vm5, %v4564_v27 }
0x1ded   : > { %7507 = vmatprep.mubr.msk.f32.mxu0 %vm7883_vm0, %v7882_v1 }
0x1eac   : > { %v4638_v63 = vpop.f32.mrf.mxu0 }
0x1ead   : > { %v4639_v30 = vadd.f32 %v4638_v63, %v4568_v35 }
0x1eae   : > { %v7483_v29 = vpop.f32.mrf.mxu0 }
0x1eaf   : > { %v4642_v32 = vadd.f32 %v4639_v30, %v4474_v20 }
0x1eb1   : > { %v4643_v33 = vsel %vm573_vm1, %v4642_v32, 0.0 }
0x1eb2   : > { %4644 = vadd.xlane.f32.xlu0 %v4643_v33 }
0x1f3b   : > { %v4645_v36 = vpop.xlane.xlu0 %4644 }
0x1f3c   : > { %v4646_v37 = vmul.f32 0.03125, %v4645_v36 }
0x1f3e   : > { %v4647_v38 = vsub.f32 %v4642_v32, %v4646_v37 }
0x1f40   : > { %v4648_v39 = vmul.f32 %v4647_v38, %v4647_v38 }
0x1f42   : > { %v4649_v41 = vsel %vm573_vm1, %v4648_v39, 0.0 }
0x1f43   : > { %4650 = vadd.xlane.f32.xlu1 %v4649_v41 }
0x1fcc   : > { %v4651_v45 = vpop.xlane.xlu1 %4650 }
0x1fcd   : > { %v4652_v46 = vmul.f32 0.03125, %v4651_v45 }
0x1fcf   : > { %v4653_v48 = vadd.f32 1e-05, %v4652_v46 }
0x1fd1   : > { %7780 = vrsqrt.f32 %v4653_v48 }
0x1fde   : > { %v7781_v50 = vpop.eup %7780 }
0x1fdf   : > { %v4655_v52 = vmul.f32 %v7781_v50, %v4647_v38 }
0x1fe1   : > { %v4660_v40 = vmul.f32 %v4659_v49, %v4655_v52 }
0x1fe3   : > { %v8834_v56 = vadd.f32 %v4664_v51, %v4660_v40 }
0x1fe5   : > { %7493 = vmatmul.mubr.msk.f32.vlgmr.msra.gmra.mxu1 %vm573_vm1, %v8834_v56 }
0x1fe6   : > { %7497 = vmatprep.mubr.msk.f32.mxu1 %vm7883_vm0, %v7882_v1 }
0x20a5   : > { %v4747_v25 = vpop.f32.mrf.mxu1 }
0x20a6   : > { %v8847_v28 = vadd.f32 %v4747_v25, %v4677_v58 }
0x20a7   : > { %v7494_v17 = vpop.f32.mrf.mxu1 }
0x20a8   : > { %4924 = vrot.lane.b32.xlu1 %v8847_v28, %s9290_s6  ;;  %4758 = vrot.lane.b32.xlu0 %v8847_v28, %s9274_s21  ;;  %v4751_v59 = vmul.f32 0.35355338, %v8847_v28 }
0x20ac   : > { %5089 = vrot.lane.b32.xlu0 %v8847_v28, %s9278_s19  ;;  %4922 = vrot.lane.b32.xlu1 %v4751_v59, %s9276_s20 }
0x20b0   : > { %5254 = vrot.lane.b32.xlu0 %v8847_v28, %s9279_s0  ;;  %5087 = vrot.lane.b32.xlu1 %v4751_v59, %s9275_s29 }
0x20b4   : > { %5252 = vrot.lane.b32.xlu1 %v4751_v59, %s9277_s22 }
0x211a   : > { %v4925_v60 = vpop.permute.xlu1 %4924  ;;  %v4759_v61 = vpop.permute.xlu0 %4758 }
0x211b   : > { %7496 = vmatpush3.xpose.msk.msra.mxu1 %vm655_vm2, %v4759_v61  ;;  %7506 = vmatpush3.xpose.msk.msra.mxu0 %vm655_vm2, %v4925_v60 }
0x211c   : > { %7515 = vmatprep.subr.mxu0 %v7882_v1  ;;  %7500 = vmatprep.subr.mxu1 %v7882_v1 }
0x211e   : > { %v5090_v62 = vpop.permute.xlu0 %5089  ;;  %v4923_v3 = vpop.permute.xlu1 %4922  ;;  %7498 = vmatmul.mubr.msk.f32.vlgmr.msra.gmra.mxu1 %vm655_vm2, %v4751_v59 }
0x211f   : > { %7508 = vmatmul.mubr.msk.f32.vlgmr.msra.gmra.mxu0 %vm655_vm2, %v4923_v3  ;;  %7502 = vmatprep.mubr.msk.f32.mxu1 %vm7883_vm0, %v7882_v1 }
0x2120   : > { %7516 = vmatpush3.xpose.msk.msra.mxu0 %vm655_vm2, %v5090_v62  ;;  %7517 = vmatprep.mubr.msk.f32.mxu0 %vm7883_vm0, %v7882_v1 }
0x2121   : > { %7525 = vmatprep.subr.mxu0 %v7882_v1 }
0x2122   : > { %v5255_v4 = vpop.permute.xlu0 %5254  ;;  %v5088_v5 = vpop.permute.xlu1 %5087 }
0x2123   : > { %7518 = vmatmul.mubr.msk.f32.vlgmr.msra.gmra.mxu0 %vm655_vm2, %v5088_v5  ;;  %v6853_v5 = vld [vmem:[%s9194_s10 + $0x30] sm:$0xff] }
0x2124   : > { %7526 = vmatpush3.xpose.msk.msra.mxu0 %vm655_vm2, %v5255_v4  ;;  %7527 = vmatprep.mubr.msk.f32.mxu0 %vm7883_vm0, %v7882_v1  ;;  %v6854_v4 = vld [vmem:[%s9194_s10 + $0x38] sm:$0xff] }
0x2125   : > { %7535 = vmatprep.subr.mxu0 %v7882_v1 }
0x2126   : > { %v5253_v6 = vpop.permute.xlu1 %5252 }
0x2127   : > { %7528 = vmatmul.mubr.msk.f32.vlgmr.msra.gmra.mxu0 %vm655_vm2, %v5253_v6  ;;  %v6852_v6 = vld [vmem:[%s9194_s10 + $0x28] sm:$0xff] }
0x2128   : > { %7543 = vmatprep.mubr.msk.f32.mxu0 %vm7883_vm0, %v7882_v1  ;;  %7536 = vmatpush3.msra.mxu0 %v6854_v4 }
0x2129   : > { %7537 = vmatprep.subr.mxu0 %v7882_v1 }
0x212a   : > { %7538 = vmatpush3.msra.mxu0 %v6853_v5 }
0x212b   : > { %7539 = vmatprep.subr.mxu0 %v7882_v1 }
0x212c   : > { %7540 = vmatpush3.msra.mxu0 %v6852_v6 }
0x212d   : > { %7541 = vmatprep.subr.mxu0 %v7882_v1 }
0x21de   : > { %v4831_v13 = vpop.f32.mrf.mxu1 }
0x21df   : > { %v4996_v15 = vpop.f32.mrf.mxu0  ;;  %v4835_v16 = vsel %vm655_vm2, %v4831_v13, -inf }
0x21e0   : > { %4836 = vmax.xlane.f32.xlu0 %v4835_v16  ;;  %v7499_v34 = vpop.f32.mrf.mxu1  ;;  %v5000_v18 = vsel %vm655_vm2, %v4996_v15, -inf }
0x21e1   : > { %5001 = vmax.xlane.f32.xlu1 %v5000_v18  ;;  %v7509_v0 = vpop.f32.mrf.mxu0 }
0x21e3   : > { %v5161_v19 = vpop.f32.mrf.mxu0 }
0x21e4   : > { %v5165_v20 = vsel %vm655_vm2, %v5161_v19, -inf }
0x21e5   : > { %v7519_v21 = vpop.f32.mrf.mxu0  ;;  %5166 = vmax.xlane.f32.xlu0 %v5165_v20 }
0x21e7   : > { %v5326_v47 = vpop.f32.mrf.mxu0 }
0x21e8   : > { %v5330_v22 = vsel %vm655_vm2, %v5326_v47, -inf }
0x21e9   : > { %v7529_v23 = vpop.f32.mrf.mxu0  ;;  %5331 = vmax.xlane.f32.xlu0 %v5330_v22 }
0x21f2   : > { %4846 = vrot.lane.b32.xlu1 %v8847_v28, %s9281_s26 }
0x2269   : > { %v4837_v24 = vpop.xlane.xlu0 %4836 }
0x226a   : > { %v4838_v11 = vsub.f32 %v4831_v13, %v4837_v24  ;;  %v5002_v26 = vpop.xlane.xlu1 %5001  ;;  %v6851_v13 = vld [vmem:[%s9194_s10 + $0x20] sm:$0xff] }
0x226b   : > { %v5003_v27 = vsub.f32 %v4996_v15, %v5002_v26  ;;  %7542 = vmatpush3.msra.mxu0 %v6851_v13  ;;  %v6876_v26 = vld [vmem:[%s9196_s12 + $0x38] sm:$0xff] }
0x226c   : > { %v4839_v35 = vmul.f32 1.442695, %v4838_v11  ;;  %7557 = vmatprep.subr.mxu0 %v7882_v1 }
0x226d   : > { %v5004_v63 = vmul.f32 1.442695, %v5003_v27 }
0x226e   : > { %7782 = vpow2.f32 %v4839_v35  ;;  %v4847_v30 = vpop.permute.xlu1 %4846  ;;  %v5167_v29 = vpop.xlane.xlu0 %5166  ;;  %v6875_v35 = vld [vmem:[%s9196_s12 + $0x30] sm:$0xff] }
0x226f   : > { %7784 = vpow2.f32 %v5004_v63  ;;  %v5168_v32 = vsub.f32 %v5161_v19, %v5167_v29  ;;  %7501 = vmatpush3.msra.mxu1 %v4847_v30  ;;  %v6874_v63 = vld [vmem:[%s9196_s12 + $0x28] sm:$0xff]  ;;  %v6873_v30 = vld [vmem:[%s9196_s12 + $0x20] sm:$0xff]  ;;  %v5435_v29 = vrot.slane %v8843_v57, %v8182_v31 }
0x2270   : > { %7510 = vmatprep.subr.mxu1 %v7882_v1 }
0x2271   : > { %v5169_v33 = vmul.f32 1.442695, %v5168_v32 }
0x2272   : > { %v5332_v36 = vpop.xlane.xlu0 %5331 }
0x2273   : > { %7786 = vpow2.f32 %v5169_v33  ;;  %v5333_v37 = vsub.f32 %v5326_v47, %v5332_v36 }
0x2275   : > { %v5334_v38 = vmul.f32 1.442695, %v5333_v37 }
0x2277   : > { %7788 = vpow2.f32 %v5334_v38 }
0x227b   : > { %v7783_v39 = vpop.eup %7782 }
0x227c   : > { %v7785_v41 = vpop.eup %7784  ;;  %v4841_v42 = vsel %vm655_vm2, %v7783_v39, 0.0 }
0x227d   : > { %4842 = vadd.xlane.f32.xlu1 %v4841_v42  ;;  %v5006_v43 = vsel %vm655_vm2, %v7785_v41, 0.0 }
0x227e   : > { %5007 = vadd.xlane.f32.xlu0 %v5006_v43 }
0x2280   : > { %v7787_v44 = vpop.eup %7786 }
0x2281   : > { %v5171_v7 = vsel %vm655_vm2, %v7787_v44, 0.0 }
0x2282   : > { %5172 = vadd.xlane.f32.xlu1 %v5171_v7 }
0x2284   : > { %v7789_v45 = vpop.eup %7788 }
0x2285   : > { %v5336_v46 = vsel %vm655_vm2, %v7789_v45, 0.0 }
0x2286   : > { %5337 = vadd.xlane.f32.xlu0 %v5336_v46 }
0x2293   : > { %5176 = vrot.lane.b32.xlu1 %v8847_v28, %s9282_s23  ;;  %s550_s23 = sand.u32 1, %s9294_s7  }
0x2297   : > { %5341 = vrot.lane.b32.xlu1 %v8847_v28, %s9283_s2  ;;  %s9295_s2 = sld [smem:[#allocation9_spill]] }
0x229c   : > { %5011 = vrot.lane.b32.xlu0 %v8847_v28, %s9280_s18  ;;  %s6757_s18 = sshll.u32 %s550_s23, 3 }
0x229d   : > { %s6910_s30 = sshll.u32 %s9295_s2, 7  ;;  %s552_s4 = scalar_lea.vmem [#allocation2], %s6757_s18 }
0x229e   : > { %s6682_s25 = sshll.u32 %s552_s4, 4  ;;  %s6680_s1 = scalar_lea.hbm %s9297_s28, %s6910_s30  ;;  %s6683_s25 = int_to_ptr.vmem [resolvable:$true] %s6682_s25 }
0x2306   : > { %v4843_v48 = vpop.xlane.xlu1 %4842 }
0x2307   : > { %7790 = vrcp.f32 %v4843_v48  ;;  %v5008_v49 = vpop.xlane.xlu0 %5007  ;;  %v6870_v48 = vld [vmem:[%s9195_s11 + $0x30] sm:$0xff] }
0x2308   : > { %7792 = vrcp.f32 %v5008_v49  ;;  %v6869_v49 = vld [vmem:[%s9195_s11 + $0x28] sm:$0xff] }
0x230b   : > { %v5173_v50 = vpop.xlane.xlu1 %5172 }
0x230c   : > { %7794 = vrcp.f32 %v5173_v50  ;;  %v6868_v50 = vld [vmem:[%s9195_s11 + $0x20] sm:$0xff] }
0x230f   : > { %v5338_v52 = vpop.xlane.xlu0 %5337  ;;  %v5177_v17 = vpop.permute.xlu1 %5176 }
0x2310   : > { %7796 = vrcp.f32 %v5338_v52 }
0x2313   : > { %v5012_v25 = vpop.permute.xlu0 %5011  ;;  %v5342_v62 = vpop.permute.xlu1 %5341 }
0x2314   : > { %v7791_v51 = vpop.eup %7790 }
0x2315   : > { %v4845_v40 = vmul.f32 %v7791_v51, %v7783_v39  ;;  %v7793_v58 = vpop.eup %7792 }
0x2316   : > { %v5010_v28 = vmul.f32 %v7793_v58, %v7785_v41 }
0x2317   : > { %7503 = vmatmul.mubr.msk.f32.vlgmr.msra.gmra.mxu1 %vm655_vm2, %v4845_v40 }
0x2318   : > { %7511 = vmatpush3.msra.mxu1 %v5012_v25  ;;  %7512 = vmatprep.mubr.msk.f32.mxu1 %vm7883_vm0, %v7882_v1  ;;  %v5526_v25 = vrot.slane %v8843_v57, %v8259_v12  ;;  %v5541_v12 = vrot.slane %v8843_v57, %v8226_v54 }
0x2319   : > { %7520 = vmatprep.subr.mxu1 %v7882_v1  ;;  %v7795_v59 = vpop.eup %7794 }
0x231a   : > { %v5175_v60 = vmul.f32 %v7795_v59, %v7787_v44  ;;  %v5531_v59 = vrot.slane %v8843_v57, %v3531_v8 }
0x231b   : > { %7513 = vmatmul.mubr.msk.f32.vlgmr.msra.gmra.mxu1 %vm655_vm2, %v5010_v28 }
0x231c   : > { %7521 = vmatpush3.msra.mxu1 %v5177_v17  ;;  %7522 = vmatprep.mubr.msk.f32.mxu1 %vm7883_vm0, %v7882_v1 }
0x231d   : > { %7530 = vmatprep.subr.mxu1 %v7882_v1  ;;  %v7797_v61 = vpop.eup %7796 }
0x231e   : > { %v5340_v3 = vmul.f32 %v7797_v61, %v7789_v45  ;;  %v5624_v45 = vrot.slane %v8843_v57, %v8229_v55 }
0x231f   : > { %7523 = vmatmul.mubr.msk.f32.vlgmr.msra.gmra.mxu1 %vm655_vm2, %v5175_v60 }
0x2320   : > { %7531 = vmatpush3.msra.mxu1 %v5342_v62  ;;  %7532 = vmatprep.mubr.msk.f32.mxu1 %vm7883_vm0, %v7882_v1 }
0x2321   : > { %7546 = vmatprep.subr.mxu1 %v7882_v1 }
0x2323   : > { %7533 = vmatmul.mubr.msk.f32.vlgmr.msra.gmra.mxu1 %vm655_vm2, %v5340_v3 }
0x2324   : > { %7554 = vmatprep.mubr.msk.f32.mxu1 %vm7883_vm0, %v7882_v1 }
0x23d7   : > { %v4918_v15 = vpop.f32.mrf.mxu1 }
0x23d9   : > { %v7504_v16 = vpop.f32.mrf.mxu1 }
0x23db   : > { %v5083_v34 = vpop.f32.mrf.mxu1 }
0x23dc   : > { %5418 = vrot.lane.b32.xlu0 %v5083_v34, %s9284_s24 }
0x23dd   : > { %v7514_v18 = vpop.f32.mrf.mxu1 }
0x23df   : > { %v5248_v0 = vpop.f32.mrf.mxu1 }
0x23e0   : > { %5422 = vrot.lane.b32.xlu1 %v5248_v0, %s9285_s17 }
0x23e1   : > { %v7524_v19 = vpop.f32.mrf.mxu1 }
0x23e3   : > { %v5413_v20 = vpop.f32.mrf.mxu1 }
0x23e4   : > { %5426 = vrot.lane.b32.xlu0 %v5413_v20, %s9286_s27 }
0x23e5   : > { %v7534_v21 = vpop.f32.mrf.mxu1 }
0x244e   : > { %v5419_v47 = vpop.permute.xlu0 %5418 }
0x244f   : > { %v5429_v23 = vsel %vm655_vm2, %v4918_v15, %v5419_v47 }
0x2452   : > { %v5423_v22 = vpop.permute.xlu1 %5422 }
0x2453   : > { %v5430_v24 = vsel %vm1326_vm3, %v5429_v23, %v5423_v22 }
0x2456   : > { %v5427_v11 = vpop.permute.xlu0 %5426 }
0x2457   : > { %v5431_v27 = vsel %vm1328_vm4, %v5430_v24, %v5427_v11 }
0x2458   : > { %7544 = vmatmul.mubr.msk.f32.vlgmr.msra.gmra.mxu0 %vm573_vm1, %v5431_v27 }
0x2459   : > { %7558 = vmatpush3.msra.mxu0 %v6876_v26  ;;  %7565 = vmatprep.mubr.msk.f32.mxu0 %vm7883_vm0, %v7882_v1 }
0x245a   : > { %7559 = vmatprep.subr.mxu0 %v7882_v1 }
0x245b   : > { %7560 = vmatpush3.msra.mxu0 %v6875_v35 }
0x245c   : > { %7561 = vmatprep.subr.mxu0 %v7882_v1 }
0x245d   : > { %7562 = vmatpush3.msra.mxu0 %v6874_v63 }
0x245e   : > { %7563 = vmatprep.subr.mxu0 %v7882_v1 }
0x245f   : > { %7564 = vmatpush3.msra.mxu0 %v6873_v30 }
0x2460   : > { %7566 = vmatmul.mubr.msk.f32.vlgmr.msra.gmra.mxu0 %vm573_vm1, %v8617_v53  ;;  %7578 = vmatprep.subr.mxu0 %v7882_v1 }
0x2461   : > { %7580 = vmatprep.mubr.msk.f32.mxu0 %vm7883_vm0, %v7882_v1 }
0x2518   : > { %v5505_v32 = vpop.f32.mrf.mxu0 }
0x2519   : > { %v5506_v33 = vadd.f32 %v5505_v32, %v5435_v29 }
0x251a   : > { %v7545_v36 = vpop.f32.mrf.mxu0 }
0x251b   : > { %v5509_v37 = vadd.f32 %v5506_v33, %v8834_v56  ;;  %v6871_v56 = vld [vmem:[%s9195_s11 + $0x38] sm:$0xff] }
0x251c   : > { %7547 = vmatpush3.msra.mxu1 %v6871_v56 }
0x251d   : > { %v5510_v38 = vsel %vm573_vm1, %v5509_v37, 0.0  ;;  %7548 = vmatprep.subr.mxu1 %v7882_v1 }
0x251e   : > { %5511 = vadd.xlane.f32.xlu1 %v5510_v38  ;;  %7549 = vmatpush3.msra.mxu1 %v6870_v48 }
0x251f   : > { %7550 = vmatprep.subr.mxu1 %v7882_v1 }
0x2520   : > { %v5691_v39 = vpop.f32.mrf.mxu0  ;;  %7551 = vmatpush3.msra.mxu1 %v6869_v49 }
0x2521   : > { %v8965_v46 = vadd.f32 %v5691_v39, %v5624_v45  ;;  %7552 = vmatprep.subr.mxu1 %v7882_v1 }
0x2522   : > { %v7567_v41 = vpop.f32.mrf.mxu0  ;;  %7553 = vmatpush3.msra.mxu1 %v6868_v50 }
0x2523   : > { %7568 = vmatprep.subr.mxu1 %v7882_v1 }
0x25a7   : > { %v5512_v42 = vpop.xlane.xlu1 %5511 }
0x25a8   : > { %v5513_v53 = vmul.f32 0.03125, %v5512_v42 }
0x25aa   : > { %v5514_v43 = vsub.f32 %v5509_v37, %v5513_v53 }
0x25ac   : > { %v5515_v44 = vmul.f32 %v5514_v43, %v5514_v43 }
0x25ae   : > { %v5516_v7 = vsel %vm573_vm1, %v5515_v44, 0.0 }
0x25af   : > { %5517 = vadd.xlane.f32.xlu0 %v5516_v7 }
0x25c5   : > { %5865 = vrot.lane.b32.xlu0 %v8965_v46, %s9276_s20 }
0x2638   : > { %v5518_v52 = vpop.xlane.xlu0 %5517 }
0x2639   : > { %v5519_v51 = vmul.f32 0.03125, %v5518_v52 }
0x263b   : > { %v5520_v40 = vadd.f32 1e-05, %v5519_v51 }
0x263c   : > { %v5866_v58 = vpop.permute.xlu0 %5865 }
0x263d   : > { %7798 = vrsqrt.f32 %v5520_v40  ;;  %7579 = vmatpush3.xpose.msk.msra.mxu0 %vm655_vm2, %v5866_v58 }
0x263e   : > { %7588 = vmatprep.subr.mxu0 %v7882_v1 }
0x264a   : > { %v7799_v17 = vpop.eup %7798 }
0x264b   : > { %v5522_v28 = vmul.f32 %v7799_v17, %v5514_v43 }
0x264d   : > { %v5527_v60 = vmul.f32 %v5526_v25, %v5522_v28 }
0x264f   : > { %v8992_v61 = vadd.f32 %v5531_v59, %v5527_v60 }
0x2651   : > { %7555 = vmatmul.mubr.msk.f32.vlgmr.msra.gmra.mxu1 %vm573_vm1, %v8992_v61 }
0x2652   : > { %7569 = vmatpush3.xpose.msk.msra.mxu1 %vm655_vm2, %v8965_v46  ;;  %7570 = vmatprep.mubr.msk.f32.mxu1 %vm7883_vm0, %v7882_v1 }
0x2653   : > { %7573 = vmatprep.subr.mxu1 %v7882_v1 }
0x2711   : > { %v5611_v62 = vpop.f32.mrf.mxu1 }
0x2712   : > { %v5612_v3 = vadd.f32 %v5611_v62, %v5541_v12 }
0x2713   : > { %v7556_v8 = vpop.f32.mrf.mxu1 }
0x2714   : > { %v5615_v4 = vmul.f32 0.35355338, %v5612_v3 }
0x2716   : > { %6028 = vrot.lane.b32.xlu0 %v5615_v4, %s9275_s29  ;;  %5863 = vrot.lane.b32.xlu1 %v5615_v4, %s9276_s20  ;;  %s7898_s20 = smov [#allocation2]  }
0x2717   : > { %7571 = vmatmul.mubr.msk.f32.vlgmr.msra.gmra.mxu1 %vm655_vm2, %v5615_v4 }
0x2718   : > { %7575 = vmatprep.mubr.msk.f32.mxu1 %vm7883_vm0, %v7882_v1 }
0x271a   : > { %6193 = vrot.lane.b32.xlu0 %v5615_v4, %s9277_s22  ;;  %6030 = vrot.lane.b32.xlu1 %v8965_v46, %s9275_s29  ;;  %s7820_s29 = scalar_lea.vmem %s6683_s25, 128 }
0x271b   : > { %p7821_p11 = scmp.ne.s32.totalorder %s6683_s25, %s7820_s29 }
0x271d   : > { %p7822_p12 = pnand %p7821_p11, %p8027_p5 }
0x271e   : > { %6195 = vrot.lane.b32.xlu1 %v8965_v46, %s9277_s22  ;;  %s7824_s22 = sshll.u32 %s7898_s20, 4  ;;  %s7825_s22 = int_to_ptr.vmem [resolvable:$false] %s7824_s22 }
0x271f   : > { %p7823_p13 = pneg %p7822_p12  ;;  %p7827_p0 = scmp.lt.s32.totalorder %s6683_s25, %s7825_s22 }
0x2788   : > { %v5864_v5 = vpop.permute.xlu1 %5863  ;;  %v6029_v13 = vpop.permute.xlu0 %6028 }
0x2789   : > { %7581 = vmatmul.mubr.msk.f32.vlgmr.msra.gmra.mxu0 %vm655_vm2, %v5864_v5 }
0x278a   : > { %7590 = vmatprep.mubr.msk.f32.mxu0 %vm7883_vm0, %v7882_v1 }
0x278c   : > { %v6031_v6 = vpop.permute.xlu1 %6030  ;;  %v6194_v16 = vpop.permute.xlu0 %6193 }
0x278d   : > { %7589 = vmatpush3.xpose.msk.msra.mxu0 %vm655_vm2, %v6031_v6  ;;  %v6881_v6 = vld [vmem:[%s9197_s13 + $0x38] sm:$0xff] }
0x278e   : > { %7598 = vmatprep.subr.mxu0 %v7882_v1 }
0x2790   : > { %7591 = vmatmul.mubr.msk.f32.vlgmr.msra.gmra.mxu0 %vm655_vm2, %v6029_v13  ;;  %v6196_v15 = vpop.permute.xlu1 %6195  ;;  %v6880_v13 = vld [vmem:[%s9197_s13 + $0x30] sm:$0xff] }
0x2791   : > { %7599 = vmatpush3.xpose.msk.msra.mxu0 %vm655_vm2, %v6196_v15  ;;  %7600 = vmatprep.mubr.msk.f32.mxu0 %vm7883_vm0, %v7882_v1  ;;  %v6879_v15 = vld [vmem:[%s9197_s13 + $0x28] sm:$0xff] }
0x2792   : > { %7608 = vmatprep.subr.mxu0 %v7882_v1 }
0x2794   : > { %7601 = vmatmul.mubr.msk.f32.vlgmr.msra.gmra.mxu0 %vm655_vm2, %v6194_v16  ;;  %v6878_v16 = vld [vmem:[%s9197_s13 + $0x20] sm:$0xff] }
0x2795   : > { %7616 = vmatprep.mubr.msk.f32.mxu0 %vm7883_vm0, %v7882_v1  ;;  %7609 = vmatpush3.msra.mxu0 %v6881_v6 }
0x2796   : > { %7610 = vmatprep.subr.mxu0 %v7882_v1 }
0x2797   : > { %7611 = vmatpush3.msra.mxu0 %v6880_v13 }
0x2798   : > { %7612 = vmatprep.subr.mxu0 %v7882_v1 }
0x2799   : > { %7613 = vmatpush3.msra.mxu0 %v6879_v15 }
0x279a   : > { %7614 = vmatprep.subr.mxu0 %v7882_v1 }
0x279b   : > { %7615 = vmatpush3.msra.mxu0 %v6878_v16 }
0x279c   : > { %7630 = vmatprep.subr.mxu0 %v7882_v1 }
0x27d7   : > { %v5772_v34 = vpop.f32.mrf.mxu1 }
0x27d8   : > { %v5776_v18 = vsel %vm655_vm2, %v5772_v34, -inf }
0x27d9   : > { %5777 = vmax.xlane.f32.xlu1 %v5776_v18  ;;  %v7572_v0 = vpop.f32.mrf.mxu1 }
0x2849   : > { %v5937_v19 = vpop.f32.mrf.mxu0 }
0x284a   : > { %v5941_v20 = vsel %vm655_vm2, %v5937_v19, -inf }
0x284b   : > { %5942 = vmax.xlane.f32.xlu0 %v5941_v20  ;;  %v7582_v21 = vpop.f32.mrf.mxu0 }
0x2850   : > { %v6102_v47 = vpop.f32.mrf.mxu0 }
0x2851   : > { %v6106_v22 = vsel %vm655_vm2, %v6102_v47, -inf }
0x2852   : > { %6107 = vmax.xlane.f32.xlu0 %v6106_v22  ;;  %v7592_v23 = vpop.f32.mrf.mxu0 }
0x2854   : > { %v6267_v24 = vpop.f32.mrf.mxu0 }
0x2855   : > { %v6271_v11 = vsel %vm655_vm2, %v6267_v24, -inf }
0x2856   : > { %v7602_v26 = vpop.f32.mrf.mxu0  ;;  %6272 = vmax.xlane.f32.xlu1 %v6271_v11 }
0x2862   : > { %v5778_v27 = vpop.xlane.xlu1 %5777 }
0x2863   : > { %v5779_v35 = vsub.f32 %v5772_v34, %v5778_v27  ;;  %v6376_v27 = vrot.slane %v8843_v57, %v8251_v2 }
0x2865   : > { %v5780_v63 = vmul.f32 1.442695, %v5779_v35 }
0x2867   : > { %7800 = vpow2.f32 %v5780_v63  ;;  %5952 = vrot.lane.b32.xlu1 %v8965_v46, %s9290_s6 }
0x2874   : > { %v7801_v30 = vpop.eup %7800 }
0x2875   : > { %v5782_v29 = vsel %vm655_vm2, %v7801_v30, 0.0 }
0x2876   : > { %5783 = vadd.xlane.f32.xlu0 %v5782_v29 }
0x288c   : > { %5787 = vrot.lane.b32.xlu0 %v8965_v46, %s9274_s21  ;;  %s6669_s21 = scalar_lea.sflag [#allocation3], %s550_s23 }
0x28d4   : > { %v5943_v32 = vpop.xlane.xlu0 %5942 }
0x28d5   : > { %v5944_v33 = vsub.f32 %v5937_v19, %v5943_v32 }
0x28d7   : > { %v5945_v36 = vmul.f32 1.442695, %v5944_v33 }
0x28d9   : > { %7802 = vpow2.f32 %v5945_v36 }
0x28db   : > { %v6108_v37 = vpop.xlane.xlu0 %6107 }
0x28dc   : > { %v6109_v38 = vsub.f32 %v6102_v47, %v6108_v37 }
0x28de   : > { %v6110_v39 = vmul.f32 1.442695, %v6109_v38 }
0x28df   : > { %v6273_v41 = vpop.xlane.xlu1 %6272 }
0x28e0   : > { %7804 = vpow2.f32 %v6110_v39  ;;  %v6274_v42 = vsub.f32 %v6267_v24, %v6273_v41  ;;  %v6898_v41 = vld [vmem:[%s9291_s5 + $0x38] sm:$0xff] }
0x28e2   : > { %v6275_v53 = vmul.f32 1.442695, %v6274_v42  ;;  %v6897_v42 = vld [vmem:[%s9291_s5 + $0x30] sm:$0xff] }
0x28e3   : > { %v5953_v40 = vpop.permute.xlu1 %5952 }
0x28e4   : > { %7806 = vpow2.f32 %v6275_v53  ;;  %v6895_v53 = vld [vmem:[%s9291_s5 + $0x20] sm:$0xff] }
0x28e6   : > { %v7803_v43 = vpop.eup %7802 }
0x28e7   : > { %v5947_v44 = vsel %vm655_vm2, %v7803_v43, 0.0 }
0x28e8   : > { %5948 = vadd.xlane.f32.xlu1 %v5947_v44  ;;  %v6905_v44 = vld [vmem:[%s9293_s14 + $0x70] sm:$0xff] }
0x28ed   : > { %v7805_v7 = vpop.eup %7804 }
0x28ee   : > { %v6112_v45 = vsel %vm655_vm2, %v7805_v7, 0.0 }
0x28ef   : > { %6113 = vadd.xlane.f32.xlu0 %v6112_v45  ;;  %v6903_v45 = vld [vmem:[%s9293_s14 + $0x60] sm:$0xff] }
0x28f1   : > { %v7807_v56 = vpop.eup %7806 }
0x28f2   : > { %v6277_v48 = vsel %vm655_vm2, %v7807_v56, 0.0 }
0x28f3   : > { %6278 = vadd.xlane.f32.xlu1 %v6277_v48 }
0x28ff   : > { %v5784_v49 = vpop.xlane.xlu0 %5783 }
0x2900   : > { %7808 = vrcp.f32 %v5784_v49 }
0x2903   : > { %v5788_v50 = vpop.permute.xlu0 %5787 }
0x2904   : > { %7574 = vmatpush3.msra.mxu1 %v5788_v50  ;;  %6117 = vrot.lane.b32.xlu1 %v8965_v46, %s9278_s19  ;;  %s7826_s19 = scalar_lea.vmem %s7825_s22, 256 }
0x2905   : > { %6282 = vrot.lane.b32.xlu0 %v8965_v46, %s9279_s0  ;;  %7583 = vmatprep.subr.mxu1 %v7882_v1  ;;  %p7828_p1 = scmp.lt.s32.totalorder %s7826_s19, %s7820_s29 }
0x2907   : > { %p7829_p2 = por %p7828_p1, %p7827_p0 }
0x2909   : > { %p7830_p3 = pnand %p7829_p2, %p7823_p13 }
0x290d   : > { %v7809_v52 = vpop.eup %7808 }
0x290e   : > { %v5786_v51 = vmul.f32 %v7809_v52, %v7801_v30  ;;  %v6845_v52 = vld [vmem:[%s9200_s16 + $0x18] sm:$0x1f] }
0x2910   : > { %7576 = vmatmul.mubr.msk.f32.vlgmr.msra.gmra.mxu1 %vm655_vm2, %v5786_v51  ;;  %v6467_v51 = vrot.slane %v8843_v57, %v4467_v14  ;;  %v6899_v14 = vld [vmem:[%s9293_s14 + $0x40] sm:$0xff] }
0x2911   : > { %7584 = vmatpush3.msra.mxu1 %v5953_v40  ;;  %7585 = vmatprep.mubr.msk.f32.mxu1 %vm7883_vm0, %v7882_v1 }
0x2912   : > { %7593 = vmatprep.subr.mxu1 %v7882_v1 }
0x2971   : > { %v5949_v58 = vpop.xlane.xlu1 %5948 }
0x2972   : > { %7810 = vrcp.f32 %v5949_v58 }
0x2978   : > { %v6114_v25 = vpop.xlane.xlu0 %6113 }
0x2979   : > { %7812 = vrcp.f32 %v6114_v25  ;;  %v6472_v25 = vrot.slane %v6845_v52, %v8081_v10  ;;  %v6491_v10 = vrot.slane %v6845_v52, %v8229_v55 }
0x297c   : > { %v6279_v17 = vpop.xlane.xlu1 %6278  ;;  %v6283_v62 = vpop.permute.xlu0 %6282 }
0x297d   : > { %7814 = vrcp.f32 %v6279_v17 }
0x297f   : > { %v7811_v46 = vpop.eup %7810 }
0x2980   : > { %v6118_v28 = vpop.permute.xlu1 %6117  ;;  %v5951_v59 = vmul.f32 %v7811_v46, %v7803_v43  ;;  %v6906_v43 = vld [vmem:[%s9293_s14 + $0x78] sm:$0xff] }
0x2982   : > { %7586 = vmatmul.mubr.msk.f32.vlgmr.msra.gmra.mxu1 %vm655_vm2, %v5951_v59 }
0x2983   : > { %7594 = vmatpush3.msra.mxu1 %v6118_v28  ;;  %7595 = vmatprep.mubr.msk.f32.mxu1 %vm7883_vm0, %v7882_v1  ;;  %v6901_v28 = vld [vmem:[%s9293_s14 + $0x50] sm:$0xff] }
0x2984   : > { %7603 = vmatprep.subr.mxu1 %v7882_v1 }
0x2986   : > { %v7813_v60 = vpop.eup %7812 }
0x2987   : > { %v6116_v12 = vmul.f32 %v7813_v60, %v7805_v7  ;;  %v6904_v7 = vld [vmem:[%s9293_s14 + $0x68] sm:$0xff] }
0x2989   : > { %7596 = vmatmul.mubr.msk.f32.vlgmr.msra.gmra.mxu1 %vm655_vm2, %v6116_v12 }
0x298a   : > { %v7815_v3 = vpop.eup %7814  ;;  %7604 = vmatpush3.msra.mxu1 %v6283_v62  ;;  %7605 = vmatprep.mubr.msk.f32.mxu1 %vm7883_vm0, %v7882_v1  ;;  %v6569_v62 = vrot.slane %v6845_v52, %v8251_v2  ;;  %v6660_v2 = vrot.slane %v6845_v52, %v8182_v31 }
0x298b   : > { %v6281_v8 = vmul.f32 %v7815_v3, %v7807_v56  ;;  %7619 = vmatprep.subr.mxu1 %v7882_v1  ;;  %v6902_v56 = vld [vmem:[%s9293_s14 + $0x58] sm:$0xff] }
0x298d   : > { %7606 = vmatmul.mubr.msk.f32.vlgmr.msra.gmra.mxu1 %vm655_vm2, %v6281_v8 }
0x298e   : > { %7627 = vmatprep.mubr.msk.f32.mxu1 %vm7883_vm0, %v7882_v1  ;;  %7620 = vmatpush3.msra.mxu1 %v6898_v41 }
0x298f   : > { %7621 = vmatprep.subr.mxu1 %v7882_v1 }
0x2990   : > { %7622 = vmatpush3.msra.mxu1 %v6897_v42 }
0x2991   : > { %7623 = vmatprep.subr.mxu1 %v7882_v1 }
0x29d0   : > { %v5859_v4 = vpop.f32.mrf.mxu1 }
0x29d2   : > { %v7577_v5 = vpop.f32.mrf.mxu1 }
0x2a42   : > { %v6024_v34 = vpop.f32.mrf.mxu1 }
0x2a43   : > { %6359 = vrot.lane.b32.xlu1 %v6024_v34, %s9284_s24 }
0x2a44   : > { %v7587_v18 = vpop.f32.mrf.mxu1 }
0x2a49   : > { %v6189_v0 = vpop.f32.mrf.mxu1 }
0x2a4a   : > { %6363 = vrot.lane.b32.xlu0 %v6189_v0, %s9285_s17 }
0x2a4b   : > { %v7597_v19 = vpop.f32.mrf.mxu1 }
0x2a4d   : > { %v6354_v20 = vpop.f32.mrf.mxu1 }
0x2a4e   : > { %6367 = vrot.lane.b32.xlu1 %v6354_v20, %s9286_s27 }
0x2a4f   : > { %v7607_v21 = vpop.f32.mrf.mxu1 }
0x2a50   : > { %v6665_v21 = vrot.slane %v6845_v52, %v8226_v54 }
0x2ab5   : > { %v6360_v47 = vpop.permute.xlu1 %6359 }
0x2ab6   : > { %v6370_v23 = vsel %vm655_vm2, %v5859_v4, %v6360_v47 }
0x2abc   : > { %v6364_v22 = vpop.permute.xlu0 %6363 }
0x2abd   : > { %v6371_v24 = vsel %vm1326_vm3, %v6370_v23, %v6364_v22 }
0x2ac0   : > { %v6368_v11 = vpop.permute.xlu1 %6367 }
0x2ac1   : > { %v6372_v26 = vsel %vm1328_vm4, %v6371_v24, %v6368_v11 }
0x2ac2   : > { %7617 = vmatmul.mubr.msk.f32.vlgmr.msra.gmra.mxu0 %vm573_vm1, %v6372_v26 }
0x2ac3   : > { %7646 = vmatprep.mubr.msk.f32.mxu0 %vm7883_vm0, %v7882_v1  ;;  %7631 = vmatpush3.msra.mxu0 %v6906_v43 }
0x2ac4   : > { %7632 = vmatprep.subr.mxu0 %v7882_v1 }
0x2ac5   : > { %7633 = vmatpush3.msra.mxu0 %v6905_v44 }
0x2ac6   : > { %7634 = vmatprep.subr.mxu0 %v7882_v1 }
0x2ac7   : > { %7635 = vmatpush3.msra.mxu0 %v6904_v7 }
0x2ac8   : > { %7636 = vmatprep.subr.mxu0 %v7882_v1 }
0x2ac9   : > { %7637 = vmatpush3.msra.mxu0 %v6903_v45 }
0x2aca   : > { %7638 = vmatprep.subr.mxu0 %v7882_v1 }
0x2acb   : > { %7639 = vmatpush3.msra.mxu0 %v6902_v56 }
0x2acc   : > { %7640 = vmatprep.subr.mxu0 %v7882_v1 }
0x2acd   : > { %7641 = vmatpush3.msra.mxu0 %v6901_v28 }
0x2ace   : > { %7642 = vmatprep.subr.mxu0 %v7882_v1 }
0x2acf   : > { %7643 = vmatpush3.msra.mxu0 %v6900_v9 }
0x2ad0   : > { %7644 = vmatprep.subr.mxu0 %v7882_v1 }
0x2ad1   : > { %7645 = vmatpush3.msra.mxu0 %v6899_v14 }
0x2b82   : > { %v6446_v35 = vpop.f32.mrf.mxu0 }
0x2b83   : > { %v6447_v63 = vadd.f32 %v6446_v35, %v6376_v27 }
0x2b84   : > { %v7618_v30 = vpop.f32.mrf.mxu0 }
0x2b85   : > { %v6450_v29 = vadd.f32 %v6447_v63, %v8992_v61  ;;  %v6896_v61 = vld [vmem:[%s9291_s5 + $0x28] sm:$0xff] }
0x2b86   : > { %7624 = vmatpush3.msra.mxu1 %v6896_v61 }
0x2b87   : > { %v6451_v32 = vsel %vm573_vm1, %v6450_v29, 0.0  ;;  %7625 = vmatprep.subr.mxu1 %v7882_v1 }
0x2b88   : > { %6452 = vadd.xlane.f32.xlu0 %v6451_v32  ;;  %7626 = vmatpush3.msra.mxu1 %v6895_v53 }
0x2c11   : > { %v6453_v33 = vpop.xlane.xlu0 %6452 }
0x2c12   : > { %v6454_v36 = vmul.f32 0.03125, %v6453_v33 }
0x2c14   : > { %v6455_v37 = vsub.f32 %v6450_v29, %v6454_v36 }
0x2c16   : > { %v6456_v38 = vmul.f32 %v6455_v37, %v6455_v37 }
0x2c18   : > { %v6457_v39 = vsel %vm573_vm1, %v6456_v38, 0.0 }
0x2c19   : > { %6458 = vadd.xlane.f32.xlu1 %v6457_v39 }
0x2ca2   : > { %v6459_v48 = vpop.xlane.xlu1 %6458 }
0x2ca3   : > { %v6460_v49 = vmul.f32 0.03125, %v6459_v48 }
0x2ca5   : > { %v6461_v50 = vadd.f32 1e-05, %v6460_v49 }
0x2ca7   : > { %7816 = vrsqrt.f32 %v6461_v50 }
0x2cb4   : > { %v7817_v40 = vpop.eup %7816 }
0x2cb5   : > { %v6463_v58 = vmul.f32 %v7817_v40, %v6455_v37 }
0x2cb7   : > { %v6468_v17 = vmul.f32 %v6467_v51, %v6463_v58 }
0x2cb9   : > { %v6473_v46 = vadd.f32 %v6472_v25, %v6468_v17 }
0x2cbb   : > { %7628 = vmatmul.mubr.msk.f32.vlgmr.msra.gmra.mxu1 %vm573_vm1, %v6473_v46 }
0x2d7b   : > { %v6561_v57 = vpop.f32.mrf.mxu1 }
0x2d7c   : > { %v6562_v59 = vadd.f32 %v6561_v57, %v6491_v10 }
0x2d7d   : > { %v7629_v60 = vpop.f32.mrf.mxu1 }
0x2d7e   : > { %v6565_v12 = vmax.f32 %v6562_v59, 0.0 }
0x2d80   : > { %7647 = vmatmul.mubr.msk.f32.vlgmr.msra.gmra.mxu0 %vm1526_vm5, %v6565_v12 }
0x2e40   : > { %v6639_v3 = vpop.f32.mrf.mxu0 }
0x2e41   : > { %v6640_v8 = vadd.f32 %v6639_v3, %v6569_v62 }
0x2e42   : > { %v7648_v4 = vpop.f32.mrf.mxu0 }
0x2e43   : > { %v6643_v5 = vadd.f32 %v6640_v8, %v6473_v46 }
0x2e45   : > { %v6644_v6 = vsel %vm573_vm1, %v6643_v5, 0.0 }
0x2e46   : > { %6645 = vadd.xlane.f32.xlu0 %v6644_v6 }
0x2ecf   : > { %v6646_v1 = vpop.xlane.xlu0 %6645 }
0x2ed0   : > { %v6647_v13 = vmul.f32 0.03125, %v6646_v1 }
0x2ed2   : > { %v6648_v55 = vsub.f32 %v6643_v5, %v6647_v13 }
0x2ed4   : > { %v6649_v15 = vmul.f32 %v6648_v55, %v6648_v55 }
0x2ed6   : > { %v6650_v16 = vsel %vm573_vm1, %v6649_v15, 0.0 }
0x2ed7   : > { %6651 = vadd.xlane.f32.xlu0 %v6650_v16 }
0x2f60   : > { %v6652_v34 = vpop.xlane.xlu0 %6651 }
0x2f61   : > { %v6653_v18 = vmul.f32 0.03125, %v6652_v34 }
0x2f63   : > { %v6654_v0 = vadd.f32 1e-05, %v6653_v18 }
0x2f65   : > { %7818 = vrsqrt.f32 %v6654_v0 }
0x2f72   : > { %v7819_v19 = vpop.eup %7818 }
0x2f73   : > { %v6656_v20 = vmul.f32 %v7819_v19, %v6648_v55 }
0x2f75   : > { %v6661_v47 = vmul.f32 %v6660_v2, %v6656_v20 }
0x2f77   : > { %v6666_v22 = vadd.f32 %v6665_v21, %v6661_v47 }
0x2f79   : > { %6667 = vst.msk [vmem:[%s552_s4] sm:$0xff] %vm573_vm1, %v6666_v22 }
0x2f7a   : > { %7833 = shalt.err (!%p7830_p3)
}
0x2f7b   : > { %s7834_s0 = scalar_lea.hbm %s6680_s1, 128  ;;  %s7838_s24 = scalar_lea.hbm %s9297_s28, 256 }
0x2f7c   : > { %p7835_p4 = scmp.ne.s32.totalorder %s6680_s1, %s7834_s0  ;;  %p7839_p9 = scmp.lt.s32.totalorder %s6680_s1, %s9297_s28 }
0x2f7d   : > { %p7840_p10 = scmp.lt.s32.totalorder %s7838_s24, %s7834_s0 }
0x2f7e   : > { %p7836_p7 = pnand %p7835_p4, %p8027_p5 }
0x2f7f   : > { %p7841_p11 = por %p7840_p10, %p7839_p9 }
0x2f80   : > { %p7837_p8 = pneg %p7836_p7 }
0x2f82   : > { %p7842_p12 = pnand %p7841_p11, %p7837_p8 }
0x2f84   : > { %7845 = shalt.err (!%p7842_p12)
}
0x2f85   : > { %7649 = dma.vmem_to_hbm [thread:$0]  (%p8027_p5), %s6683_s25, 128, %s6680_s1, %s6669_s21  }
0x2f86 PF: > { %s9298_s7 = sld [smem:[#allocation8_spill]] }
0x2f87   : > { %s9299_s2 = sld [smem:[#allocation5_spill]] }
0x2f8c   : > { %p7655_p13 = scmp.ge.s32.totalorder %s9298_s7, 2 }
0x2f8d   : > { %s6694_s18 = sand.u32 1, %s9299_s2  }
0x2f8e   : > { %p7652_p0 = pnand %p7655_p13, %p8031_p6  ;;  %s6695_s30 = scalar_lea.sflag [#allocation3], %s6694_s18 }
0x2f90   : > { %p7653_p1 = pneg %p7652_p0 }
0x2f92   : > { %7863 = dma.done.wait (%p7653_p1), %s6695_s30, 128  }
0x2f93   : > { %7865 = vsyncadd (%p7653_p1), %s6695_s30, 4294967168  ;;  %s9301_s27 = sld [smem:[#allocation10_spill]] }
0x2f94   : > { %s9302_s24 = sld [smem:[#allocation6_spill]] }
0x2f95   : > { %s9303_s25 = sld [smem:[#allocation7_spill]] }
0x2f96   : > { %s9304_s26 = sld [smem:[#allocation11_spill]] }
0x2f99   : > { %p27_p2 = scmp.ge.s32.totalorder %s9301_s27, 4  }
0x2f9b   :  { %29 = sbr.rel (!%p27_p2) target bundleno = 16 (0x10), region = 139 }
0x2fa0   :  { %6700 = vsyncpa [#allocation3], 1 }
0x2fa1   :  { %6702 = vsyncpa [#allocation3 + $0x1], 1 }

</bundles_post_ra>
